<compile_context>
chip_gen: v6e
topology: v6e:2x2x1
jax: 0.10.0
libtpu: 0.0.40
codegen_flags: <defaults>
</compile_context>

<pallas_src>
import functools

import jax
import jax.numpy as jnp
from jax.experimental import pallas as pl
from jax.experimental.pallas import tpu as pltpu


_VMEM_LIMIT = 48 * 1024 * 1024  # safe on v5e/v6e (128 MiB) and v7x (64 MiB)


# ----------------------------------------------------------------------------
# Kernel 1: fused input projection (cate_proj + folded-BN cont_embed + comb_proj)
# ----------------------------------------------------------------------------

def _input_proj_kernel(cate_ref, cont_ref,
                       wcat_ref, bcat_ref, gcat_ref, bcat_ln_ref,
                       wcon_ref, bcon_ref, gcon_ref, bcon_ln_ref,
                       wcmb1_ref, wcmb2_ref, bcmb_ref, gcmb_ref, bcmb_ln_ref,
                       o_ref, *, eps_ln):
    s_tile, bsz, fcat = cate_ref.shape
    cn = cont_ref.shape[-1]
    h = o_ref.shape[-1]
    rows = s_tile * bsz

    def layernorm(x, g, bb):
        mu = jnp.mean(x, axis=-1, keepdims=True)
        var = jnp.mean((x - mu) ** 2, axis=-1, keepdims=True)
        return (x - mu) * jax.lax.rsqrt(var + eps_ln) * g + bb

    # cate_proj: Linear + LayerNorm (bf16 MXU operands, f32 accumulation).
    cate = cate_ref[...].reshape(rows, fcat)                       # bf16
    h1 = layernorm(
        jnp.dot(cate, wcat_ref[...], preferred_element_type=jnp.float32)
        + bcat_ref[...],
        gcat_ref[...], bcat_ln_ref[...])

    # cont_embed (BatchNorm pre-folded into wcon/bcon).  K == cont_cols is
    # tiny, so accumulate VPU outer products instead of a nearly empty MXU pass.
    cont = cont_ref[...].reshape(rows, cn)                          # f32
    acc = cont[:, 0:1] * wcon_ref[0:1, :]
    for k in range(1, cn):                                          # static, tiny
        acc = acc + cont[:, k:k + 1] * wcon_ref[k:k + 1, :]
    h2 = layernorm(acc + bcon_ref[...], gcon_ref[...], bcon_ln_ref[...])

    # comb_proj: ReLU -> Linear(2H, H) -> LayerNorm; torch.cat replaced by
    # split-K partial matmuls so the concatenated activation never exists.
    r1 = jnp.maximum(h1, 0.0).astype(jnp.bfloat16)
    r2 = jnp.maximum(h2, 0.0).astype(jnp.bfloat16)
    comb = (jnp.dot(r1, wcmb1_ref[...], preferred_element_type=jnp.float32)
            + jnp.dot(r2, wcmb2_ref[...], preferred_element_type=jnp.float32)
            + bcmb_ref[...])
    out = layernorm(comb, gcmb_ref[...], bcmb_ln_ref[...])

    # Rows are already time-major; emit the (S_tile, B, H) block in bf16.
    o_ref[...] = out.reshape(s_tile, bsz, h).astype(jnp.bfloat16)


def _pick_seq_tile(s, b):
    """Sequence tile for kernel 1: multiple of 8 dividing S, ~512 rows/block."""
    if s <= 8:
        return s
    target_rows = 512
    best = None
    for t in range(8, s + 1, 8):
        if s % t:
            continue
        if best is None or abs(t * b - target_rows) < abs(best * b - target_rows):
            best = t
    return best if best is not None else s   # fall back to one full block


def fused_input_proj(cate_emb, cont_x, w_cont, b_cont, p):
    s, bsz, fcat = cate_emb.shape
    cn = cont_x.shape[-1]
    h = p["b_cate"].shape[-1]
    s_tile = _pick_seq_tile(s, bsz)
    grid = (s // s_tile,)

    seq_blk = lambda i: (i, 0, 0)
    w2d = lambda i: (0, 0)
    in_specs = [
        pl.BlockSpec((s_tile, bsz, fcat), seq_blk),
        pl.BlockSpec((s_tile, bsz, cn), seq_blk),
        pl.BlockSpec((fcat, h), w2d),
        pl.BlockSpec((1, h), w2d),
        pl.BlockSpec((1, h), w2d),
        pl.BlockSpec((1, h), w2d),
        pl.BlockSpec((cn, h), w2d),
        pl.BlockSpec((1, h), w2d),
        pl.BlockSpec((1, h), w2d),
        pl.BlockSpec((1, h), w2d),
        pl.BlockSpec((h, h), w2d),
        pl.BlockSpec((h, h), w2d),
        pl.BlockSpec((1, h), w2d),
        pl.BlockSpec((1, h), w2d),
        pl.BlockSpec((1, h), w2d),
    ]
    return pl.pallas_call(
        functools.partial(_input_proj_kernel, eps_ln=1e-5),
        out_shape=jax.ShapeDtypeStruct((s, bsz, h), jnp.bfloat16),
        grid=grid,
        in_specs=in_specs,
        out_specs=pl.BlockSpec((s_tile, bsz, h), seq_blk),
        compiler_params=pltpu.CompilerParams(
            dimension_semantics=("parallel",),
            vmem_limit_bytes=_VMEM_LIMIT),
    )(cate_emb, cont_x,
      p["w_cate"], p["b_cate"], p["ln_cate_g"], p["ln_cate_b"],
      w_cont, b_cont, p["ln_cont_g"], p["ln_cont_b"],
      p["w_comb1"], p["w_comb2"], p["b_comb"], p["ln_comb_g"], p["ln_comb_b"])


# ----------------------------------------------------------------------------
# Kernel 2: fused multi-layer LSTM + fc head (grid over time chunks)
# ----------------------------------------------------------------------------

def _lstm_fc_kernel(x_ref, wih_ref, whh_ref, b_ref, wfc_ref, bfc_ref,
                    o_ref, h_sc, c_sc, seq_sc, gates_sc,
                    *, n_layers, hidden, t_chunk):
    chunk = pl.program_id(0)

    @pl.when(chunk == 0)
    def _():
        h_sc[...] = jnp.zeros_like(h_sc)
        c_sc[...] = jnp.zeros_like(c_sc)

    bsz = x_ref.shape[1]
    rows = t_chunk * bsz

    for l in range(n_layers):                          # static unrolled layers
        # Batched input-to-hidden matmul over the whole chunk (MXU M = T*B).
        inp_chunk = x_ref[...] if l == 0 else seq_sc[...]          # (T,B,H) bf16
        gih = (jnp.dot(inp_chunk.reshape(rows, hidden), wih_ref[l],
                       preferred_element_type=jnp.float32) + b_ref[l])
        gates_sc[...] = gih.reshape(t_chunk, bsz, 4 * hidden)

        def step(t, carry, l=l):
            gates = gates_sc[t] + jnp.dot(
                h_sc[l], whh_ref[l], preferred_element_type=jnp.float32)
            i_g = jax.nn.sigmoid(gates[:, :hidden])
            f_g = jax.nn.sigmoid(gates[:, hidden:2 * hidden])
            g_g = jnp.tanh(gates[:, 2 * hidden:3 * hidden])
            o_g = jax.nn.sigmoid(gates[:, 3 * hidden:])
            c_new = f_g * c_sc[l] + i_g * g_g
            h_new = o_g * jnp.tanh(c_new)
            c_sc[l] = c_new
            h_b = h_new.astype(jnp.bfloat16)
            h_sc[l] = h_b
            seq_sc[t] = h_b                            # chunk output of layer l
            return carry

        jax.lax.fori_loop(0, t_chunk, step, 0, unroll=t_chunk <= 16)

    # Fused fc head for the whole chunk: VPU multiply + cross-lane reduce on
    # the accumulated top-layer h (no per-step N=1 MXU matmuls, no per-step
    # 1-lane stores).  The output block is lane-dense (B, T_CHUNK).
    hs = seq_sc[...].astype(jnp.float32)               # (T, B, H)
    fc = jnp.sum(hs * wfc_ref[...], axis=-1)           # (T, B)
    o_ref[...] = fc.T + bfc_ref[...]                   # (B, T)


def _pick_time_chunk(s, b, h):
    """Time-chunk: multiple of 128 dividing S (keeps the (B,T) output block
    lane-aligned) within a modest scratch budget, else one full chunk."""
    if s <= 128:
        return s
    budget = 8 * 1024 * 1024
    best = None
    for t in range(128, s + 1, 128):
        if s % t:
            continue
        if t * b * (4 * h * 4 + h * 2) <= budget and (best is None or t > best):
            best = t
    if best is not None:
        return best
    return 128 if s % 128 == 0 else s


def fused_lstm_fc(x_seq, p):
    s, bsz, h = x_seq.shape
    n_layers = p["lstm_wih"].shape[0]
    t_chunk = _pick_time_chunk(s, bsz, h)
    grid = (s // t_chunk,)

    kernel = functools.partial(_lstm_fc_kernel, n_layers=n_layers,
                               hidden=h, t_chunk=t_chunk)
    return pl.pallas_call(
        kernel,
        out_shape=jax.ShapeDtypeStruct((bsz, s), jnp.float32),
        grid=grid,
        in_specs=[
            pl.BlockSpec((t_chunk, bsz, h), lambda c: (c, 0, 0)),
            pl.BlockSpec((n_layers, h, 4 * h), lambda c: (0, 0, 0)),
            pl.BlockSpec((n_layers, h, 4 * h), lambda c: (0, 0, 0)),
            pl.BlockSpec((n_layers, 1, 4 * h), lambda c: (0, 0, 0)),
            pl.BlockSpec((1, h), lambda c: (0, 0)),
            pl.BlockSpec((1, 1), lambda c: (0, 0)),
        ],
        out_specs=pl.BlockSpec((bsz, t_chunk), lambda c: (0, c)),
        scratch_shapes=[
            pltpu.VMEM((n_layers, bsz, h), jnp.bfloat16),   # h state (carried)
            pltpu.VMEM((n_layers, bsz, h), jnp.float32),    # c state (carried)
            pltpu.VMEM((t_chunk, bsz, h), jnp.bfloat16),    # per-layer chunk I/O
            pltpu.VMEM((t_chunk, bsz, 4 * h), jnp.float32), # precomputed ih gates
        ],
        compiler_params=pltpu.CompilerParams(
            dimension_semantics=("arbitrary",),             # sequential recurrence
            vmem_limit_bytes=_VMEM_LIMIT),
    )(x_seq, p["lstm_wih"], p["lstm_whh"], p["lstm_b"], p["fc_w"], p["fc_b"])


# ----------------------------------------------------------------------------
# Forward pass (mirrors the PyTorch module)
# ----------------------------------------------------------------------------

def lstm_forward(params, cate_x, cont_x, mask=None):
    # `mask` is part of the module's input tuple but unused by its forward.
    del mask
    b, s, cc = cate_x.shape
    e = params["cate_embed"].shape[1]

    # Embedding lookup (data-dependent gather) stays in XLA.  Transposing the
    # tiny int32 *indices* makes the gather emit the big (S, B, Cc*E)
    # activation directly in time-major order -- no big-tensor transpose.
    idx_t = jnp.transpose(cate_x, (1, 0, 2))                         # (S,B,Cc)
    cate_emb = jnp.take(params["cate_embed"], idx_t, axis=0)         # (S,B,Cc,E)
    cate_emb = cate_emb.reshape(s, b, cc * e).astype(jnp.bfloat16)

    cont_t = jnp.transpose(cont_x.astype(jnp.float32), (1, 0, 2))    # small

    # Fold inference-mode BatchNorm1d into the cont_embed Linear.
    scale = params["bn_g"] * jax.lax.rsqrt(params["bn_var"] + 1e-5)  # (1,Cn)
    shift = params["bn_b"] - params["bn_mean"] * scale               # (1,Cn)
    w_cont = params["w_cont"] * scale.reshape(-1, 1)                 # (Cn,H)
    b_cont = params["b_comb"] * 0 + params["b_cont"] + shift @ params["w_cont"]

    x_seq = fused_input_proj(cate_emb, cont_t, w_cont, b_cont, params)  # (S,B,H) bf16
    return fused_lstm_fc(x_seq, params)                                  # (B,S) f32


# ----------------------------------------------------------------------------
# Pure-JAX reference (f32) for correctness checking
# ----------------------------------------------------------------------------

def reference_forward(params, cate_x, cont_x):
    f32 = lambda w: w.astype(jnp.float32)
    b, s, cc = cate_x.shape
    h = params["b_cate"].shape[-1]

    def layernorm(x, g, bb, eps=1e-5):
        mu = jnp.mean(x, -1, keepdims=True)
        var = jnp.mean((x - mu) ** 2, -1, keepdims=True)
        return (x - mu) / jnp.sqrt(var + eps) * g + bb

    emb = jnp.take(params["cate_embed"], cate_x, axis=0).reshape(b, s, -1)
    h1 = layernorm(emb @ f32(params["w_cate"]) + params["b_cate"],
                   params["ln_cate_g"], params["ln_cate_b"])
    xn = ((cont_x - params["bn_mean"]) / jnp.sqrt(params["bn_var"] + 1e-5)
          * params["bn_g"] + params["bn_b"])
    h2 = layernorm(xn @ params["w_cont"] + params["b_cont"],
                   params["ln_cont_g"], params["ln_cont_b"])
    r = jnp.concatenate([jnp.maximum(h1, 0.0), jnp.maximum(h2, 0.0)], axis=-1)
    w_comb = jnp.concatenate([f32(params["w_comb1"]), f32(params["w_comb2"])], 0)
    comb = layernorm(r @ w_comb + params["b_comb"],
                     params["ln_comb_g"], params["ln_comb_b"])

    x_seq = comb.transpose(1, 0, 2)                                # (S, B, H)
    n_layers = params["lstm_wih"].shape[0]
    hs = jnp.zeros((n_layers, b, h), jnp.float32)
    cs = jnp.zeros((n_layers, b, h), jnp.float32)
    ys = []
    for t in range(s):
        inp = x_seq[t]
        new_h, new_c = [], []
        for l in range(n_layers):
            gates = (inp @ f32(params["lstm_wih"][l])
                     + hs[l] @ f32(params["lstm_whh"][l]) + params["lstm_b"][l])
            i_g = jax.nn.sigmoid(gates[:, :h])
            f_g = jax.nn.sigmoid(gates[:, h:2 * h])
            g_g = jnp.tanh(gates[:, 2 * h:3 * h])
            o_g = jax.nn.sigmoid(gates[:, 3 * h:])
            c_new = f_g * cs[l] + i_g * g_g
            h_new = o_g * jnp.tanh(c_new)
            new_h.append(h_new)
            new_c.append(c_new)
            inp = h_new
        hs = jnp.stack(new_h)
        cs = jnp.stack(new_c)
        ys.append(inp)
    y = jnp.stack(ys)                                              # (S, B, H)
    preds = y @ f32(params["fc_w"]).T + params["fc_b"]             # (S, B, 1)
    return preds[..., 0].T                                         # (B, S)


# ----------------------------------------------------------------------------
# Parameters
# ----------------------------------------------------------------------------

def init_params(key, *, offset, embed_dim, hidden_dim, n_layers,
                cate_cols, cont_cols):
    h = hidden_dim
    keys = iter(jax.random.split(key, 64))

    def nrm(shape, s=0.1):
        return jax.random.normal(next(keys), shape, dtype=jnp.float32) * s

    bf16 = lambda w: w.astype(jnp.bfloat16)

    emb = nrm((offset, embed_dim))
    emb = emb.at[0].set(0.0)                      # padding_idx=0

    w_comb = nrm((2 * h, h))                      # split along K for fusion

    wih = jnp.stack([nrm((h, 4 * h)) for _ in range(n_layers)])
    whh = jnp.stack([nrm((h, 4 * h)) for _ in range(n_layers)])
    lstm_b = jnp.stack([nrm((1, 4 * h), 0.05) for _ in range(n_layers)])

    return dict(
        cate_embed=emb,
        w_cate=bf16(nrm((embed_dim * cate_cols, h))),
        b_cate=nrm((1, h), 0.05),
        ln_cate_g=jnp.ones((1, h), jnp.float32),
        ln_cate_b=jnp.zeros((1, h), jnp.float32),
        bn_mean=jnp.zeros((1, cont_cols), jnp.float32),
        bn_var=jnp.ones((1, cont_cols), jnp.float32),
        bn_g=jnp.ones((1, cont_cols), jnp.float32),
        bn_b=jnp.zeros((1, cont_cols), jnp.float32),
        w_cont=nrm((cont_cols, h)),               # f32 (VPU path, BN folded in)
        b_cont=nrm((1, h), 0.05),
        ln_cont_g=jnp.ones((1, h), jnp.float32),
        ln_cont_b=jnp.zeros((1, h), jnp.float32),
        w_comb1=bf16(w_comb[:h]),
        w_comb2=bf16(w_comb[h:]),
        b_comb=nrm((1, h), 0.05),
        ln_comb_g=jnp.ones((1, h), jnp.float32),
        ln_comb_b=jnp.zeros((1, h), jnp.float32),
        lstm_wih=bf16(wih),
        lstm_whh=bf16(whh),
        lstm_b=lstm_b,                            # f32 (b_ih + b_hh folded)
        fc_w=nrm((1, h)),                         # f32 (VPU fc head)
        fc_b=jnp.zeros((1, 1), jnp.float32),
    )


# ----------------------------------------------------------------------------
# Main
# ----------------------------------------------------------------------------

if __name__ == "__main__":
    B, S = 2, 8
    embed_dim = 8
    hidden_dim = 32
    n_layers = 2
    cate_cols = 4
    cont_cols = 3
    offset = 20

    params = init_params(jax.random.PRNGKey(0),
                         offset=offset, embed_dim=embed_dim,
                         hidden_dim=hidden_dim, n_layers=n_layers,
                         cate_cols=cate_cols, cont_cols=cont_cols)

    k1, k2 = jax.random.split(jax.random.PRNGKey(0), 2)
    cate_x = jax.random.randint(k1, (B, S, cate_cols), 0, offset)
    cont_x = jax.random.normal(k2, (B, S, cont_cols), dtype=jnp.float32)
    mask = jnp.ones((B, S), jnp.float32)          # unused by the forward pass

    fwd = jax.jit(lstm_forward)
    preds = jax.block_until_ready(fwd(params, cate_x, cont_x, mask))

    assert preds.shape == (B, S), preds.shape
    assert bool(jnp.all(jnp.isfinite(preds)))

    ref = reference_forward(params, cate_x, cont_x)
    err = float(jnp.max(jnp.abs(preds - ref)))
    assert err < 5e-2, f"mismatch vs reference: {err}"

    print("KERNEL_OK")
</pallas_src>

<mosaic_0001>
module attributes {stable_mosaic.version = 11 : i64} {
  func.func @_input_proj_kernel(%arg0: i32, %arg1: memref<8x2x32xbf16, #tpu.memory_space<vmem>>, %arg2: memref<8x2x3xf32, #tpu.memory_space<vmem>>, %arg3: memref<32x32xbf16, #tpu.memory_space<vmem>>, %arg4: memref<1x32xf32, #tpu.memory_space<vmem>>, %arg5: memref<1x32xf32, #tpu.memory_space<vmem>>, %arg6: memref<1x32xf32, #tpu.memory_space<vmem>>, %arg7: memref<3x32xf32, #tpu.memory_space<vmem>>, %arg8: memref<1x32xf32, #tpu.memory_space<vmem>>, %arg9: memref<1x32xf32, #tpu.memory_space<vmem>>, %arg10: memref<1x32xf32, #tpu.memory_space<vmem>>, %arg11: memref<32x32xbf16, #tpu.memory_space<vmem>>, %arg12: memref<32x32xbf16, #tpu.memory_space<vmem>>, %arg13: memref<1x32xf32, #tpu.memory_space<vmem>>, %arg14: memref<1x32xf32, #tpu.memory_space<vmem>>, %arg15: memref<1x32xf32, #tpu.memory_space<vmem>>, %arg16: memref<8x2x32xbf16, #tpu.memory_space<vmem>>) attributes {dimension_semantics = [#tpu.dimension_semantics<parallel>], iteration_bounds = array<i64: 1>, scalar_prefetch = 0 : i64, scratch_operands = 0 : i64, tpu.core_type = #tpu.core_type<tc>, window_params = [{transform_indices = @transform_0, window_bounds = array<i64: 8, 2, 32>}, {transform_indices = @transform_1, window_bounds = array<i64: 8, 2, 3>}, {pipeline_mode = #tpu.pipeline_mode<synchronous>, transform_indices = @transform_2, window_bounds = array<i64: 32, 32>}, {pipeline_mode = #tpu.pipeline_mode<synchronous>, transform_indices = @transform_3, window_bounds = array<i64: 1, 32>}, {pipeline_mode = #tpu.pipeline_mode<synchronous>, transform_indices = @transform_4, window_bounds = array<i64: 1, 32>}, {pipeline_mode = #tpu.pipeline_mode<synchronous>, transform_indices = @transform_5, window_bounds = array<i64: 1, 32>}, {pipeline_mode = #tpu.pipeline_mode<synchronous>, transform_indices = @transform_6, window_bounds = array<i64: 3, 32>}, {pipeline_mode = #tpu.pipeline_mode<synchronous>, transform_indices = @transform_7, window_bounds = array<i64: 1, 32>}, {pipeline_mode = #tpu.pipeline_mode<synchronous>, transform_indices = @transform_8, window_bounds = array<i64: 1, 32>}, {pipeline_mode = #tpu.pipeline_mode<synchronous>, transform_indices = @transform_9, window_bounds = array<i64: 1, 32>}, {pipeline_mode = #tpu.pipeline_mode<synchronous>, transform_indices = @transform_10, window_bounds = array<i64: 32, 32>}, {pipeline_mode = #tpu.pipeline_mode<synchronous>, transform_indices = @transform_11, window_bounds = array<i64: 32, 32>}, {pipeline_mode = #tpu.pipeline_mode<synchronous>, transform_indices = @transform_12, window_bounds = array<i64: 1, 32>}, {pipeline_mode = #tpu.pipeline_mode<synchronous>, transform_indices = @transform_13, window_bounds = array<i64: 1, 32>}, {pipeline_mode = #tpu.pipeline_mode<synchronous>, transform_indices = @transform_14, window_bounds = array<i64: 1, 32>}, {transform_indices = @transform_15, window_bounds = array<i64: 8, 2, 32>}]} {
    %c0 = arith.constant 0 : index
    %c0_0 = arith.constant 0 : index
    %c0_1 = arith.constant 0 : index
    %0 = vector.load %arg1[%c0, %c0_0, %c0_1] : memref<8x2x32xbf16, #tpu.memory_space<vmem>>, vector<8x2x32xbf16>
    %1 = vector.shape_cast %0 : vector<8x2x32xbf16> to vector<16x32xbf16>
    %c0_2 = arith.constant 0 : index
    %c0_3 = arith.constant 0 : index
    %2 = vector.load %arg3[%c0_2, %c0_3] : memref<32x32xbf16, #tpu.memory_space<vmem>>, vector<32x32xbf16>
    %cst = arith.constant dense<0.000000e+00> : vector<16x32xf32>
    %3 = tpu.matmul %1, %2, %cst {dimension_numbers = #tpu.dot_dimension_numbers<[1], [0], [0], [1], [0, 0, 1, 1], [], []>} : vector<16x32xbf16>, vector<32x32xbf16>, vector<16x32xf32> -> vector<16x32xf32>
    %c0_4 = arith.constant 0 : index
    %c0_5 = arith.constant 0 : index
    %4 = vector.load %arg4[%c0_4, %c0_5] : memref<1x32xf32, #tpu.memory_space<vmem>>, vector<1x32xf32>
    %5 = vector.broadcast %4 : vector<1x32xf32> to vector<16x32xf32>
    %6 = arith.addf %3, %5 : vector<16x32xf32>
    %c0_6 = arith.constant 0 : index
    %c0_7 = arith.constant 0 : index
    %7 = vector.load %arg5[%c0_6, %c0_7] : memref<1x32xf32, #tpu.memory_space<vmem>>, vector<1x32xf32>
    %c0_8 = arith.constant 0 : index
    %c0_9 = arith.constant 0 : index
    %8 = vector.load %arg6[%c0_8, %c0_9] : memref<1x32xf32, #tpu.memory_space<vmem>>, vector<1x32xf32>
    %cst_10 = arith.constant dense<0.000000e+00> : vector<16xf32>
    %9 = vector.multi_reduction <add>, %6, %cst_10 [1] : vector<16x32xf32> to vector<16xf32>
    %10 = vector.shape_cast %9 : vector<16xf32> to vector<16x1xf32>
    %cst_11 = arith.constant 3.200000e+01 : f32
    %11 = vector.broadcast %cst_11 : f32 to vector<16x1xf32>
    %12 = arith.divf %10, %11 : vector<16x1xf32>
    %13 = vector.broadcast %12 : vector<16x1xf32> to vector<16x32xf32>
    %14 = arith.subf %6, %13 : vector<16x32xf32>
    %15 = arith.mulf %14, %14 : vector<16x32xf32>
    %cst_12 = arith.constant dense<0.000000e+00> : vector<16xf32>
    %16 = vector.multi_reduction <add>, %15, %cst_12 [1] : vector<16x32xf32> to vector<16xf32>
    %17 = vector.shape_cast %16 : vector<16xf32> to vector<16x1xf32>
    %cst_13 = arith.constant 3.200000e+01 : f32
    %18 = vector.broadcast %cst_13 : f32 to vector<16x1xf32>
    %19 = arith.divf %17, %18 : vector<16x1xf32>
    %20 = vector.broadcast %12 : vector<16x1xf32> to vector<16x32xf32>
    %21 = arith.subf %6, %20 : vector<16x32xf32>
    %cst_14 = arith.constant 9.99999974E-6 : f32
    %22 = vector.broadcast %cst_14 : f32 to vector<16x1xf32>
    %23 = arith.addf %19, %22 : vector<16x1xf32>
    %24 = math.rsqrt %23 : vector<16x1xf32>
    %25 = vector.broadcast %24 : vector<16x1xf32> to vector<16x32xf32>
    %26 = arith.mulf %21, %25 : vector<16x32xf32>
    %27 = vector.broadcast %7 : vector<1x32xf32> to vector<16x32xf32>
    %28 = arith.mulf %26, %27 : vector<16x32xf32>
    %29 = vector.broadcast %8 : vector<1x32xf32> to vector<16x32xf32>
    %30 = arith.addf %28, %29 : vector<16x32xf32>
    %c0_15 = arith.constant 0 : index
    %c0_16 = arith.constant 0 : index
    %c0_17 = arith.constant 0 : index
    %31 = vector.load %arg2[%c0_15, %c0_16, %c0_17] : memref<8x2x3xf32, #tpu.memory_space<vmem>>, vector<8x2x3xf32>
    %32 = vector.shape_cast %31 : vector<8x2x3xf32> to vector<16x3xf32>
    %33 = vector.extract_strided_slice %32 {offsets = [0, 0], sizes = [16, 1], strides = [1, 1]} : vector<16x3xf32> to vector<16x1xf32>
    %c0_18 = arith.constant 0 : index
    %c0_19 = arith.constant 0 : index
    %34 = vector.load %arg7[%c0_18, %c0_19] : memref<3x32xf32, #tpu.memory_space<vmem>>, vector<1x32xf32>
    %35 = vector.broadcast %33 : vector<16x1xf32> to vector<16x32xf32>
    %36 = vector.broadcast %34 : vector<1x32xf32> to vector<16x32xf32>
    %37 = arith.mulf %35, %36 : vector<16x32xf32>
    %38 = vector.extract_strided_slice %32 {offsets = [0, 1], sizes = [16, 1], strides = [1, 1]} : vector<16x3xf32> to vector<16x1xf32>
    %c1 = arith.constant 1 : index
    %c0_20 = arith.constant 0 : index
    %39 = vector.load %arg7[%c1, %c0_20] : memref<3x32xf32, #tpu.memory_space<vmem>>, vector<1x32xf32>
    %40 = vector.broadcast %38 : vector<16x1xf32> to vector<16x32xf32>
    %41 = vector.broadcast %39 : vector<1x32xf32> to vector<16x32xf32>
    %42 = arith.mulf %40, %41 : vector<16x32xf32>
    %43 = arith.addf %37, %42 : vector<16x32xf32>
    %44 = vector.extract_strided_slice %32 {offsets = [0, 2], sizes = [16, 1], strides = [1, 1]} : vector<16x3xf32> to vector<16x1xf32>
    %c2 = arith.constant 2 : index
    %c0_21 = arith.constant 0 : index
    %45 = vector.load %arg7[%c2, %c0_21] : memref<3x32xf32, #tpu.memory_space<vmem>>, vector<1x32xf32>
    %46 = vector.broadcast %44 : vector<16x1xf32> to vector<16x32xf32>
    %47 = vector.broadcast %45 : vector<1x32xf32> to vector<16x32xf32>
    %48 = arith.mulf %46, %47 : vector<16x32xf32>
    %49 = arith.addf %43, %48 : vector<16x32xf32>
    %c0_22 = arith.constant 0 : index
    %c0_23 = arith.constant 0 : index
    %50 = vector.load %arg8[%c0_22, %c0_23] : memref<1x32xf32, #tpu.memory_space<vmem>>, vector<1x32xf32>
    %51 = vector.broadcast %50 : vector<1x32xf32> to vector<16x32xf32>
    %52 = arith.addf %49, %51 : vector<16x32xf32>
    %c0_24 = arith.constant 0 : index
    %c0_25 = arith.constant 0 : index
    %53 = vector.load %arg9[%c0_24, %c0_25] : memref<1x32xf32, #tpu.memory_space<vmem>>, vector<1x32xf32>
    %c0_26 = arith.constant 0 : index
    %c0_27 = arith.constant 0 : index
    %54 = vector.load %arg10[%c0_26, %c0_27] : memref<1x32xf32, #tpu.memory_space<vmem>>, vector<1x32xf32>
    %cst_28 = arith.constant dense<0.000000e+00> : vector<16xf32>
    %55 = vector.multi_reduction <add>, %52, %cst_28 [1] : vector<16x32xf32> to vector<16xf32>
    %56 = vector.shape_cast %55 : vector<16xf32> to vector<16x1xf32>
    %cst_29 = arith.constant 3.200000e+01 : f32
    %57 = vector.broadcast %cst_29 : f32 to vector<16x1xf32>
    %58 = arith.divf %56, %57 : vector<16x1xf32>
    %59 = vector.broadcast %58 : vector<16x1xf32> to vector<16x32xf32>
    %60 = arith.subf %52, %59 : vector<16x32xf32>
    %61 = arith.mulf %60, %60 : vector<16x32xf32>
    %cst_30 = arith.constant dense<0.000000e+00> : vector<16xf32>
    %62 = vector.multi_reduction <add>, %61, %cst_30 [1] : vector<16x32xf32> to vector<16xf32>
    %63 = vector.shape_cast %62 : vector<16xf32> to vector<16x1xf32>
    %cst_31 = arith.constant 3.200000e+01 : f32
    %64 = vector.broadcast %cst_31 : f32 to vector<16x1xf32>
    %65 = arith.divf %63, %64 : vector<16x1xf32>
    %66 = vector.broadcast %58 : vector<16x1xf32> to vector<16x32xf32>
    %67 = arith.subf %52, %66 : vector<16x32xf32>
    %cst_32 = arith.constant 9.99999974E-6 : f32
    %68 = vector.broadcast %cst_32 : f32 to vector<16x1xf32>
    %69 = arith.addf %65, %68 : vector<16x1xf32>
    %70 = math.rsqrt %69 : vector<16x1xf32>
    %71 = vector.broadcast %70 : vector<16x1xf32> to vector<16x32xf32>
    %72 = arith.mulf %67, %71 : vector<16x32xf32>
    %73 = vector.broadcast %53 : vector<1x32xf32> to vector<16x32xf32>
    %74 = arith.mulf %72, %73 : vector<16x32xf32>
    %75 = vector.broadcast %54 : vector<1x32xf32> to vector<16x32xf32>
    %76 = arith.addf %74, %75 : vector<16x32xf32>
    %cst_33 = arith.constant 0.000000e+00 : f32
    %77 = vector.broadcast %cst_33 : f32 to vector<16x32xf32>
    %78 = arith.maximumf %30, %77 : vector<16x32xf32>
    %79 = arith.truncf %78 : vector<16x32xf32> to vector<16x32xbf16>
    %cst_34 = arith.constant 0.000000e+00 : f32
    %80 = vector.broadcast %cst_34 : f32 to vector<16x32xf32>
    %81 = arith.maximumf %76, %80 : vector<16x32xf32>
    %82 = arith.truncf %81 : vector<16x32xf32> to vector<16x32xbf16>
    %c0_35 = arith.constant 0 : index
    %c0_36 = arith.constant 0 : index
    %83 = vector.load %arg11[%c0_35, %c0_36] : memref<32x32xbf16, #tpu.memory_space<vmem>>, vector<32x32xbf16>
    %cst_37 = arith.constant dense<0.000000e+00> : vector<16x32xf32>
    %84 = tpu.matmul %79, %83, %cst_37 {dimension_numbers = #tpu.dot_dimension_numbers<[1], [0], [0], [1], [0, 0, 1, 1], [], []>} : vector<16x32xbf16>, vector<32x32xbf16>, vector<16x32xf32> -> vector<16x32xf32>
    %c0_38 = arith.constant 0 : index
    %c0_39 = arith.constant 0 : index
    %85 = vector.load %arg12[%c0_38, %c0_39] : memref<32x32xbf16, #tpu.memory_space<vmem>>, vector<32x32xbf16>
    %cst_40 = arith.constant dense<0.000000e+00> : vector<16x32xf32>
    %86 = tpu.matmul %82, %85, %cst_40 {dimension_numbers = #tpu.dot_dimension_numbers<[1], [0], [0], [1], [0, 0, 1, 1], [], []>} : vector<16x32xbf16>, vector<32x32xbf16>, vector<16x32xf32> -> vector<16x32xf32>
    %87 = arith.addf %84, %86 : vector<16x32xf32>
    %c0_41 = arith.constant 0 : index
    %c0_42 = arith.constant 0 : index
    %88 = vector.load %arg13[%c0_41, %c0_42] : memref<1x32xf32, #tpu.memory_space<vmem>>, vector<1x32xf32>
    %89 = vector.broadcast %88 : vector<1x32xf32> to vector<16x32xf32>
    %90 = arith.addf %87, %89 : vector<16x32xf32>
    %c0_43 = arith.constant 0 : index
    %c0_44 = arith.constant 0 : index
    %91 = vector.load %arg14[%c0_43, %c0_44] : memref<1x32xf32, #tpu.memory_space<vmem>>, vector<1x32xf32>
    %c0_45 = arith.constant 0 : index
    %c0_46 = arith.constant 0 : index
    %92 = vector.load %arg15[%c0_45, %c0_46] : memref<1x32xf32, #tpu.memory_space<vmem>>, vector<1x32xf32>
    %cst_47 = arith.constant dense<0.000000e+00> : vector<16xf32>
    %93 = vector.multi_reduction <add>, %90, %cst_47 [1] : vector<16x32xf32> to vector<16xf32>
    %94 = vector.shape_cast %93 : vector<16xf32> to vector<16x1xf32>
    %cst_48 = arith.constant 3.200000e+01 : f32
    %95 = vector.broadcast %cst_48 : f32 to vector<16x1xf32>
    %96 = arith.divf %94, %95 : vector<16x1xf32>
    %97 = vector.broadcast %96 : vector<16x1xf32> to vector<16x32xf32>
    %98 = arith.subf %90, %97 : vector<16x32xf32>
    %99 = arith.mulf %98, %98 : vector<16x32xf32>
    %cst_49 = arith.constant dense<0.000000e+00> : vector<16xf32>
    %100 = vector.multi_reduction <add>, %99, %cst_49 [1] : vector<16x32xf32> to vector<16xf32>
    %101 = vector.shape_cast %100 : vector<16xf32> to vector<16x1xf32>
    %cst_50 = arith.constant 3.200000e+01 : f32
    %102 = vector.broadcast %cst_50 : f32 to vector<16x1xf32>
    %103 = arith.divf %101, %102 : vector<16x1xf32>
    %104 = vector.broadcast %96 : vector<16x1xf32> to vector<16x32xf32>
    %105 = arith.subf %90, %104 : vector<16x32xf32>
    %cst_51 = arith.constant 9.99999974E-6 : f32
    %106 = vector.broadcast %cst_51 : f32 to vector<16x1xf32>
    %107 = arith.addf %103, %106 : vector<16x1xf32>
    %108 = math.rsqrt %107 : vector<16x1xf32>
    %109 = vector.broadcast %108 : vector<16x1xf32> to vector<16x32xf32>
    %110 = arith.mulf %105, %109 : vector<16x32xf32>
    %111 = vector.broadcast %91 : vector<1x32xf32> to vector<16x32xf32>
    %112 = arith.mulf %110, %111 : vector<16x32xf32>
    %113 = vector.broadcast %92 : vector<1x32xf32> to vector<16x32xf32>
    %114 = arith.addf %112, %113 : vector<16x32xf32>
    %115 = vector.shape_cast %114 : vector<16x32xf32> to vector<8x2x32xf32>
    %116 = arith.truncf %115 : vector<8x2x32xf32> to vector<8x2x32xbf16>
    %c0_52 = arith.constant 0 : index
    %c0_53 = arith.constant 0 : index
    %c0_54 = arith.constant 0 : index
    %117 = vector.load %arg16[%c0_52, %c0_53, %c0_54] : memref<8x2x32xbf16, #tpu.memory_space<vmem>>, vector<8x2x32xbf16>
    tpu.vector_store %arg16[%c0_52, %c0_53, %c0_54], %116 {strides = array<i32>} : memref<8x2x32xbf16, #tpu.memory_space<vmem>>, vector<8x2x32xbf16>,
    return
  }
  func.func @transform_0(%arg0: i32) -> (i32, i32, i32) {
    %c0_i32 = arith.constant 0 : i32
    %c0_i32_0 = arith.constant 0 : i32
    %c0_i32_1 = arith.constant 0 : i32
    return %arg0, %c0_i32, %c0_i32_0 : i32, i32, i32
  }
  func.func @transform_1(%arg0: i32) -> (i32, i32, i32) {
    %c0_i32 = arith.constant 0 : i32
    %c0_i32_0 = arith.constant 0 : i32
    %c0_i32_1 = arith.constant 0 : i32
    return %arg0, %c0_i32, %c0_i32_0 : i32, i32, i32
  }
  func.func @transform_2(%arg0: i32) -> (i32, i32) {
    %c0_i32 = arith.constant 0 : i32
    %c0_i32_0 = arith.constant 0 : i32
    %c0_i32_1 = arith.constant 0 : i32
    return %c0_i32, %c0_i32_0 : i32, i32
  }
  func.func @transform_3(%arg0: i32) -> (i32, i32) {
    %c0_i32 = arith.constant 0 : i32
    %c0_i32_0 = arith.constant 0 : i32
    %c0_i32_1 = arith.constant 0 : i32
    return %c0_i32, %c0_i32_0 : i32, i32
  }
  func.func @transform_4(%arg0: i32) -> (i32, i32) {
    %c0_i32 = arith.constant 0 : i32
    %c0_i32_0 = arith.constant 0 : i32
    %c0_i32_1 = arith.constant 0 : i32
    return %c0_i32, %c0_i32_0 : i32, i32
  }
  func.func @transform_5(%arg0: i32) -> (i32, i32) {
    %c0_i32 = arith.constant 0 : i32
    %c0_i32_0 = arith.constant 0 : i32
    %c0_i32_1 = arith.constant 0 : i32
    return %c0_i32, %c0_i32_0 : i32, i32
  }
  func.func @transform_6(%arg0: i32) -> (i32, i32) {
    %c0_i32 = arith.constant 0 : i32
    %c0_i32_0 = arith.constant 0 : i32
    %c0_i32_1 = arith.constant 0 : i32
    return %c0_i32, %c0_i32_0 : i32, i32
  }
  func.func @transform_7(%arg0: i32) -> (i32, i32) {
    %c0_i32 = arith.constant 0 : i32
    %c0_i32_0 = arith.constant 0 : i32
    %c0_i32_1 = arith.constant 0 : i32
    return %c0_i32, %c0_i32_0 : i32, i32
  }
  func.func @transform_8(%arg0: i32) -> (i32, i32) {
    %c0_i32 = arith.constant 0 : i32
    %c0_i32_0 = arith.constant 0 : i32
    %c0_i32_1 = arith.constant 0 : i32
    return %c0_i32, %c0_i32_0 : i32, i32
  }
  func.func @transform_9(%arg0: i32) -> (i32, i32) {
    %c0_i32 = arith.constant 0 : i32
    %c0_i32_0 = arith.constant 0 : i32
    %c0_i32_1 = arith.constant 0 : i32
    return %c0_i32, %c0_i32_0 : i32, i32
  }
  func.func @transform_10(%arg0: i32) -> (i32, i32) {
    %c0_i32 = arith.constant 0 : i32
    %c0_i32_0 = arith.constant 0 : i32
    %c0_i32_1 = arith.constant 0 : i32
    return %c0_i32, %c0_i32_0 : i32, i32
  }
  func.func @transform_11(%arg0: i32) -> (i32, i32) {
    %c0_i32 = arith.constant 0 : i32
    %c0_i32_0 = arith.constant 0 : i32
    %c0_i32_1 = arith.constant 0 : i32
    return %c0_i32, %c0_i32_0 : i32, i32
  }
  func.func @transform_12(%arg0: i32) -> (i32, i32) {
    %c0_i32 = arith.constant 0 : i32
    %c0_i32_0 = arith.constant 0 : i32
    %c0_i32_1 = arith.constant 0 : i32
    return %c0_i32, %c0_i32_0 : i32, i32
  }
  func.func @transform_13(%arg0: i32) -> (i32, i32) {
    %c0_i32 = arith.constant 0 : i32
    %c0_i32_0 = arith.constant 0 : i32
    %c0_i32_1 = arith.constant 0 : i32
    return %c0_i32, %c0_i32_0 : i32, i32
  }
  func.func @transform_14(%arg0: i32) -> (i32, i32) {
    %c0_i32 = arith.constant 0 : i32
    %c0_i32_0 = arith.constant 0 : i32
    %c0_i32_1 = arith.constant 0 : i32
    return %c0_i32, %c0_i32_0 : i32, i32
  }
  func.func @transform_15(%arg0: i32) -> (i32, i32, i32) {
    %c0_i32 = arith.constant 0 : i32
    %c0_i32_0 = arith.constant 0 : i32
    %c0_i32_1 = arith.constant 0 : i32
    return %arg0, %c0_i32, %c0_i32_0 : i32, i32, i32
  }
}

module attributes {stable_mosaic.version = 11 : i64} {
  func.func @_lstm_fc_kernel(%arg0: i32, %arg1: memref<8x2x32xbf16, #tpu.memory_space<vmem>>, %arg2: memref<2x32x128xbf16, #tpu.memory_space<vmem>>, %arg3: memref<2x32x128xbf16, #tpu.memory_space<vmem>>, %arg4: memref<2x1x128xf32, #tpu.memory_space<vmem>>, %arg5: memref<1x32xf32, #tpu.memory_space<vmem>>, %arg6: memref<1x1xf32, #tpu.memory_space<vmem>>, %arg7: memref<2x8xf32, #tpu.memory_space<vmem>>, %arg8: memref<2x2x32xbf16, #tpu.memory_space<vmem>>, %arg9: memref<2x2x32xf32, #tpu.memory_space<vmem>>, %arg10: memref<8x2x32xbf16, #tpu.memory_space<vmem>>, %arg11: memref<8x2x128xf32, #tpu.memory_space<vmem>>) attributes {dimension_semantics = [#tpu.dimension_semantics<arbitrary>], iteration_bounds = array<i64: 1>, scalar_prefetch = 0 : i64, scratch_operands = 4 : i64, tpu.core_type = #tpu.core_type<tc>, window_params = [{transform_indices = @transform_0, window_bounds = array<i64: 8, 2, 32>}, {pipeline_mode = #tpu.pipeline_mode<synchronous>, transform_indices = @transform_1, window_bounds = array<i64: 2, 32, 128>}, {pipeline_mode = #tpu.pipeline_mode<synchronous>, transform_indices = @transform_2, window_bounds = array<i64: 2, 32, 128>}, {pipeline_mode = #tpu.pipeline_mode<synchronous>, transform_indices = @transform_3, window_bounds = array<i64: 2, 1, 128>}, {pipeline_mode = #tpu.pipeline_mode<synchronous>, transform_indices = @transform_4, window_bounds = array<i64: 1, 32>}, {pipeline_mode = #tpu.pipeline_mode<synchronous>, transform_indices = @transform_5, window_bounds = array<i64: 1, 1>}, {transform_indices = @transform_6, window_bounds = array<i64: 2, 8>}]} {
    %c0_i32 = arith.constant 0 : i32
    %0 = arith.cmpi eq, %arg0, %c0_i32 : i32
    %1 = arith.extui %0 : i1 to i32
    %c0_i32_0 = arith.constant 0 : i32
    %2 = arith.cmpi ne, %1, %c0_i32_0 : i32
    scf.if %2 {
      %cst_412 = arith.constant 0.000000e+00 : bf16
      %789 = vector.broadcast %cst_412 : bf16 to vector<2x2x32xbf16>
      %c0_413 = arith.constant 0 : index
      %c0_414 = arith.constant 0 : index
      %c0_415 = arith.constant 0 : index
      %790 = vector.load %arg8[%c0_413, %c0_414, %c0_415] : memref<2x2x32xbf16, #tpu.memory_space<vmem>>, vector<2x2x32xbf16>
      tpu.vector_store %arg8[%c0_413, %c0_414, %c0_415], %789 {strides = array<i32>} : memref<2x2x32xbf16, #tpu.memory_space<vmem>>, vector<2x2x32xbf16>,
      %cst_416 = arith.constant 0.000000e+00 : f32
      %791 = vector.broadcast %cst_416 : f32 to vector<2x2x32xf32>
      %c0_417 = arith.constant 0 : index
      %c0_418 = arith.constant 0 : index
      %c0_419 = arith.constant 0 : index
      %792 = vector.load %arg9[%c0_417, %c0_418, %c0_419] : memref<2x2x32xf32, #tpu.memory_space<vmem>>, vector<2x2x32xf32>
      tpu.vector_store %arg9[%c0_417, %c0_418, %c0_419], %791 {strides = array<i32>} : memref<2x2x32xf32, #tpu.memory_space<vmem>>, vector<2x2x32xf32>,
    } else {
    }
    %c0 = arith.constant 0 : index
    %c0_1 = arith.constant 0 : index
    %c0_2 = arith.constant 0 : index
    %3 = vector.load %arg1[%c0, %c0_1, %c0_2] : memref<8x2x32xbf16, #tpu.memory_space<vmem>>, vector<8x2x32xbf16>
    %4 = vector.shape_cast %3 : vector<8x2x32xbf16> to vector<16x32xbf16>
    %c0_3 = arith.constant 0 : index
    %c0_4 = arith.constant 0 : index
    %c0_5 = arith.constant 0 : index
    %5 = vector.load %arg2[%c0_3, %c0_4, %c0_5] : memref<2x32x128xbf16, #tpu.memory_space<vmem>>, vector<1x32x128xbf16>
    %6 = vector.shape_cast %5 : vector<1x32x128xbf16> to vector<32x128xbf16>
    %cst = arith.constant dense<0.000000e+00> : vector<16x128xf32>
    %7 = tpu.matmul %4, %6, %cst {dimension_numbers = #tpu.dot_dimension_numbers<[1], [0], [0], [1], [0, 0, 1, 1], [], []>} : vector<16x32xbf16>, vector<32x128xbf16>, vector<16x128xf32> -> vector<16x128xf32>
    %c0_6 = arith.constant 0 : index
    %c0_7 = arith.constant 0 : index
    %c0_8 = arith.constant 0 : index
    %8 = vector.load %arg4[%c0_6, %c0_7, %c0_8] : memref<2x1x128xf32, #tpu.memory_space<vmem>>, vector<1x1x128xf32>
    %9 = vector.shape_cast %8 : vector<1x1x128xf32> to vector<1x128xf32>
    %10 = vector.broadcast %9 : vector<1x128xf32> to vector<16x128xf32>
    %11 = arith.addf %7, %10 : vector<16x128xf32>
    %12 = vector.shape_cast %11 : vector<16x128xf32> to vector<8x2x128xf32>
    %c0_9 = arith.constant 0 : index
    %c0_10 = arith.constant 0 : index
    %c0_11 = arith.constant 0 : index
    %13 = vector.load %arg11[%c0_9, %c0_10, %c0_11] : memref<8x2x128xf32, #tpu.memory_space<vmem>>, vector<8x2x128xf32>
    tpu.vector_store %arg11[%c0_9, %c0_10, %c0_11], %12 {strides = array<i32>} : memref<8x2x128xf32, #tpu.memory_space<vmem>>, vector<8x2x128xf32>,
    %c0_i32_12 = arith.constant 0 : i32
    %14 = arith.index_cast %c0_i32_12 : i32 to index
    %c0_13 = arith.constant 0 : index
    %c0_14 = arith.constant 0 : index
    %15 = vector.load %arg11[%14, %c0_13, %c0_14] : memref<8x2x128xf32, #tpu.memory_space<vmem>>, vector<1x2x128xf32>
    %16 = vector.shape_cast %15 : vector<1x2x128xf32> to vector<2x128xf32>
    %c0_15 = arith.constant 0 : index
    %c0_16 = arith.constant 0 : index
    %c0_17 = arith.constant 0 : index
    %17 = vector.load %arg8[%c0_15, %c0_16, %c0_17] : memref<2x2x32xbf16, #tpu.memory_space<vmem>>, vector<1x2x32xbf16>
    %18 = vector.shape_cast %17 : vector<1x2x32xbf16> to vector<2x32xbf16>
    %c0_18 = arith.constant 0 : index
    %c0_19 = arith.constant 0 : index
    %c0_20 = arith.constant 0 : index
    %19 = vector.load %arg3[%c0_18, %c0_19, %c0_20] : memref<2x32x128xbf16, #tpu.memory_space<vmem>>, vector<1x32x128xbf16>
    %20 = vector.shape_cast %19 : vector<1x32x128xbf16> to vector<32x128xbf16>
    %cst_21 = arith.constant dense<0.000000e+00> : vector<2x128xf32>
    %21 = tpu.matmul %18, %20, %cst_21 {dimension_numbers = #tpu.dot_dimension_numbers<[1], [0], [0], [1], [0, 0, 1, 1], [], []>} : vector<2x32xbf16>, vector<32x128xbf16>, vector<2x128xf32> -> vector<2x128xf32>
    %22 = arith.addf %16, %21 : vector<2x128xf32>
    %23 = vector.extract_strided_slice %22 {offsets = [0, 0], sizes = [2, 32], strides = [1, 1]} : vector<2x128xf32> to vector<2x32xf32>
    %24 = arith.negf %23 : vector<2x32xf32>
    %25 = math.exp %24 : vector<2x32xf32>
    %cst_22 = arith.constant 1.000000e+00 : f32
    %26 = vector.broadcast %cst_22 : f32 to vector<2x32xf32>
    %27 = arith.addf %26, %25 : vector<2x32xf32>
    %28 = arith.divf %26, %27 : vector<2x32xf32>
    %29 = vector.extract_strided_slice %22 {offsets = [0, 32], sizes = [2, 32], strides = [1, 1]} : vector<2x128xf32> to vector<2x32xf32>
    %30 = arith.negf %29 : vector<2x32xf32>
    %31 = math.exp %30 : vector<2x32xf32>
    %cst_23 = arith.constant 1.000000e+00 : f32
    %32 = vector.broadcast %cst_23 : f32 to vector<2x32xf32>
    %33 = arith.addf %32, %31 : vector<2x32xf32>
    %34 = arith.divf %32, %33 : vector<2x32xf32>
    %35 = vector.extract_strided_slice %22 {offsets = [0, 64], sizes = [2, 32], strides = [1, 1]} : vector<2x128xf32> to vector<2x32xf32>
    %36 = math.tanh %35 : vector<2x32xf32>
    %37 = vector.extract_strided_slice %22 {offsets = [0, 96], sizes = [2, 32], strides = [1, 1]} : vector<2x128xf32> to vector<2x32xf32>
    %38 = arith.negf %37 : vector<2x32xf32>
    %39 = math.exp %38 : vector<2x32xf32>
    %cst_24 = arith.constant 1.000000e+00 : f32
    %40 = vector.broadcast %cst_24 : f32 to vector<2x32xf32>
    %41 = arith.addf %40, %39 : vector<2x32xf32>
    %42 = arith.divf %40, %41 : vector<2x32xf32>
    %c0_25 = arith.constant 0 : index
    %c0_26 = arith.constant 0 : index
    %c0_27 = arith.constant 0 : index
    %43 = vector.load %arg9[%c0_25, %c0_26, %c0_27] : memref<2x2x32xf32, #tpu.memory_space<vmem>>, vector<1x2x32xf32>
    %44 = vector.shape_cast %43 : vector<1x2x32xf32> to vector<2x32xf32>
    %45 = arith.mulf %34, %44 : vector<2x32xf32>
    %46 = arith.mulf %28, %36 : vector<2x32xf32>
    %47 = arith.addf %45, %46 : vector<2x32xf32>
    %48 = math.tanh %47 : vector<2x32xf32>
    %49 = arith.mulf %42, %48 : vector<2x32xf32>
    %c0_28 = arith.constant 0 : index
    %c0_29 = arith.constant 0 : index
    %c0_30 = arith.constant 0 : index
    %50 = vector.load %arg9[%c0_28, %c0_29, %c0_30] : memref<2x2x32xf32, #tpu.memory_space<vmem>>, vector<1x2x32xf32>
    %51 = vector.shape_cast %50 : vector<1x2x32xf32> to vector<2x32xf32>
    %52 = vector.shape_cast %47 : vector<2x32xf32> to vector<1x2x32xf32>
    tpu.vector_store %arg9[%c0_28, %c0_29, %c0_30], %52 {strides = array<i32>} : memref<2x2x32xf32, #tpu.memory_space<vmem>>, vector<1x2x32xf32>,
    %53 = arith.truncf %49 : vector<2x32xf32> to vector<2x32xbf16>
    %c0_31 = arith.constant 0 : index
    %c0_32 = arith.constant 0 : index
    %c0_33 = arith.constant 0 : index
    %54 = vector.load %arg8[%c0_31, %c0_32, %c0_33] : memref<2x2x32xbf16, #tpu.memory_space<vmem>>, vector<1x2x32xbf16>
    %55 = vector.shape_cast %54 : vector<1x2x32xbf16> to vector<2x32xbf16>
    %56 = vector.shape_cast %53 : vector<2x32xbf16> to vector<1x2x32xbf16>
    tpu.vector_store %arg8[%c0_31, %c0_32, %c0_33], %56 {strides = array<i32>} : memref<2x2x32xbf16, #tpu.memory_space<vmem>>, vector<1x2x32xbf16>,
    %57 = arith.index_cast %c0_i32_12 : i32 to index
    %c0_34 = arith.constant 0 : index
    %c0_35 = arith.constant 0 : index
    %58 = vector.load %arg10[%57, %c0_34, %c0_35] : memref<8x2x32xbf16, #tpu.memory_space<vmem>>, vector<1x2x32xbf16>
    %59 = vector.shape_cast %58 : vector<1x2x32xbf16> to vector<2x32xbf16>
    %60 = vector.shape_cast %53 : vector<2x32xbf16> to vector<1x2x32xbf16>
    tpu.vector_store %arg10[%57, %c0_34, %c0_35], %60 {strides = array<i32>} : memref<8x2x32xbf16, #tpu.memory_space<vmem>>, vector<1x2x32xbf16>,
    %c1_i32 = arith.constant 1 : i32
    %61 = arith.index_cast %c1_i32 : i32 to index
    %c0_36 = arith.constant 0 : index
    %c0_37 = arith.constant 0 : index
    %62 = vector.load %arg11[%61, %c0_36, %c0_37] : memref<8x2x128xf32, #tpu.memory_space<vmem>>, vector<1x2x128xf32>
    %63 = vector.shape_cast %62 : vector<1x2x128xf32> to vector<2x128xf32>
    %c0_38 = arith.constant 0 : index
    %c0_39 = arith.constant 0 : index
    %c0_40 = arith.constant 0 : index
    %64 = vector.load %arg8[%c0_38, %c0_39, %c0_40] : memref<2x2x32xbf16, #tpu.memory_space<vmem>>, vector<1x2x32xbf16>
    %65 = vector.shape_cast %64 : vector<1x2x32xbf16> to vector<2x32xbf16>
    %c0_41 = arith.constant 0 : index
    %c0_42 = arith.constant 0 : index
    %c0_43 = arith.constant 0 : index
    %66 = vector.load %arg3[%c0_41, %c0_42, %c0_43] : memref<2x32x128xbf16, #tpu.memory_space<vmem>>, vector<1x32x128xbf16>
    %67 = vector.shape_cast %66 : vector<1x32x128xbf16> to vector<32x128xbf16>
    %cst_44 = arith.constant dense<0.000000e+00> : vector<2x128xf32>
    %68 = tpu.matmul %65, %67, %cst_44 {dimension_numbers = #tpu.dot_dimension_numbers<[1], [0], [0], [1], [0, 0, 1, 1], [], []>} : vector<2x32xbf16>, vector<32x128xbf16>, vector<2x128xf32> -> vector<2x128xf32>
    %69 = arith.addf %63, %68 : vector<2x128xf32>
    %70 = vector.extract_strided_slice %69 {offsets = [0, 0], sizes = [2, 32], strides = [1, 1]} : vector<2x128xf32> to vector<2x32xf32>
    %71 = arith.negf %70 : vector<2x32xf32>
    %72 = math.exp %71 : vector<2x32xf32>
    %cst_45 = arith.constant 1.000000e+00 : f32
    %73 = vector.broadcast %cst_45 : f32 to vector<2x32xf32>
    %74 = arith.addf %73, %72 : vector<2x32xf32>
    %75 = arith.divf %73, %74 : vector<2x32xf32>
    %76 = vector.extract_strided_slice %69 {offsets = [0, 32], sizes = [2, 32], strides = [1, 1]} : vector<2x128xf32> to vector<2x32xf32>
    %77 = arith.negf %76 : vector<2x32xf32>
    %78 = math.exp %77 : vector<2x32xf32>
    %cst_46 = arith.constant 1.000000e+00 : f32
    %79 = vector.broadcast %cst_46 : f32 to vector<2x32xf32>
    %80 = arith.addf %79, %78 : vector<2x32xf32>
    %81 = arith.divf %79, %80 : vector<2x32xf32>
    %82 = vector.extract_strided_slice %69 {offsets = [0, 64], sizes = [2, 32], strides = [1, 1]} : vector<2x128xf32> to vector<2x32xf32>
    %83 = math.tanh %82 : vector<2x32xf32>
    %84 = vector.extract_strided_slice %69 {offsets = [0, 96], sizes = [2, 32], strides = [1, 1]} : vector<2x128xf32> to vector<2x32xf32>
    %85 = arith.negf %84 : vector<2x32xf32>
    %86 = math.exp %85 : vector<2x32xf32>
    %cst_47 = arith.constant 1.000000e+00 : f32
    %87 = vector.broadcast %cst_47 : f32 to vector<2x32xf32>
    %88 = arith.addf %87, %86 : vector<2x32xf32>
    %89 = arith.divf %87, %88 : vector<2x32xf32>
    %c0_48 = arith.constant 0 : index
    %c0_49 = arith.constant 0 : index
    %c0_50 = arith.constant 0 : index
    %90 = vector.load %arg9[%c0_48, %c0_49, %c0_50] : memref<2x2x32xf32, #tpu.memory_space<vmem>>, vector<1x2x32xf32>
    %91 = vector.shape_cast %90 : vector<1x2x32xf32> to vector<2x32xf32>
    %92 = arith.mulf %81, %91 : vector<2x32xf32>
    %93 = arith.mulf %75, %83 : vector<2x32xf32>
    %94 = arith.addf %92, %93 : vector<2x32xf32>
    %95 = math.tanh %94 : vector<2x32xf32>
    %96 = arith.mulf %89, %95 : vector<2x32xf32>
    %c0_51 = arith.constant 0 : index
    %c0_52 = arith.constant 0 : index
    %c0_53 = arith.constant 0 : index
    %97 = vector.load %arg9[%c0_51, %c0_52, %c0_53] : memref<2x2x32xf32, #tpu.memory_space<vmem>>, vector<1x2x32xf32>
    %98 = vector.shape_cast %97 : vector<1x2x32xf32> to vector<2x32xf32>
    %99 = vector.shape_cast %94 : vector<2x32xf32> to vector<1x2x32xf32>
    tpu.vector_store %arg9[%c0_51, %c0_52, %c0_53], %99 {strides = array<i32>} : memref<2x2x32xf32, #tpu.memory_space<vmem>>, vector<1x2x32xf32>,
    %100 = arith.truncf %96 : vector<2x32xf32> to vector<2x32xbf16>
    %c0_54 = arith.constant 0 : index
    %c0_55 = arith.constant 0 : index
    %c0_56 = arith.constant 0 : index
    %101 = vector.load %arg8[%c0_54, %c0_55, %c0_56] : memref<2x2x32xbf16, #tpu.memory_space<vmem>>, vector<1x2x32xbf16>
    %102 = vector.shape_cast %101 : vector<1x2x32xbf16> to vector<2x32xbf16>
    %103 = vector.shape_cast %100 : vector<2x32xbf16> to vector<1x2x32xbf16>
    tpu.vector_store %arg8[%c0_54, %c0_55, %c0_56], %103 {strides = array<i32>} : memref<2x2x32xbf16, #tpu.memory_space<vmem>>, vector<1x2x32xbf16>,
    %104 = arith.index_cast %c1_i32 : i32 to index
    %c0_57 = arith.constant 0 : index
    %c0_58 = arith.constant 0 : index
    %105 = vector.load %arg10[%104, %c0_57, %c0_58] : memref<8x2x32xbf16, #tpu.memory_space<vmem>>, vector<1x2x32xbf16>
    %106 = vector.shape_cast %105 : vector<1x2x32xbf16> to vector<2x32xbf16>
    %107 = vector.shape_cast %100 : vector<2x32xbf16> to vector<1x2x32xbf16>
    tpu.vector_store %arg10[%104, %c0_57, %c0_58], %107 {strides = array<i32>} : memref<8x2x32xbf16, #tpu.memory_space<vmem>>, vector<1x2x32xbf16>,
    %c2_i32 = arith.constant 2 : i32
    %108 = arith.index_cast %c2_i32 : i32 to index
    %c0_59 = arith.constant 0 : index
    %c0_60 = arith.constant 0 : index
    %109 = vector.load %arg11[%108, %c0_59, %c0_60] : memref<8x2x128xf32, #tpu.memory_space<vmem>>, vector<1x2x128xf32>
    %110 = vector.shape_cast %109 : vector<1x2x128xf32> to vector<2x128xf32>
    %c0_61 = arith.constant 0 : index
    %c0_62 = arith.constant 0 : index
    %c0_63 = arith.constant 0 : index
    %111 = vector.load %arg8[%c0_61, %c0_62, %c0_63] : memref<2x2x32xbf16, #tpu.memory_space<vmem>>, vector<1x2x32xbf16>
    %112 = vector.shape_cast %111 : vector<1x2x32xbf16> to vector<2x32xbf16>
    %c0_64 = arith.constant 0 : index
    %c0_65 = arith.constant 0 : index
    %c0_66 = arith.constant 0 : index
    %113 = vector.load %arg3[%c0_64, %c0_65, %c0_66] : memref<2x32x128xbf16, #tpu.memory_space<vmem>>, vector<1x32x128xbf16>
    %114 = vector.shape_cast %113 : vector<1x32x128xbf16> to vector<32x128xbf16>
    %cst_67 = arith.constant dense<0.000000e+00> : vector<2x128xf32>
    %115 = tpu.matmul %112, %114, %cst_67 {dimension_numbers = #tpu.dot_dimension_numbers<[1], [0], [0], [1], [0, 0, 1, 1], [], []>} : vector<2x32xbf16>, vector<32x128xbf16>, vector<2x128xf32> -> vector<2x128xf32>
    %116 = arith.addf %110, %115 : vector<2x128xf32>
    %117 = vector.extract_strided_slice %116 {offsets = [0, 0], sizes = [2, 32], strides = [1, 1]} : vector<2x128xf32> to vector<2x32xf32>
    %118 = arith.negf %117 : vector<2x32xf32>
    %119 = math.exp %118 : vector<2x32xf32>
    %cst_68 = arith.constant 1.000000e+00 : f32
    %120 = vector.broadcast %cst_68 : f32 to vector<2x32xf32>
    %121 = arith.addf %120, %119 : vector<2x32xf32>
    %122 = arith.divf %120, %121 : vector<2x32xf32>
    %123 = vector.extract_strided_slice %116 {offsets = [0, 32], sizes = [2, 32], strides = [1, 1]} : vector<2x128xf32> to vector<2x32xf32>
    %124 = arith.negf %123 : vector<2x32xf32>
    %125 = math.exp %124 : vector<2x32xf32>
    %cst_69 = arith.constant 1.000000e+00 : f32
    %126 = vector.broadcast %cst_69 : f32 to vector<2x32xf32>
    %127 = arith.addf %126, %125 : vector<2x32xf32>
    %128 = arith.divf %126, %127 : vector<2x32xf32>
    %129 = vector.extract_strided_slice %116 {offsets = [0, 64], sizes = [2, 32], strides = [1, 1]} : vector<2x128xf32> to vector<2x32xf32>
    %130 = math.tanh %129 : vector<2x32xf32>
    %131 = vector.extract_strided_slice %116 {offsets = [0, 96], sizes = [2, 32], strides = [1, 1]} : vector<2x128xf32> to vector<2x32xf32>
    %132 = arith.negf %131 : vector<2x32xf32>
    %133 = math.exp %132 : vector<2x32xf32>
    %cst_70 = arith.constant 1.000000e+00 : f32
    %134 = vector.broadcast %cst_70 : f32 to vector<2x32xf32>
    %135 = arith.addf %134, %133 : vector<2x32xf32>
    %136 = arith.divf %134, %135 : vector<2x32xf32>
    %c0_71 = arith.constant 0 : index
    %c0_72 = arith.constant 0 : index
    %c0_73 = arith.constant 0 : index
    %137 = vector.load %arg9[%c0_71, %c0_72, %c0_73] : memref<2x2x32xf32, #tpu.memory_space<vmem>>, vector<1x2x32xf32>
    %138 = vector.shape_cast %137 : vector<1x2x32xf32> to vector<2x32xf32>
    %139 = arith.mulf %128, %138 : vector<2x32xf32>
    %140 = arith.mulf %122, %130 : vector<2x32xf32>
    %141 = arith.addf %139, %140 : vector<2x32xf32>
    %142 = math.tanh %141 : vector<2x32xf32>
    %143 = arith.mulf %136, %142 : vector<2x32xf32>
    %c0_74 = arith.constant 0 : index
    %c0_75 = arith.constant 0 : index
    %c0_76 = arith.constant 0 : index
    %144 = vector.load %arg9[%c0_74, %c0_75, %c0_76] : memref<2x2x32xf32, #tpu.memory_space<vmem>>, vector<1x2x32xf32>
    %145 = vector.shape_cast %144 : vector<1x2x32xf32> to vector<2x32xf32>
    %146 = vector.shape_cast %141 : vector<2x32xf32> to vector<1x2x32xf32>
    tpu.vector_store %arg9[%c0_74, %c0_75, %c0_76], %146 {strides = array<i32>} : memref<2x2x32xf32, #tpu.memory_space<vmem>>, vector<1x2x32xf32>,
    %147 = arith.truncf %143 : vector<2x32xf32> to vector<2x32xbf16>
    %c0_77 = arith.constant 0 : index
    %c0_78 = arith.constant 0 : index
    %c0_79 = arith.constant 0 : index
    %148 = vector.load %arg8[%c0_77, %c0_78, %c0_79] : memref<2x2x32xbf16, #tpu.memory_space<vmem>>, vector<1x2x32xbf16>
    %149 = vector.shape_cast %148 : vector<1x2x32xbf16> to vector<2x32xbf16>
    %150 = vector.shape_cast %147 : vector<2x32xbf16> to vector<1x2x32xbf16>
    tpu.vector_store %arg8[%c0_77, %c0_78, %c0_79], %150 {strides = array<i32>} : memref<2x2x32xbf16, #tpu.memory_space<vmem>>, vector<1x2x32xbf16>,
    %151 = arith.index_cast %c2_i32 : i32 to index
    %c0_80 = arith.constant 0 : index
    %c0_81 = arith.constant 0 : index
    %152 = vector.load %arg10[%151, %c0_80, %c0_81] : memref<8x2x32xbf16, #tpu.memory_space<vmem>>, vector<1x2x32xbf16>
    %153 = vector.shape_cast %152 : vector<1x2x32xbf16> to vector<2x32xbf16>
    %154 = vector.shape_cast %147 : vector<2x32xbf16> to vector<1x2x32xbf16>
    tpu.vector_store %arg10[%151, %c0_80, %c0_81], %154 {strides = array<i32>} : memref<8x2x32xbf16, #tpu.memory_space<vmem>>, vector<1x2x32xbf16>,
    %c3_i32 = arith.constant 3 : i32
    %155 = arith.index_cast %c3_i32 : i32 to index
    %c0_82 = arith.constant 0 : index
    %c0_83 = arith.constant 0 : index
    %156 = vector.load %arg11[%155, %c0_82, %c0_83] : memref<8x2x128xf32, #tpu.memory_space<vmem>>, vector<1x2x128xf32>
    %157 = vector.shape_cast %156 : vector<1x2x128xf32> to vector<2x128xf32>
    %c0_84 = arith.constant 0 : index
    %c0_85 = arith.constant 0 : index
    %c0_86 = arith.constant 0 : index
    %158 = vector.load %arg8[%c0_84, %c0_85, %c0_86] : memref<2x2x32xbf16, #tpu.memory_space<vmem>>, vector<1x2x32xbf16>
    %159 = vector.shape_cast %158 : vector<1x2x32xbf16> to vector<2x32xbf16>
    %c0_87 = arith.constant 0 : index
    %c0_88 = arith.constant 0 : index
    %c0_89 = arith.constant 0 : index
    %160 = vector.load %arg3[%c0_87, %c0_88, %c0_89] : memref<2x32x128xbf16, #tpu.memory_space<vmem>>, vector<1x32x128xbf16>
    %161 = vector.shape_cast %160 : vector<1x32x128xbf16> to vector<32x128xbf16>
    %cst_90 = arith.constant dense<0.000000e+00> : vector<2x128xf32>
    %162 = tpu.matmul %159, %161, %cst_90 {dimension_numbers = #tpu.dot_dimension_numbers<[1], [0], [0], [1], [0, 0, 1, 1], [], []>} : vector<2x32xbf16>, vector<32x128xbf16>, vector<2x128xf32> -> vector<2x128xf32>
    %163 = arith.addf %157, %162 : vector<2x128xf32>
    %164 = vector.extract_strided_slice %163 {offsets = [0, 0], sizes = [2, 32], strides = [1, 1]} : vector<2x128xf32> to vector<2x32xf32>
    %165 = arith.negf %164 : vector<2x32xf32>
    %166 = math.exp %165 : vector<2x32xf32>
    %cst_91 = arith.constant 1.000000e+00 : f32
    %167 = vector.broadcast %cst_91 : f32 to vector<2x32xf32>
    %168 = arith.addf %167, %166 : vector<2x32xf32>
    %169 = arith.divf %167, %168 : vector<2x32xf32>
    %170 = vector.extract_strided_slice %163 {offsets = [0, 32], sizes = [2, 32], strides = [1, 1]} : vector<2x128xf32> to vector<2x32xf32>
    %171 = arith.negf %170 : vector<2x32xf32>
    %172 = math.exp %171 : vector<2x32xf32>
    %cst_92 = arith.constant 1.000000e+00 : f32
    %173 = vector.broadcast %cst_92 : f32 to vector<2x32xf32>
    %174 = arith.addf %173, %172 : vector<2x32xf32>
    %175 = arith.divf %173, %174 : vector<2x32xf32>
    %176 = vector.extract_strided_slice %163 {offsets = [0, 64], sizes = [2, 32], strides = [1, 1]} : vector<2x128xf32> to vector<2x32xf32>
    %177 = math.tanh %176 : vector<2x32xf32>
    %178 = vector.extract_strided_slice %163 {offsets = [0, 96], sizes = [2, 32], strides = [1, 1]} : vector<2x128xf32> to vector<2x32xf32>
    %179 = arith.negf %178 : vector<2x32xf32>
    %180 = math.exp %179 : vector<2x32xf32>
    %cst_93 = arith.constant 1.000000e+00 : f32
    %181 = vector.broadcast %cst_93 : f32 to vector<2x32xf32>
    %182 = arith.addf %181, %180 : vector<2x32xf32>
    %183 = arith.divf %181, %182 : vector<2x32xf32>
    %c0_94 = arith.constant 0 : index
    %c0_95 = arith.constant 0 : index
    %c0_96 = arith.constant 0 : index
    %184 = vector.load %arg9[%c0_94, %c0_95, %c0_96] : memref<2x2x32xf32, #tpu.memory_space<vmem>>, vector<1x2x32xf32>
    %185 = vector.shape_cast %184 : vector<1x2x32xf32> to vector<2x32xf32>
    %186 = arith.mulf %175, %185 : vector<2x32xf32>
    %187 = arith.mulf %169, %177 : vector<2x32xf32>
    %188 = arith.addf %186, %187 : vector<2x32xf32>
    %189 = math.tanh %188 : vector<2x32xf32>
    %190 = arith.mulf %183, %189 : vector<2x32xf32>
    %c0_97 = arith.constant 0 : index
    %c0_98 = arith.constant 0 : index
    %c0_99 = arith.constant 0 : index
    %191 = vector.load %arg9[%c0_97, %c0_98, %c0_99] : memref<2x2x32xf32, #tpu.memory_space<vmem>>, vector<1x2x32xf32>
    %192 = vector.shape_cast %191 : vector<1x2x32xf32> to vector<2x32xf32>
    %193 = vector.shape_cast %188 : vector<2x32xf32> to vector<1x2x32xf32>
    tpu.vector_store %arg9[%c0_97, %c0_98, %c0_99], %193 {strides = array<i32>} : memref<2x2x32xf32, #tpu.memory_space<vmem>>, vector<1x2x32xf32>,
    %194 = arith.truncf %190 : vector<2x32xf32> to vector<2x32xbf16>
    %c0_100 = arith.constant 0 : index
    %c0_101 = arith.constant 0 : index
    %c0_102 = arith.constant 0 : index
    %195 = vector.load %arg8[%c0_100, %c0_101, %c0_102] : memref<2x2x32xbf16, #tpu.memory_space<vmem>>, vector<1x2x32xbf16>
    %196 = vector.shape_cast %195 : vector<1x2x32xbf16> to vector<2x32xbf16>
    %197 = vector.shape_cast %194 : vector<2x32xbf16> to vector<1x2x32xbf16>
    tpu.vector_store %arg8[%c0_100, %c0_101, %c0_102], %197 {strides = array<i32>} : memref<2x2x32xbf16, #tpu.memory_space<vmem>>, vector<1x2x32xbf16>,
    %198 = arith.index_cast %c3_i32 : i32 to index
    %c0_103 = arith.constant 0 : index
    %c0_104 = arith.constant 0 : index
    %199 = vector.load %arg10[%198, %c0_103, %c0_104] : memref<8x2x32xbf16, #tpu.memory_space<vmem>>, vector<1x2x32xbf16>
    %200 = vector.shape_cast %199 : vector<1x2x32xbf16> to vector<2x32xbf16>
    %201 = vector.shape_cast %194 : vector<2x32xbf16> to vector<1x2x32xbf16>
    tpu.vector_store %arg10[%198, %c0_103, %c0_104], %201 {strides = array<i32>} : memref<8x2x32xbf16, #tpu.memory_space<vmem>>, vector<1x2x32xbf16>,
    %c4_i32 = arith.constant 4 : i32
    %202 = arith.index_cast %c4_i32 : i32 to index
    %c0_105 = arith.constant 0 : index
    %c0_106 = arith.constant 0 : index
    %203 = vector.load %arg11[%202, %c0_105, %c0_106] : memref<8x2x128xf32, #tpu.memory_space<vmem>>, vector<1x2x128xf32>
    %204 = vector.shape_cast %203 : vector<1x2x128xf32> to vector<2x128xf32>
    %c0_107 = arith.constant 0 : index
    %c0_108 = arith.constant 0 : index
    %c0_109 = arith.constant 0 : index
    %205 = vector.load %arg8[%c0_107, %c0_108, %c0_109] : memref<2x2x32xbf16, #tpu.memory_space<vmem>>, vector<1x2x32xbf16>
    %206 = vector.shape_cast %205 : vector<1x2x32xbf16> to vector<2x32xbf16>
    %c0_110 = arith.constant 0 : index
    %c0_111 = arith.constant 0 : index
    %c0_112 = arith.constant 0 : index
    %207 = vector.load %arg3[%c0_110, %c0_111, %c0_112] : memref<2x32x128xbf16, #tpu.memory_space<vmem>>, vector<1x32x128xbf16>
    %208 = vector.shape_cast %207 : vector<1x32x128xbf16> to vector<32x128xbf16>
    %cst_113 = arith.constant dense<0.000000e+00> : vector<2x128xf32>
    %209 = tpu.matmul %206, %208, %cst_113 {dimension_numbers = #tpu.dot_dimension_numbers<[1], [0], [0], [1], [0, 0, 1, 1], [], []>} : vector<2x32xbf16>, vector<32x128xbf16>, vector<2x128xf32> -> vector<2x128xf32>
    %210 = arith.addf %204, %209 : vector<2x128xf32>
    %211 = vector.extract_strided_slice %210 {offsets = [0, 0], sizes = [2, 32], strides = [1, 1]} : vector<2x128xf32> to vector<2x32xf32>
    %212 = arith.negf %211 : vector<2x32xf32>
    %213 = math.exp %212 : vector<2x32xf32>
    %cst_114 = arith.constant 1.000000e+00 : f32
    %214 = vector.broadcast %cst_114 : f32 to vector<2x32xf32>
    %215 = arith.addf %214, %213 : vector<2x32xf32>
    %216 = arith.divf %214, %215 : vector<2x32xf32>
    %217 = vector.extract_strided_slice %210 {offsets = [0, 32], sizes = [2, 32], strides = [1, 1]} : vector<2x128xf32> to vector<2x32xf32>
    %218 = arith.negf %217 : vector<2x32xf32>
    %219 = math.exp %218 : vector<2x32xf32>
    %cst_115 = arith.constant 1.000000e+00 : f32
    %220 = vector.broadcast %cst_115 : f32 to vector<2x32xf32>
    %221 = arith.addf %220, %219 : vector<2x32xf32>
    %222 = arith.divf %220, %221 : vector<2x32xf32>
    %223 = vector.extract_strided_slice %210 {offsets = [0, 64], sizes = [2, 32], strides = [1, 1]} : vector<2x128xf32> to vector<2x32xf32>
    %224 = math.tanh %223 : vector<2x32xf32>
    %225 = vector.extract_strided_slice %210 {offsets = [0, 96], sizes = [2, 32], strides = [1, 1]} : vector<2x128xf32> to vector<2x32xf32>
    %226 = arith.negf %225 : vector<2x32xf32>
    %227 = math.exp %226 : vector<2x32xf32>
    %cst_116 = arith.constant 1.000000e+00 : f32
    %228 = vector.broadcast %cst_116 : f32 to vector<2x32xf32>
    %229 = arith.addf %228, %227 : vector<2x32xf32>
    %230 = arith.divf %228, %229 : vector<2x32xf32>
    %c0_117 = arith.constant 0 : index
    %c0_118 = arith.constant 0 : index
    %c0_119 = arith.constant 0 : index
    %231 = vector.load %arg9[%c0_117, %c0_118, %c0_119] : memref<2x2x32xf32, #tpu.memory_space<vmem>>, vector<1x2x32xf32>
    %232 = vector.shape_cast %231 : vector<1x2x32xf32> to vector<2x32xf32>
    %233 = arith.mulf %222, %232 : vector<2x32xf32>
    %234 = arith.mulf %216, %224 : vector<2x32xf32>
    %235 = arith.addf %233, %234 : vector<2x32xf32>
    %236 = math.tanh %235 : vector<2x32xf32>
    %237 = arith.mulf %230, %236 : vector<2x32xf32>
    %c0_120 = arith.constant 0 : index
    %c0_121 = arith.constant 0 : index
    %c0_122 = arith.constant 0 : index
    %238 = vector.load %arg9[%c0_120, %c0_121, %c0_122] : memref<2x2x32xf32, #tpu.memory_space<vmem>>, vector<1x2x32xf32>
    %239 = vector.shape_cast %238 : vector<1x2x32xf32> to vector<2x32xf32>
    %240 = vector.shape_cast %235 : vector<2x32xf32> to vector<1x2x32xf32>
    tpu.vector_store %arg9[%c0_120, %c0_121, %c0_122], %240 {strides = array<i32>} : memref<2x2x32xf32, #tpu.memory_space<vmem>>, vector<1x2x32xf32>,
    %241 = arith.truncf %237 : vector<2x32xf32> to vector<2x32xbf16>
    %c0_123 = arith.constant 0 : index
    %c0_124 = arith.constant 0 : index
    %c0_125 = arith.constant 0 : index
    %242 = vector.load %arg8[%c0_123, %c0_124, %c0_125] : memref<2x2x32xbf16, #tpu.memory_space<vmem>>, vector<1x2x32xbf16>
    %243 = vector.shape_cast %242 : vector<1x2x32xbf16> to vector<2x32xbf16>
    %244 = vector.shape_cast %241 : vector<2x32xbf16> to vector<1x2x32xbf16>
    tpu.vector_store %arg8[%c0_123, %c0_124, %c0_125], %244 {strides = array<i32>} : memref<2x2x32xbf16, #tpu.memory_space<vmem>>, vector<1x2x32xbf16>,
    %245 = arith.index_cast %c4_i32 : i32 to index
    %c0_126 = arith.constant 0 : index
    %c0_127 = arith.constant 0 : index
    %246 = vector.load %arg10[%245, %c0_126, %c0_127] : memref<8x2x32xbf16, #tpu.memory_space<vmem>>, vector<1x2x32xbf16>
    %247 = vector.shape_cast %246 : vector<1x2x32xbf16> to vector<2x32xbf16>
    %248 = vector.shape_cast %241 : vector<2x32xbf16> to vector<1x2x32xbf16>
    tpu.vector_store %arg10[%245, %c0_126, %c0_127], %248 {strides = array<i32>} : memref<8x2x32xbf16, #tpu.memory_space<vmem>>, vector<1x2x32xbf16>,
    %c5_i32 = arith.constant 5 : i32
    %249 = arith.index_cast %c5_i32 : i32 to index
    %c0_128 = arith.constant 0 : index
    %c0_129 = arith.constant 0 : index
    %250 = vector.load %arg11[%249, %c0_128, %c0_129] : memref<8x2x128xf32, #tpu.memory_space<vmem>>, vector<1x2x128xf32>
    %251 = vector.shape_cast %250 : vector<1x2x128xf32> to vector<2x128xf32>
    %c0_130 = arith.constant 0 : index
    %c0_131 = arith.constant 0 : index
    %c0_132 = arith.constant 0 : index
    %252 = vector.load %arg8[%c0_130, %c0_131, %c0_132] : memref<2x2x32xbf16, #tpu.memory_space<vmem>>, vector<1x2x32xbf16>
    %253 = vector.shape_cast %252 : vector<1x2x32xbf16> to vector<2x32xbf16>
    %c0_133 = arith.constant 0 : index
    %c0_134 = arith.constant 0 : index
    %c0_135 = arith.constant 0 : index
    %254 = vector.load %arg3[%c0_133, %c0_134, %c0_135] : memref<2x32x128xbf16, #tpu.memory_space<vmem>>, vector<1x32x128xbf16>
    %255 = vector.shape_cast %254 : vector<1x32x128xbf16> to vector<32x128xbf16>
    %cst_136 = arith.constant dense<0.000000e+00> : vector<2x128xf32>
    %256 = tpu.matmul %253, %255, %cst_136 {dimension_numbers = #tpu.dot_dimension_numbers<[1], [0], [0], [1], [0, 0, 1, 1], [], []>} : vector<2x32xbf16>, vector<32x128xbf16>, vector<2x128xf32> -> vector<2x128xf32>
    %257 = arith.addf %251, %256 : vector<2x128xf32>
    %258 = vector.extract_strided_slice %257 {offsets = [0, 0], sizes = [2, 32], strides = [1, 1]} : vector<2x128xf32> to vector<2x32xf32>
    %259 = arith.negf %258 : vector<2x32xf32>
    %260 = math.exp %259 : vector<2x32xf32>
    %cst_137 = arith.constant 1.000000e+00 : f32
    %261 = vector.broadcast %cst_137 : f32 to vector<2x32xf32>
    %262 = arith.addf %261, %260 : vector<2x32xf32>
    %263 = arith.divf %261, %262 : vector<2x32xf32>
    %264 = vector.extract_strided_slice %257 {offsets = [0, 32], sizes = [2, 32], strides = [1, 1]} : vector<2x128xf32> to vector<2x32xf32>
    %265 = arith.negf %264 : vector<2x32xf32>
    %266 = math.exp %265 : vector<2x32xf32>
    %cst_138 = arith.constant 1.000000e+00 : f32
    %267 = vector.broadcast %cst_138 : f32 to vector<2x32xf32>
    %268 = arith.addf %267, %266 : vector<2x32xf32>
    %269 = arith.divf %267, %268 : vector<2x32xf32>
    %270 = vector.extract_strided_slice %257 {offsets = [0, 64], sizes = [2, 32], strides = [1, 1]} : vector<2x128xf32> to vector<2x32xf32>
    %271 = math.tanh %270 : vector<2x32xf32>
    %272 = vector.extract_strided_slice %257 {offsets = [0, 96], sizes = [2, 32], strides = [1, 1]} : vector<2x128xf32> to vector<2x32xf32>
    %273 = arith.negf %272 : vector<2x32xf32>
    %274 = math.exp %273 : vector<2x32xf32>
    %cst_139 = arith.constant 1.000000e+00 : f32
    %275 = vector.broadcast %cst_139 : f32 to vector<2x32xf32>
    %276 = arith.addf %275, %274 : vector<2x32xf32>
    %277 = arith.divf %275, %276 : vector<2x32xf32>
    %c0_140 = arith.constant 0 : index
    %c0_141 = arith.constant 0 : index
    %c0_142 = arith.constant 0 : index
    %278 = vector.load %arg9[%c0_140, %c0_141, %c0_142] : memref<2x2x32xf32, #tpu.memory_space<vmem>>, vector<1x2x32xf32>
    %279 = vector.shape_cast %278 : vector<1x2x32xf32> to vector<2x32xf32>
    %280 = arith.mulf %269, %279 : vector<2x32xf32>
    %281 = arith.mulf %263, %271 : vector<2x32xf32>
    %282 = arith.addf %280, %281 : vector<2x32xf32>
    %283 = math.tanh %282 : vector<2x32xf32>
    %284 = arith.mulf %277, %283 : vector<2x32xf32>
    %c0_143 = arith.constant 0 : index
    %c0_144 = arith.constant 0 : index
    %c0_145 = arith.constant 0 : index
    %285 = vector.load %arg9[%c0_143, %c0_144, %c0_145] : memref<2x2x32xf32, #tpu.memory_space<vmem>>, vector<1x2x32xf32>
    %286 = vector.shape_cast %285 : vector<1x2x32xf32> to vector<2x32xf32>
    %287 = vector.shape_cast %282 : vector<2x32xf32> to vector<1x2x32xf32>
    tpu.vector_store %arg9[%c0_143, %c0_144, %c0_145], %287 {strides = array<i32>} : memref<2x2x32xf32, #tpu.memory_space<vmem>>, vector<1x2x32xf32>,
    %288 = arith.truncf %284 : vector<2x32xf32> to vector<2x32xbf16>
    %c0_146 = arith.constant 0 : index
    %c0_147 = arith.constant 0 : index
    %c0_148 = arith.constant 0 : index
    %289 = vector.load %arg8[%c0_146, %c0_147, %c0_148] : memref<2x2x32xbf16, #tpu.memory_space<vmem>>, vector<1x2x32xbf16>
    %290 = vector.shape_cast %289 : vector<1x2x32xbf16> to vector<2x32xbf16>
    %291 = vector.shape_cast %288 : vector<2x32xbf16> to vector<1x2x32xbf16>
    tpu.vector_store %arg8[%c0_146, %c0_147, %c0_148], %291 {strides = array<i32>} : memref<2x2x32xbf16, #tpu.memory_space<vmem>>, vector<1x2x32xbf16>,
    %292 = arith.index_cast %c5_i32 : i32 to index
    %c0_149 = arith.constant 0 : index
    %c0_150 = arith.constant 0 : index
    %293 = vector.load %arg10[%292, %c0_149, %c0_150] : memref<8x2x32xbf16, #tpu.memory_space<vmem>>, vector<1x2x32xbf16>
    %294 = vector.shape_cast %293 : vector<1x2x32xbf16> to vector<2x32xbf16>
    %295 = vector.shape_cast %288 : vector<2x32xbf16> to vector<1x2x32xbf16>
    tpu.vector_store %arg10[%292, %c0_149, %c0_150], %295 {strides = array<i32>} : memref<8x2x32xbf16, #tpu.memory_space<vmem>>, vector<1x2x32xbf16>,
    %c6_i32 = arith.constant 6 : i32
    %296 = arith.index_cast %c6_i32 : i32 to index
    %c0_151 = arith.constant 0 : index
    %c0_152 = arith.constant 0 : index
    %297 = vector.load %arg11[%296, %c0_151, %c0_152] : memref<8x2x128xf32, #tpu.memory_space<vmem>>, vector<1x2x128xf32>
    %298 = vector.shape_cast %297 : vector<1x2x128xf32> to vector<2x128xf32>
    %c0_153 = arith.constant 0 : index
    %c0_154 = arith.constant 0 : index
    %c0_155 = arith.constant 0 : index
    %299 = vector.load %arg8[%c0_153, %c0_154, %c0_155] : memref<2x2x32xbf16, #tpu.memory_space<vmem>>, vector<1x2x32xbf16>
    %300 = vector.shape_cast %299 : vector<1x2x32xbf16> to vector<2x32xbf16>
    %c0_156 = arith.constant 0 : index
    %c0_157 = arith.constant 0 : index
    %c0_158 = arith.constant 0 : index
    %301 = vector.load %arg3[%c0_156, %c0_157, %c0_158] : memref<2x32x128xbf16, #tpu.memory_space<vmem>>, vector<1x32x128xbf16>
    %302 = vector.shape_cast %301 : vector<1x32x128xbf16> to vector<32x128xbf16>
    %cst_159 = arith.constant dense<0.000000e+00> : vector<2x128xf32>
    %303 = tpu.matmul %300, %302, %cst_159 {dimension_numbers = #tpu.dot_dimension_numbers<[1], [0], [0], [1], [0, 0, 1, 1], [], []>} : vector<2x32xbf16>, vector<32x128xbf16>, vector<2x128xf32> -> vector<2x128xf32>
    %304 = arith.addf %298, %303 : vector<2x128xf32>
    %305 = vector.extract_strided_slice %304 {offsets = [0, 0], sizes = [2, 32], strides = [1, 1]} : vector<2x128xf32> to vector<2x32xf32>
    %306 = arith.negf %305 : vector<2x32xf32>
    %307 = math.exp %306 : vector<2x32xf32>
    %cst_160 = arith.constant 1.000000e+00 : f32
    %308 = vector.broadcast %cst_160 : f32 to vector<2x32xf32>
    %309 = arith.addf %308, %307 : vector<2x32xf32>
    %310 = arith.divf %308, %309 : vector<2x32xf32>
    %311 = vector.extract_strided_slice %304 {offsets = [0, 32], sizes = [2, 32], strides = [1, 1]} : vector<2x128xf32> to vector<2x32xf32>
    %312 = arith.negf %311 : vector<2x32xf32>
    %313 = math.exp %312 : vector<2x32xf32>
    %cst_161 = arith.constant 1.000000e+00 : f32
    %314 = vector.broadcast %cst_161 : f32 to vector<2x32xf32>
    %315 = arith.addf %314, %313 : vector<2x32xf32>
    %316 = arith.divf %314, %315 : vector<2x32xf32>
    %317 = vector.extract_strided_slice %304 {offsets = [0, 64], sizes = [2, 32], strides = [1, 1]} : vector<2x128xf32> to vector<2x32xf32>
    %318 = math.tanh %317 : vector<2x32xf32>
    %319 = vector.extract_strided_slice %304 {offsets = [0, 96], sizes = [2, 32], strides = [1, 1]} : vector<2x128xf32> to vector<2x32xf32>
    %320 = arith.negf %319 : vector<2x32xf32>
    %321 = math.exp %320 : vector<2x32xf32>
    %cst_162 = arith.constant 1.000000e+00 : f32
    %322 = vector.broadcast %cst_162 : f32 to vector<2x32xf32>
    %323 = arith.addf %322, %321 : vector<2x32xf32>
    %324 = arith.divf %322, %323 : vector<2x32xf32>
    %c0_163 = arith.constant 0 : index
    %c0_164 = arith.constant 0 : index
    %c0_165 = arith.constant 0 : index
    %325 = vector.load %arg9[%c0_163, %c0_164, %c0_165] : memref<2x2x32xf32, #tpu.memory_space<vmem>>, vector<1x2x32xf32>
    %326 = vector.shape_cast %325 : vector<1x2x32xf32> to vector<2x32xf32>
    %327 = arith.mulf %316, %326 : vector<2x32xf32>
    %328 = arith.mulf %310, %318 : vector<2x32xf32>
    %329 = arith.addf %327, %328 : vector<2x32xf32>
    %330 = math.tanh %329 : vector<2x32xf32>
    %331 = arith.mulf %324, %330 : vector<2x32xf32>
    %c0_166 = arith.constant 0 : index
    %c0_167 = arith.constant 0 : index
    %c0_168 = arith.constant 0 : index
    %332 = vector.load %arg9[%c0_166, %c0_167, %c0_168] : memref<2x2x32xf32, #tpu.memory_space<vmem>>, vector<1x2x32xf32>
    %333 = vector.shape_cast %332 : vector<1x2x32xf32> to vector<2x32xf32>
    %334 = vector.shape_cast %329 : vector<2x32xf32> to vector<1x2x32xf32>
    tpu.vector_store %arg9[%c0_166, %c0_167, %c0_168], %334 {strides = array<i32>} : memref<2x2x32xf32, #tpu.memory_space<vmem>>, vector<1x2x32xf32>,
    %335 = arith.truncf %331 : vector<2x32xf32> to vector<2x32xbf16>
    %c0_169 = arith.constant 0 : index
    %c0_170 = arith.constant 0 : index
    %c0_171 = arith.constant 0 : index
    %336 = vector.load %arg8[%c0_169, %c0_170, %c0_171] : memref<2x2x32xbf16, #tpu.memory_space<vmem>>, vector<1x2x32xbf16>
    %337 = vector.shape_cast %336 : vector<1x2x32xbf16> to vector<2x32xbf16>
    %338 = vector.shape_cast %335 : vector<2x32xbf16> to vector<1x2x32xbf16>
    tpu.vector_store %arg8[%c0_169, %c0_170, %c0_171], %338 {strides = array<i32>} : memref<2x2x32xbf16, #tpu.memory_space<vmem>>, vector<1x2x32xbf16>,
    %339 = arith.index_cast %c6_i32 : i32 to index
    %c0_172 = arith.constant 0 : index
    %c0_173 = arith.constant 0 : index
    %340 = vector.load %arg10[%339, %c0_172, %c0_173] : memref<8x2x32xbf16, #tpu.memory_space<vmem>>, vector<1x2x32xbf16>
    %341 = vector.shape_cast %340 : vector<1x2x32xbf16> to vector<2x32xbf16>
    %342 = vector.shape_cast %335 : vector<2x32xbf16> to vector<1x2x32xbf16>
    tpu.vector_store %arg10[%339, %c0_172, %c0_173], %342 {strides = array<i32>} : memref<8x2x32xbf16, #tpu.memory_space<vmem>>, vector<1x2x32xbf16>,
    %c7_i32 = arith.constant 7 : i32
    %343 = arith.index_cast %c7_i32 : i32 to index
    %c0_174 = arith.constant 0 : index
    %c0_175 = arith.constant 0 : index
    %344 = vector.load %arg11[%343, %c0_174, %c0_175] : memref<8x2x128xf32, #tpu.memory_space<vmem>>, vector<1x2x128xf32>
    %345 = vector.shape_cast %344 : vector<1x2x128xf32> to vector<2x128xf32>
    %c0_176 = arith.constant 0 : index
    %c0_177 = arith.constant 0 : index
    %c0_178 = arith.constant 0 : index
    %346 = vector.load %arg8[%c0_176, %c0_177, %c0_178] : memref<2x2x32xbf16, #tpu.memory_space<vmem>>, vector<1x2x32xbf16>
    %347 = vector.shape_cast %346 : vector<1x2x32xbf16> to vector<2x32xbf16>
    %c0_179 = arith.constant 0 : index
    %c0_180 = arith.constant 0 : index
    %c0_181 = arith.constant 0 : index
    %348 = vector.load %arg3[%c0_179, %c0_180, %c0_181] : memref<2x32x128xbf16, #tpu.memory_space<vmem>>, vector<1x32x128xbf16>
    %349 = vector.shape_cast %348 : vector<1x32x128xbf16> to vector<32x128xbf16>
    %cst_182 = arith.constant dense<0.000000e+00> : vector<2x128xf32>
    %350 = tpu.matmul %347, %349, %cst_182 {dimension_numbers = #tpu.dot_dimension_numbers<[1], [0], [0], [1], [0, 0, 1, 1], [], []>} : vector<2x32xbf16>, vector<32x128xbf16>, vector<2x128xf32> -> vector<2x128xf32>
    %351 = arith.addf %345, %350 : vector<2x128xf32>
    %352 = vector.extract_strided_slice %351 {offsets = [0, 0], sizes = [2, 32], strides = [1, 1]} : vector<2x128xf32> to vector<2x32xf32>
    %353 = arith.negf %352 : vector<2x32xf32>
    %354 = math.exp %353 : vector<2x32xf32>
    %cst_183 = arith.constant 1.000000e+00 : f32
    %355 = vector.broadcast %cst_183 : f32 to vector<2x32xf32>
    %356 = arith.addf %355, %354 : vector<2x32xf32>
    %357 = arith.divf %355, %356 : vector<2x32xf32>
    %358 = vector.extract_strided_slice %351 {offsets = [0, 32], sizes = [2, 32], strides = [1, 1]} : vector<2x128xf32> to vector<2x32xf32>
    %359 = arith.negf %358 : vector<2x32xf32>
    %360 = math.exp %359 : vector<2x32xf32>
    %cst_184 = arith.constant 1.000000e+00 : f32
    %361 = vector.broadcast %cst_184 : f32 to vector<2x32xf32>
    %362 = arith.addf %361, %360 : vector<2x32xf32>
    %363 = arith.divf %361, %362 : vector<2x32xf32>
    %364 = vector.extract_strided_slice %351 {offsets = [0, 64], sizes = [2, 32], strides = [1, 1]} : vector<2x128xf32> to vector<2x32xf32>
    %365 = math.tanh %364 : vector<2x32xf32>
    %366 = vector.extract_strided_slice %351 {offsets = [0, 96], sizes = [2, 32], strides = [1, 1]} : vector<2x128xf32> to vector<2x32xf32>
    %367 = arith.negf %366 : vector<2x32xf32>
    %368 = math.exp %367 : vector<2x32xf32>
    %cst_185 = arith.constant 1.000000e+00 : f32
    %369 = vector.broadcast %cst_185 : f32 to vector<2x32xf32>
    %370 = arith.addf %369, %368 : vector<2x32xf32>
    %371 = arith.divf %369, %370 : vector<2x32xf32>
    %c0_186 = arith.constant 0 : index
    %c0_187 = arith.constant 0 : index
    %c0_188 = arith.constant 0 : index
    %372 = vector.load %arg9[%c0_186, %c0_187, %c0_188] : memref<2x2x32xf32, #tpu.memory_space<vmem>>, vector<1x2x32xf32>
    %373 = vector.shape_cast %372 : vector<1x2x32xf32> to vector<2x32xf32>
    %374 = arith.mulf %363, %373 : vector<2x32xf32>
    %375 = arith.mulf %357, %365 : vector<2x32xf32>
    %376 = arith.addf %374, %375 : vector<2x32xf32>
    %377 = math.tanh %376 : vector<2x32xf32>
    %378 = arith.mulf %371, %377 : vector<2x32xf32>
    %c0_189 = arith.constant 0 : index
    %c0_190 = arith.constant 0 : index
    %c0_191 = arith.constant 0 : index
    %379 = vector.load %arg9[%c0_189, %c0_190, %c0_191] : memref<2x2x32xf32, #tpu.memory_space<vmem>>, vector<1x2x32xf32>
    %380 = vector.shape_cast %379 : vector<1x2x32xf32> to vector<2x32xf32>
    %381 = vector.shape_cast %376 : vector<2x32xf32> to vector<1x2x32xf32>
    tpu.vector_store %arg9[%c0_189, %c0_190, %c0_191], %381 {strides = array<i32>} : memref<2x2x32xf32, #tpu.memory_space<vmem>>, vector<1x2x32xf32>,
    %382 = arith.truncf %378 : vector<2x32xf32> to vector<2x32xbf16>
    %c0_192 = arith.constant 0 : index
    %c0_193 = arith.constant 0 : index
    %c0_194 = arith.constant 0 : index
    %383 = vector.load %arg8[%c0_192, %c0_193, %c0_194] : memref<2x2x32xbf16, #tpu.memory_space<vmem>>, vector<1x2x32xbf16>
    %384 = vector.shape_cast %383 : vector<1x2x32xbf16> to vector<2x32xbf16>
    %385 = vector.shape_cast %382 : vector<2x32xbf16> to vector<1x2x32xbf16>
    tpu.vector_store %arg8[%c0_192, %c0_193, %c0_194], %385 {strides = array<i32>} : memref<2x2x32xbf16, #tpu.memory_space<vmem>>, vector<1x2x32xbf16>,
    %386 = arith.index_cast %c7_i32 : i32 to index
    %c0_195 = arith.constant 0 : index
    %c0_196 = arith.constant 0 : index
    %387 = vector.load %arg10[%386, %c0_195, %c0_196] : memref<8x2x32xbf16, #tpu.memory_space<vmem>>, vector<1x2x32xbf16>
    %388 = vector.shape_cast %387 : vector<1x2x32xbf16> to vector<2x32xbf16>
    %389 = vector.shape_cast %382 : vector<2x32xbf16> to vector<1x2x32xbf16>
    tpu.vector_store %arg10[%386, %c0_195, %c0_196], %389 {strides = array<i32>} : memref<8x2x32xbf16, #tpu.memory_space<vmem>>, vector<1x2x32xbf16>,
    %c8_i32 = arith.constant 8 : i32
    %c0_197 = arith.constant 0 : index
    %c0_198 = arith.constant 0 : index
    %c0_199 = arith.constant 0 : index
    %390 = vector.load %arg10[%c0_197, %c0_198, %c0_199] : memref<8x2x32xbf16, #tpu.memory_space<vmem>>, vector<8x2x32xbf16>
    %391 = vector.shape_cast %390 : vector<8x2x32xbf16> to vector<16x32xbf16>
    %c1 = arith.constant 1 : index
    %c0_200 = arith.constant 0 : index
    %c0_201 = arith.constant 0 : index
    %392 = vector.load %arg2[%c1, %c0_200, %c0_201] : memref<2x32x128xbf16, #tpu.memory_space<vmem>>, vector<1x32x128xbf16>
    %393 = vector.shape_cast %392 : vector<1x32x128xbf16> to vector<32x128xbf16>
    %cst_202 = arith.constant dense<0.000000e+00> : vector<16x128xf32>
    %394 = tpu.matmul %391, %393, %cst_202 {dimension_numbers = #tpu.dot_dimension_numbers<[1], [0], [0], [1], [0, 0, 1, 1], [], []>} : vector<16x32xbf16>, vector<32x128xbf16>, vector<16x128xf32> -> vector<16x128xf32>
    %c1_203 = arith.constant 1 : index
    %c0_204 = arith.constant 0 : index
    %c0_205 = arith.constant 0 : index
    %395 = vector.load %arg4[%c1_203, %c0_204, %c0_205] : memref<2x1x128xf32, #tpu.memory_space<vmem>>, vector<1x1x128xf32>
    %396 = vector.shape_cast %395 : vector<1x1x128xf32> to vector<1x128xf32>
    %397 = vector.broadcast %396 : vector<1x128xf32> to vector<16x128xf32>
    %398 = arith.addf %394, %397 : vector<16x128xf32>
    %399 = vector.shape_cast %398 : vector<16x128xf32> to vector<8x2x128xf32>
    %c0_206 = arith.constant 0 : index
    %c0_207 = arith.constant 0 : index
    %c0_208 = arith.constant 0 : index
    %400 = vector.load %arg11[%c0_206, %c0_207, %c0_208] : memref<8x2x128xf32, #tpu.memory_space<vmem>>, vector<8x2x128xf32>
    tpu.vector_store %arg11[%c0_206, %c0_207, %c0_208], %399 {strides = array<i32>} : memref<8x2x128xf32, #tpu.memory_space<vmem>>, vector<8x2x128xf32>,
    %c0_i32_209 = arith.constant 0 : i32
    %401 = arith.index_cast %c0_i32_209 : i32 to index
    %c0_210 = arith.constant 0 : index
    %c0_211 = arith.constant 0 : index
    %402 = vector.load %arg11[%401, %c0_210, %c0_211] : memref<8x2x128xf32, #tpu.memory_space<vmem>>, vector<1x2x128xf32>
    %403 = vector.shape_cast %402 : vector<1x2x128xf32> to vector<2x128xf32>
    %c1_212 = arith.constant 1 : index
    %c0_213 = arith.constant 0 : index
    %c0_214 = arith.constant 0 : index
    %404 = vector.load %arg8[%c1_212, %c0_213, %c0_214] : memref<2x2x32xbf16, #tpu.memory_space<vmem>>, vector<1x2x32xbf16>
    %405 = vector.shape_cast %404 : vector<1x2x32xbf16> to vector<2x32xbf16>
    %c1_215 = arith.constant 1 : index
    %c0_216 = arith.constant 0 : index
    %c0_217 = arith.constant 0 : index
    %406 = vector.load %arg3[%c1_215, %c0_216, %c0_217] : memref<2x32x128xbf16, #tpu.memory_space<vmem>>, vector<1x32x128xbf16>
    %407 = vector.shape_cast %406 : vector<1x32x128xbf16> to vector<32x128xbf16>
    %cst_218 = arith.constant dense<0.000000e+00> : vector<2x128xf32>
    %408 = tpu.matmul %405, %407, %cst_218 {dimension_numbers = #tpu.dot_dimension_numbers<[1], [0], [0], [1], [0, 0, 1, 1], [], []>} : vector<2x32xbf16>, vector<32x128xbf16>, vector<2x128xf32> -> vector<2x128xf32>
    %409 = arith.addf %403, %408 : vector<2x128xf32>
    %410 = vector.extract_strided_slice %409 {offsets = [0, 0], sizes = [2, 32], strides = [1, 1]} : vector<2x128xf32> to vector<2x32xf32>
    %411 = arith.negf %410 : vector<2x32xf32>
    %412 = math.exp %411 : vector<2x32xf32>
    %cst_219 = arith.constant 1.000000e+00 : f32
    %413 = vector.broadcast %cst_219 : f32 to vector<2x32xf32>
    %414 = arith.addf %413, %412 : vector<2x32xf32>
    %415 = arith.divf %413, %414 : vector<2x32xf32>
    %416 = vector.extract_strided_slice %409 {offsets = [0, 32], sizes = [2, 32], strides = [1, 1]} : vector<2x128xf32> to vector<2x32xf32>
    %417 = arith.negf %416 : vector<2x32xf32>
    %418 = math.exp %417 : vector<2x32xf32>
    %cst_220 = arith.constant 1.000000e+00 : f32
    %419 = vector.broadcast %cst_220 : f32 to vector<2x32xf32>
    %420 = arith.addf %419, %418 : vector<2x32xf32>
    %421 = arith.divf %419, %420 : vector<2x32xf32>
    %422 = vector.extract_strided_slice %409 {offsets = [0, 64], sizes = [2, 32], strides = [1, 1]} : vector<2x128xf32> to vector<2x32xf32>
    %423 = math.tanh %422 : vector<2x32xf32>
    %424 = vector.extract_strided_slice %409 {offsets = [0, 96], sizes = [2, 32], strides = [1, 1]} : vector<2x128xf32> to vector<2x32xf32>
    %425 = arith.negf %424 : vector<2x32xf32>
    %426 = math.exp %425 : vector<2x32xf32>
    %cst_221 = arith.constant 1.000000e+00 : f32
    %427 = vector.broadcast %cst_221 : f32 to vector<2x32xf32>
    %428 = arith.addf %427, %426 : vector<2x32xf32>
    %429 = arith.divf %427, %428 : vector<2x32xf32>
    %c1_222 = arith.constant 1 : index
    %c0_223 = arith.constant 0 : index
    %c0_224 = arith.constant 0 : index
    %430 = vector.load %arg9[%c1_222, %c0_223, %c0_224] : memref<2x2x32xf32, #tpu.memory_space<vmem>>, vector<1x2x32xf32>
    %431 = vector.shape_cast %430 : vector<1x2x32xf32> to vector<2x32xf32>
    %432 = arith.mulf %421, %431 : vector<2x32xf32>
    %433 = arith.mulf %415, %423 : vector<2x32xf32>
    %434 = arith.addf %432, %433 : vector<2x32xf32>
    %435 = math.tanh %434 : vector<2x32xf32>
    %436 = arith.mulf %429, %435 : vector<2x32xf32>
    %c1_225 = arith.constant 1 : index
    %c0_226 = arith.constant 0 : index
    %c0_227 = arith.constant 0 : index
    %437 = vector.load %arg9[%c1_225, %c0_226, %c0_227] : memref<2x2x32xf32, #tpu.memory_space<vmem>>, vector<1x2x32xf32>
    %438 = vector.shape_cast %437 : vector<1x2x32xf32> to vector<2x32xf32>
    %439 = vector.shape_cast %434 : vector<2x32xf32> to vector<1x2x32xf32>
    tpu.vector_store %arg9[%c1_225, %c0_226, %c0_227], %439 {strides = array<i32>} : memref<2x2x32xf32, #tpu.memory_space<vmem>>, vector<1x2x32xf32>,
    %440 = arith.truncf %436 : vector<2x32xf32> to vector<2x32xbf16>
    %c1_228 = arith.constant 1 : index
    %c0_229 = arith.constant 0 : index
    %c0_230 = arith.constant 0 : index
    %441 = vector.load %arg8[%c1_228, %c0_229, %c0_230] : memref<2x2x32xbf16, #tpu.memory_space<vmem>>, vector<1x2x32xbf16>
    %442 = vector.shape_cast %441 : vector<1x2x32xbf16> to vector<2x32xbf16>
    %443 = vector.shape_cast %440 : vector<2x32xbf16> to vector<1x2x32xbf16>
    tpu.vector_store %arg8[%c1_228, %c0_229, %c0_230], %443 {strides = array<i32>} : memref<2x2x32xbf16, #tpu.memory_space<vmem>>, vector<1x2x32xbf16>,
    %444 = arith.index_cast %c0_i32_209 : i32 to index
    %c0_231 = arith.constant 0 : index
    %c0_232 = arith.constant 0 : index
    %445 = vector.load %arg10[%444, %c0_231, %c0_232] : memref<8x2x32xbf16, #tpu.memory_space<vmem>>, vector<1x2x32xbf16>
    %446 = vector.shape_cast %445 : vector<1x2x32xbf16> to vector<2x32xbf16>
    %447 = vector.shape_cast %440 : vector<2x32xbf16> to vector<1x2x32xbf16>
    tpu.vector_store %arg10[%444, %c0_231, %c0_232], %447 {strides = array<i32>} : memref<8x2x32xbf16, #tpu.memory_space<vmem>>, vector<1x2x32xbf16>,
    %c1_i32_233 = arith.constant 1 : i32
    %448 = arith.index_cast %c1_i32_233 : i32 to index
    %c0_234 = arith.constant 0 : index
    %c0_235 = arith.constant 0 : index
    %449 = vector.load %arg11[%448, %c0_234, %c0_235] : memref<8x2x128xf32, #tpu.memory_space<vmem>>, vector<1x2x128xf32>
    %450 = vector.shape_cast %449 : vector<1x2x128xf32> to vector<2x128xf32>
    %c1_236 = arith.constant 1 : index
    %c0_237 = arith.constant 0 : index
    %c0_238 = arith.constant 0 : index
    %451 = vector.load %arg8[%c1_236, %c0_237, %c0_238] : memref<2x2x32xbf16, #tpu.memory_space<vmem>>, vector<1x2x32xbf16>
    %452 = vector.shape_cast %451 : vector<1x2x32xbf16> to vector<2x32xbf16>
    %c1_239 = arith.constant 1 : index
    %c0_240 = arith.constant 0 : index
    %c0_241 = arith.constant 0 : index
    %453 = vector.load %arg3[%c1_239, %c0_240, %c0_241] : memref<2x32x128xbf16, #tpu.memory_space<vmem>>, vector<1x32x128xbf16>
    %454 = vector.shape_cast %453 : vector<1x32x128xbf16> to vector<32x128xbf16>
    %cst_242 = arith.constant dense<0.000000e+00> : vector<2x128xf32>
    %455 = tpu.matmul %452, %454, %cst_242 {dimension_numbers = #tpu.dot_dimension_numbers<[1], [0], [0], [1], [0, 0, 1, 1], [], []>} : vector<2x32xbf16>, vector<32x128xbf16>, vector<2x128xf32> -> vector<2x128xf32>
    %456 = arith.addf %450, %455 : vector<2x128xf32>
    %457 = vector.extract_strided_slice %456 {offsets = [0, 0], sizes = [2, 32], strides = [1, 1]} : vector<2x128xf32> to vector<2x32xf32>
    %458 = arith.negf %457 : vector<2x32xf32>
    %459 = math.exp %458 : vector<2x32xf32>
    %cst_243 = arith.constant 1.000000e+00 : f32
    %460 = vector.broadcast %cst_243 : f32 to vector<2x32xf32>
    %461 = arith.addf %460, %459 : vector<2x32xf32>
    %462 = arith.divf %460, %461 : vector<2x32xf32>
    %463 = vector.extract_strided_slice %456 {offsets = [0, 32], sizes = [2, 32], strides = [1, 1]} : vector<2x128xf32> to vector<2x32xf32>
    %464 = arith.negf %463 : vector<2x32xf32>
    %465 = math.exp %464 : vector<2x32xf32>
    %cst_244 = arith.constant 1.000000e+00 : f32
    %466 = vector.broadcast %cst_244 : f32 to vector<2x32xf32>
    %467 = arith.addf %466, %465 : vector<2x32xf32>
    %468 = arith.divf %466, %467 : vector<2x32xf32>
    %469 = vector.extract_strided_slice %456 {offsets = [0, 64], sizes = [2, 32], strides = [1, 1]} : vector<2x128xf32> to vector<2x32xf32>
    %470 = math.tanh %469 : vector<2x32xf32>
    %471 = vector.extract_strided_slice %456 {offsets = [0, 96], sizes = [2, 32], strides = [1, 1]} : vector<2x128xf32> to vector<2x32xf32>
    %472 = arith.negf %471 : vector<2x32xf32>
    %473 = math.exp %472 : vector<2x32xf32>
    %cst_245 = arith.constant 1.000000e+00 : f32
    %474 = vector.broadcast %cst_245 : f32 to vector<2x32xf32>
    %475 = arith.addf %474, %473 : vector<2x32xf32>
    %476 = arith.divf %474, %475 : vector<2x32xf32>
    %c1_246 = arith.constant 1 : index
    %c0_247 = arith.constant 0 : index
    %c0_248 = arith.constant 0 : index
    %477 = vector.load %arg9[%c1_246, %c0_247, %c0_248] : memref<2x2x32xf32, #tpu.memory_space<vmem>>, vector<1x2x32xf32>
    %478 = vector.shape_cast %477 : vector<1x2x32xf32> to vector<2x32xf32>
    %479 = arith.mulf %468, %478 : vector<2x32xf32>
    %480 = arith.mulf %462, %470 : vector<2x32xf32>
    %481 = arith.addf %479, %480 : vector<2x32xf32>
    %482 = math.tanh %481 : vector<2x32xf32>
    %483 = arith.mulf %476, %482 : vector<2x32xf32>
    %c1_249 = arith.constant 1 : index
    %c0_250 = arith.constant 0 : index
    %c0_251 = arith.constant 0 : index
    %484 = vector.load %arg9[%c1_249, %c0_250, %c0_251] : memref<2x2x32xf32, #tpu.memory_space<vmem>>, vector<1x2x32xf32>
    %485 = vector.shape_cast %484 : vector<1x2x32xf32> to vector<2x32xf32>
    %486 = vector.shape_cast %481 : vector<2x32xf32> to vector<1x2x32xf32>
    tpu.vector_store %arg9[%c1_249, %c0_250, %c0_251], %486 {strides = array<i32>} : memref<2x2x32xf32, #tpu.memory_space<vmem>>, vector<1x2x32xf32>,
    %487 = arith.truncf %483 : vector<2x32xf32> to vector<2x32xbf16>
    %c1_252 = arith.constant 1 : index
    %c0_253 = arith.constant 0 : index
    %c0_254 = arith.constant 0 : index
    %488 = vector.load %arg8[%c1_252, %c0_253, %c0_254] : memref<2x2x32xbf16, #tpu.memory_space<vmem>>, vector<1x2x32xbf16>
    %489 = vector.shape_cast %488 : vector<1x2x32xbf16> to vector<2x32xbf16>
    %490 = vector.shape_cast %487 : vector<2x32xbf16> to vector<1x2x32xbf16>
    tpu.vector_store %arg8[%c1_252, %c0_253, %c0_254], %490 {strides = array<i32>} : memref<2x2x32xbf16, #tpu.memory_space<vmem>>, vector<1x2x32xbf16>,
    %491 = arith.index_cast %c1_i32_233 : i32 to index
    %c0_255 = arith.constant 0 : index
    %c0_256 = arith.constant 0 : index
    %492 = vector.load %arg10[%491, %c0_255, %c0_256] : memref<8x2x32xbf16, #tpu.memory_space<vmem>>, vector<1x2x32xbf16>
    %493 = vector.shape_cast %492 : vector<1x2x32xbf16> to vector<2x32xbf16>
    %494 = vector.shape_cast %487 : vector<2x32xbf16> to vector<1x2x32xbf16>
    tpu.vector_store %arg10[%491, %c0_255, %c0_256], %494 {strides = array<i32>} : memref<8x2x32xbf16, #tpu.memory_space<vmem>>, vector<1x2x32xbf16>,
    %c2_i32_257 = arith.constant 2 : i32
    %495 = arith.index_cast %c2_i32_257 : i32 to index
    %c0_258 = arith.constant 0 : index
    %c0_259 = arith.constant 0 : index
    %496 = vector.load %arg11[%495, %c0_258, %c0_259] : memref<8x2x128xf32, #tpu.memory_space<vmem>>, vector<1x2x128xf32>
    %497 = vector.shape_cast %496 : vector<1x2x128xf32> to vector<2x128xf32>
    %c1_260 = arith.constant 1 : index
    %c0_261 = arith.constant 0 : index
    %c0_262 = arith.constant 0 : index
    %498 = vector.load %arg8[%c1_260, %c0_261, %c0_262] : memref<2x2x32xbf16, #tpu.memory_space<vmem>>, vector<1x2x32xbf16>
    %499 = vector.shape_cast %498 : vector<1x2x32xbf16> to vector<2x32xbf16>
    %c1_263 = arith.constant 1 : index
    %c0_264 = arith.constant 0 : index
    %c0_265 = arith.constant 0 : index
    %500 = vector.load %arg3[%c1_263, %c0_264, %c0_265] : memref<2x32x128xbf16, #tpu.memory_space<vmem>>, vector<1x32x128xbf16>
    %501 = vector.shape_cast %500 : vector<1x32x128xbf16> to vector<32x128xbf16>
    %cst_266 = arith.constant dense<0.000000e+00> : vector<2x128xf32>
    %502 = tpu.matmul %499, %501, %cst_266 {dimension_numbers = #tpu.dot_dimension_numbers<[1], [0], [0], [1], [0, 0, 1, 1], [], []>} : vector<2x32xbf16>, vector<32x128xbf16>, vector<2x128xf32> -> vector<2x128xf32>
    %503 = arith.addf %497, %502 : vector<2x128xf32>
    %504 = vector.extract_strided_slice %503 {offsets = [0, 0], sizes = [2, 32], strides = [1, 1]} : vector<2x128xf32> to vector<2x32xf32>
    %505 = arith.negf %504 : vector<2x32xf32>
    %506 = math.exp %505 : vector<2x32xf32>
    %cst_267 = arith.constant 1.000000e+00 : f32
    %507 = vector.broadcast %cst_267 : f32 to vector<2x32xf32>
    %508 = arith.addf %507, %506 : vector<2x32xf32>
    %509 = arith.divf %507, %508 : vector<2x32xf32>
    %510 = vector.extract_strided_slice %503 {offsets = [0, 32], sizes = [2, 32], strides = [1, 1]} : vector<2x128xf32> to vector<2x32xf32>
    %511 = arith.negf %510 : vector<2x32xf32>
    %512 = math.exp %511 : vector<2x32xf32>
    %cst_268 = arith.constant 1.000000e+00 : f32
    %513 = vector.broadcast %cst_268 : f32 to vector<2x32xf32>
    %514 = arith.addf %513, %512 : vector<2x32xf32>
    %515 = arith.divf %513, %514 : vector<2x32xf32>
    %516 = vector.extract_strided_slice %503 {offsets = [0, 64], sizes = [2, 32], strides = [1, 1]} : vector<2x128xf32> to vector<2x32xf32>
    %517 = math.tanh %516 : vector<2x32xf32>
    %518 = vector.extract_strided_slice %503 {offsets = [0, 96], sizes = [2, 32], strides = [1, 1]} : vector<2x128xf32> to vector<2x32xf32>
    %519 = arith.negf %518 : vector<2x32xf32>
    %520 = math.exp %519 : vector<2x32xf32>
    %cst_269 = arith.constant 1.000000e+00 : f32
    %521 = vector.broadcast %cst_269 : f32 to vector<2x32xf32>
    %522 = arith.addf %521, %520 : vector<2x32xf32>
    %523 = arith.divf %521, %522 : vector<2x32xf32>
    %c1_270 = arith.constant 1 : index
    %c0_271 = arith.constant 0 : index
    %c0_272 = arith.constant 0 : index
    %524 = vector.load %arg9[%c1_270, %c0_271, %c0_272] : memref<2x2x32xf32, #tpu.memory_space<vmem>>, vector<1x2x32xf32>
    %525 = vector.shape_cast %524 : vector<1x2x32xf32> to vector<2x32xf32>
    %526 = arith.mulf %515, %525 : vector<2x32xf32>
    %527 = arith.mulf %509, %517 : vector<2x32xf32>
    %528 = arith.addf %526, %527 : vector<2x32xf32>
    %529 = math.tanh %528 : vector<2x32xf32>
    %530 = arith.mulf %523, %529 : vector<2x32xf32>
    %c1_273 = arith.constant 1 : index
    %c0_274 = arith.constant 0 : index
    %c0_275 = arith.constant 0 : index
    %531 = vector.load %arg9[%c1_273, %c0_274, %c0_275] : memref<2x2x32xf32, #tpu.memory_space<vmem>>, vector<1x2x32xf32>
    %532 = vector.shape_cast %531 : vector<1x2x32xf32> to vector<2x32xf32>
    %533 = vector.shape_cast %528 : vector<2x32xf32> to vector<1x2x32xf32>
    tpu.vector_store %arg9[%c1_273, %c0_274, %c0_275], %533 {strides = array<i32>} : memref<2x2x32xf32, #tpu.memory_space<vmem>>, vector<1x2x32xf32>,
    %534 = arith.truncf %530 : vector<2x32xf32> to vector<2x32xbf16>
    %c1_276 = arith.constant 1 : index
    %c0_277 = arith.constant 0 : index
    %c0_278 = arith.constant 0 : index
    %535 = vector.load %arg8[%c1_276, %c0_277, %c0_278] : memref<2x2x32xbf16, #tpu.memory_space<vmem>>, vector<1x2x32xbf16>
    %536 = vector.shape_cast %535 : vector<1x2x32xbf16> to vector<2x32xbf16>
    %537 = vector.shape_cast %534 : vector<2x32xbf16> to vector<1x2x32xbf16>
    tpu.vector_store %arg8[%c1_276, %c0_277, %c0_278], %537 {strides = array<i32>} : memref<2x2x32xbf16, #tpu.memory_space<vmem>>, vector<1x2x32xbf16>,
    %538 = arith.index_cast %c2_i32_257 : i32 to index
    %c0_279 = arith.constant 0 : index
    %c0_280 = arith.constant 0 : index
    %539 = vector.load %arg10[%538, %c0_279, %c0_280] : memref<8x2x32xbf16, #tpu.memory_space<vmem>>, vector<1x2x32xbf16>
    %540 = vector.shape_cast %539 : vector<1x2x32xbf16> to vector<2x32xbf16>
    %541 = vector.shape_cast %534 : vector<2x32xbf16> to vector<1x2x32xbf16>
    tpu.vector_store %arg10[%538, %c0_279, %c0_280], %541 {strides = array<i32>} : memref<8x2x32xbf16, #tpu.memory_space<vmem>>, vector<1x2x32xbf16>,
    %c3_i32_281 = arith.constant 3 : i32
    %542 = arith.index_cast %c3_i32_281 : i32 to index
    %c0_282 = arith.constant 0 : index
    %c0_283 = arith.constant 0 : index
    %543 = vector.load %arg11[%542, %c0_282, %c0_283] : memref<8x2x128xf32, #tpu.memory_space<vmem>>, vector<1x2x128xf32>
    %544 = vector.shape_cast %543 : vector<1x2x128xf32> to vector<2x128xf32>
    %c1_284 = arith.constant 1 : index
    %c0_285 = arith.constant 0 : index
    %c0_286 = arith.constant 0 : index
    %545 = vector.load %arg8[%c1_284, %c0_285, %c0_286] : memref<2x2x32xbf16, #tpu.memory_space<vmem>>, vector<1x2x32xbf16>
    %546 = vector.shape_cast %545 : vector<1x2x32xbf16> to vector<2x32xbf16>
    %c1_287 = arith.constant 1 : index
    %c0_288 = arith.constant 0 : index
    %c0_289 = arith.constant 0 : index
    %547 = vector.load %arg3[%c1_287, %c0_288, %c0_289] : memref<2x32x128xbf16, #tpu.memory_space<vmem>>, vector<1x32x128xbf16>
    %548 = vector.shape_cast %547 : vector<1x32x128xbf16> to vector<32x128xbf16>
    %cst_290 = arith.constant dense<0.000000e+00> : vector<2x128xf32>
    %549 = tpu.matmul %546, %548, %cst_290 {dimension_numbers = #tpu.dot_dimension_numbers<[1], [0], [0], [1], [0, 0, 1, 1], [], []>} : vector<2x32xbf16>, vector<32x128xbf16>, vector<2x128xf32> -> vector<2x128xf32>
    %550 = arith.addf %544, %549 : vector<2x128xf32>
    %551 = vector.extract_strided_slice %550 {offsets = [0, 0], sizes = [2, 32], strides = [1, 1]} : vector<2x128xf32> to vector<2x32xf32>
    %552 = arith.negf %551 : vector<2x32xf32>
    %553 = math.exp %552 : vector<2x32xf32>
    %cst_291 = arith.constant 1.000000e+00 : f32
    %554 = vector.broadcast %cst_291 : f32 to vector<2x32xf32>
    %555 = arith.addf %554, %553 : vector<2x32xf32>
    %556 = arith.divf %554, %555 : vector<2x32xf32>
    %557 = vector.extract_strided_slice %550 {offsets = [0, 32], sizes = [2, 32], strides = [1, 1]} : vector<2x128xf32> to vector<2x32xf32>
    %558 = arith.negf %557 : vector<2x32xf32>
    %559 = math.exp %558 : vector<2x32xf32>
    %cst_292 = arith.constant 1.000000e+00 : f32
    %560 = vector.broadcast %cst_292 : f32 to vector<2x32xf32>
    %561 = arith.addf %560, %559 : vector<2x32xf32>
    %562 = arith.divf %560, %561 : vector<2x32xf32>
    %563 = vector.extract_strided_slice %550 {offsets = [0, 64], sizes = [2, 32], strides = [1, 1]} : vector<2x128xf32> to vector<2x32xf32>
    %564 = math.tanh %563 : vector<2x32xf32>
    %565 = vector.extract_strided_slice %550 {offsets = [0, 96], sizes = [2, 32], strides = [1, 1]} : vector<2x128xf32> to vector<2x32xf32>
    %566 = arith.negf %565 : vector<2x32xf32>
    %567 = math.exp %566 : vector<2x32xf32>
    %cst_293 = arith.constant 1.000000e+00 : f32
    %568 = vector.broadcast %cst_293 : f32 to vector<2x32xf32>
    %569 = arith.addf %568, %567 : vector<2x32xf32>
    %570 = arith.divf %568, %569 : vector<2x32xf32>
    %c1_294 = arith.constant 1 : index
    %c0_295 = arith.constant 0 : index
    %c0_296 = arith.constant 0 : index
    %571 = vector.load %arg9[%c1_294, %c0_295, %c0_296] : memref<2x2x32xf32, #tpu.memory_space<vmem>>, vector<1x2x32xf32>
    %572 = vector.shape_cast %571 : vector<1x2x32xf32> to vector<2x32xf32>
    %573 = arith.mulf %562, %572 : vector<2x32xf32>
    %574 = arith.mulf %556, %564 : vector<2x32xf32>
    %575 = arith.addf %573, %574 : vector<2x32xf32>
    %576 = math.tanh %575 : vector<2x32xf32>
    %577 = arith.mulf %570, %576 : vector<2x32xf32>
    %c1_297 = arith.constant 1 : index
    %c0_298 = arith.constant 0 : index
    %c0_299 = arith.constant 0 : index
    %578 = vector.load %arg9[%c1_297, %c0_298, %c0_299] : memref<2x2x32xf32, #tpu.memory_space<vmem>>, vector<1x2x32xf32>
    %579 = vector.shape_cast %578 : vector<1x2x32xf32> to vector<2x32xf32>
    %580 = vector.shape_cast %575 : vector<2x32xf32> to vector<1x2x32xf32>
    tpu.vector_store %arg9[%c1_297, %c0_298, %c0_299], %580 {strides = array<i32>} : memref<2x2x32xf32, #tpu.memory_space<vmem>>, vector<1x2x32xf32>,
    %581 = arith.truncf %577 : vector<2x32xf32> to vector<2x32xbf16>
    %c1_300 = arith.constant 1 : index
    %c0_301 = arith.constant 0 : index
    %c0_302 = arith.constant 0 : index
    %582 = vector.load %arg8[%c1_300, %c0_301, %c0_302] : memref<2x2x32xbf16, #tpu.memory_space<vmem>>, vector<1x2x32xbf16>
    %583 = vector.shape_cast %582 : vector<1x2x32xbf16> to vector<2x32xbf16>
    %584 = vector.shape_cast %581 : vector<2x32xbf16> to vector<1x2x32xbf16>
    tpu.vector_store %arg8[%c1_300, %c0_301, %c0_302], %584 {strides = array<i32>} : memref<2x2x32xbf16, #tpu.memory_space<vmem>>, vector<1x2x32xbf16>,
    %585 = arith.index_cast %c3_i32_281 : i32 to index
    %c0_303 = arith.constant 0 : index
    %c0_304 = arith.constant 0 : index
    %586 = vector.load %arg10[%585, %c0_303, %c0_304] : memref<8x2x32xbf16, #tpu.memory_space<vmem>>, vector<1x2x32xbf16>
    %587 = vector.shape_cast %586 : vector<1x2x32xbf16> to vector<2x32xbf16>
    %588 = vector.shape_cast %581 : vector<2x32xbf16> to vector<1x2x32xbf16>
    tpu.vector_store %arg10[%585, %c0_303, %c0_304], %588 {strides = array<i32>} : memref<8x2x32xbf16, #tpu.memory_space<vmem>>, vector<1x2x32xbf16>,
    %c4_i32_305 = arith.constant 4 : i32
    %589 = arith.index_cast %c4_i32_305 : i32 to index
    %c0_306 = arith.constant 0 : index
    %c0_307 = arith.constant 0 : index
    %590 = vector.load %arg11[%589, %c0_306, %c0_307] : memref<8x2x128xf32, #tpu.memory_space<vmem>>, vector<1x2x128xf32>
    %591 = vector.shape_cast %590 : vector<1x2x128xf32> to vector<2x128xf32>
    %c1_308 = arith.constant 1 : index
    %c0_309 = arith.constant 0 : index
    %c0_310 = arith.constant 0 : index
    %592 = vector.load %arg8[%c1_308, %c0_309, %c0_310] : memref<2x2x32xbf16, #tpu.memory_space<vmem>>, vector<1x2x32xbf16>
    %593 = vector.shape_cast %592 : vector<1x2x32xbf16> to vector<2x32xbf16>
    %c1_311 = arith.constant 1 : index
    %c0_312 = arith.constant 0 : index
    %c0_313 = arith.constant 0 : index
    %594 = vector.load %arg3[%c1_311, %c0_312, %c0_313] : memref<2x32x128xbf16, #tpu.memory_space<vmem>>, vector<1x32x128xbf16>
    %595 = vector.shape_cast %594 : vector<1x32x128xbf16> to vector<32x128xbf16>
    %cst_314 = arith.constant dense<0.000000e+00> : vector<2x128xf32>
    %596 = tpu.matmul %593, %595, %cst_314 {dimension_numbers = #tpu.dot_dimension_numbers<[1], [0], [0], [1], [0, 0, 1, 1], [], []>} : vector<2x32xbf16>, vector<32x128xbf16>, vector<2x128xf32> -> vector<2x128xf32>
    %597 = arith.addf %591, %596 : vector<2x128xf32>
    %598 = vector.extract_strided_slice %597 {offsets = [0, 0], sizes = [2, 32], strides = [1, 1]} : vector<2x128xf32> to vector<2x32xf32>
    %599 = arith.negf %598 : vector<2x32xf32>
    %600 = math.exp %599 : vector<2x32xf32>
    %cst_315 = arith.constant 1.000000e+00 : f32
    %601 = vector.broadcast %cst_315 : f32 to vector<2x32xf32>
    %602 = arith.addf %601, %600 : vector<2x32xf32>
    %603 = arith.divf %601, %602 : vector<2x32xf32>
    %604 = vector.extract_strided_slice %597 {offsets = [0, 32], sizes = [2, 32], strides = [1, 1]} : vector<2x128xf32> to vector<2x32xf32>
    %605 = arith.negf %604 : vector<2x32xf32>
    %606 = math.exp %605 : vector<2x32xf32>
    %cst_316 = arith.constant 1.000000e+00 : f32
    %607 = vector.broadcast %cst_316 : f32 to vector<2x32xf32>
    %608 = arith.addf %607, %606 : vector<2x32xf32>
    %609 = arith.divf %607, %608 : vector<2x32xf32>
    %610 = vector.extract_strided_slice %597 {offsets = [0, 64], sizes = [2, 32], strides = [1, 1]} : vector<2x128xf32> to vector<2x32xf32>
    %611 = math.tanh %610 : vector<2x32xf32>
    %612 = vector.extract_strided_slice %597 {offsets = [0, 96], sizes = [2, 32], strides = [1, 1]} : vector<2x128xf32> to vector<2x32xf32>
    %613 = arith.negf %612 : vector<2x32xf32>
    %614 = math.exp %613 : vector<2x32xf32>
    %cst_317 = arith.constant 1.000000e+00 : f32
    %615 = vector.broadcast %cst_317 : f32 to vector<2x32xf32>
    %616 = arith.addf %615, %614 : vector<2x32xf32>
    %617 = arith.divf %615, %616 : vector<2x32xf32>
    %c1_318 = arith.constant 1 : index
    %c0_319 = arith.constant 0 : index
    %c0_320 = arith.constant 0 : index
    %618 = vector.load %arg9[%c1_318, %c0_319, %c0_320] : memref<2x2x32xf32, #tpu.memory_space<vmem>>, vector<1x2x32xf32>
    %619 = vector.shape_cast %618 : vector<1x2x32xf32> to vector<2x32xf32>
    %620 = arith.mulf %609, %619 : vector<2x32xf32>
    %621 = arith.mulf %603, %611 : vector<2x32xf32>
    %622 = arith.addf %620, %621 : vector<2x32xf32>
    %623 = math.tanh %622 : vector<2x32xf32>
    %624 = arith.mulf %617, %623 : vector<2x32xf32>
    %c1_321 = arith.constant 1 : index
    %c0_322 = arith.constant 0 : index
    %c0_323 = arith.constant 0 : index
    %625 = vector.load %arg9[%c1_321, %c0_322, %c0_323] : memref<2x2x32xf32, #tpu.memory_space<vmem>>, vector<1x2x32xf32>
    %626 = vector.shape_cast %625 : vector<1x2x32xf32> to vector<2x32xf32>
    %627 = vector.shape_cast %622 : vector<2x32xf32> to vector<1x2x32xf32>
    tpu.vector_store %arg9[%c1_321, %c0_322, %c0_323], %627 {strides = array<i32>} : memref<2x2x32xf32, #tpu.memory_space<vmem>>, vector<1x2x32xf32>,
    %628 = arith.truncf %624 : vector<2x32xf32> to vector<2x32xbf16>
    %c1_324 = arith.constant 1 : index
    %c0_325 = arith.constant 0 : index
    %c0_326 = arith.constant 0 : index
    %629 = vector.load %arg8[%c1_324, %c0_325, %c0_326] : memref<2x2x32xbf16, #tpu.memory_space<vmem>>, vector<1x2x32xbf16>
    %630 = vector.shape_cast %629 : vector<1x2x32xbf16> to vector<2x32xbf16>
    %631 = vector.shape_cast %628 : vector<2x32xbf16> to vector<1x2x32xbf16>
    tpu.vector_store %arg8[%c1_324, %c0_325, %c0_326], %631 {strides = array<i32>} : memref<2x2x32xbf16, #tpu.memory_space<vmem>>, vector<1x2x32xbf16>,
    %632 = arith.index_cast %c4_i32_305 : i32 to index
    %c0_327 = arith.constant 0 : index
    %c0_328 = arith.constant 0 : index
    %633 = vector.load %arg10[%632, %c0_327, %c0_328] : memref<8x2x32xbf16, #tpu.memory_space<vmem>>, vector<1x2x32xbf16>
    %634 = vector.shape_cast %633 : vector<1x2x32xbf16> to vector<2x32xbf16>
    %635 = vector.shape_cast %628 : vector<2x32xbf16> to vector<1x2x32xbf16>
    tpu.vector_store %arg10[%632, %c0_327, %c0_328], %635 {strides = array<i32>} : memref<8x2x32xbf16, #tpu.memory_space<vmem>>, vector<1x2x32xbf16>,
    %c5_i32_329 = arith.constant 5 : i32
    %636 = arith.index_cast %c5_i32_329 : i32 to index
    %c0_330 = arith.constant 0 : index
    %c0_331 = arith.constant 0 : index
    %637 = vector.load %arg11[%636, %c0_330, %c0_331] : memref<8x2x128xf32, #tpu.memory_space<vmem>>, vector<1x2x128xf32>
    %638 = vector.shape_cast %637 : vector<1x2x128xf32> to vector<2x128xf32>
    %c1_332 = arith.constant 1 : index
    %c0_333 = arith.constant 0 : index
    %c0_334 = arith.constant 0 : index
    %639 = vector.load %arg8[%c1_332, %c0_333, %c0_334] : memref<2x2x32xbf16, #tpu.memory_space<vmem>>, vector<1x2x32xbf16>
    %640 = vector.shape_cast %639 : vector<1x2x32xbf16> to vector<2x32xbf16>
    %c1_335 = arith.constant 1 : index
    %c0_336 = arith.constant 0 : index
    %c0_337 = arith.constant 0 : index
    %641 = vector.load %arg3[%c1_335, %c0_336, %c0_337] : memref<2x32x128xbf16, #tpu.memory_space<vmem>>, vector<1x32x128xbf16>
    %642 = vector.shape_cast %641 : vector<1x32x128xbf16> to vector<32x128xbf16>
    %cst_338 = arith.constant dense<0.000000e+00> : vector<2x128xf32>
    %643 = tpu.matmul %640, %642, %cst_338 {dimension_numbers = #tpu.dot_dimension_numbers<[1], [0], [0], [1], [0, 0, 1, 1], [], []>} : vector<2x32xbf16>, vector<32x128xbf16>, vector<2x128xf32> -> vector<2x128xf32>
    %644 = arith.addf %638, %643 : vector<2x128xf32>
    %645 = vector.extract_strided_slice %644 {offsets = [0, 0], sizes = [2, 32], strides = [1, 1]} : vector<2x128xf32> to vector<2x32xf32>
    %646 = arith.negf %645 : vector<2x32xf32>
    %647 = math.exp %646 : vector<2x32xf32>
    %cst_339 = arith.constant 1.000000e+00 : f32
    %648 = vector.broadcast %cst_339 : f32 to vector<2x32xf32>
    %649 = arith.addf %648, %647 : vector<2x32xf32>
    %650 = arith.divf %648, %649 : vector<2x32xf32>
    %651 = vector.extract_strided_slice %644 {offsets = [0, 32], sizes = [2, 32], strides = [1, 1]} : vector<2x128xf32> to vector<2x32xf32>
    %652 = arith.negf %651 : vector<2x32xf32>
    %653 = math.exp %652 : vector<2x32xf32>
    %cst_340 = arith.constant 1.000000e+00 : f32
    %654 = vector.broadcast %cst_340 : f32 to vector<2x32xf32>
    %655 = arith.addf %654, %653 : vector<2x32xf32>
    %656 = arith.divf %654, %655 : vector<2x32xf32>
    %657 = vector.extract_strided_slice %644 {offsets = [0, 64], sizes = [2, 32], strides = [1, 1]} : vector<2x128xf32> to vector<2x32xf32>
    %658 = math.tanh %657 : vector<2x32xf32>
    %659 = vector.extract_strided_slice %644 {offsets = [0, 96], sizes = [2, 32], strides = [1, 1]} : vector<2x128xf32> to vector<2x32xf32>
    %660 = arith.negf %659 : vector<2x32xf32>
    %661 = math.exp %660 : vector<2x32xf32>
    %cst_341 = arith.constant 1.000000e+00 : f32
    %662 = vector.broadcast %cst_341 : f32 to vector<2x32xf32>
    %663 = arith.addf %662, %661 : vector<2x32xf32>
    %664 = arith.divf %662, %663 : vector<2x32xf32>
    %c1_342 = arith.constant 1 : index
    %c0_343 = arith.constant 0 : index
    %c0_344 = arith.constant 0 : index
    %665 = vector.load %arg9[%c1_342, %c0_343, %c0_344] : memref<2x2x32xf32, #tpu.memory_space<vmem>>, vector<1x2x32xf32>
    %666 = vector.shape_cast %665 : vector<1x2x32xf32> to vector<2x32xf32>
    %667 = arith.mulf %656, %666 : vector<2x32xf32>
    %668 = arith.mulf %650, %658 : vector<2x32xf32>
    %669 = arith.addf %667, %668 : vector<2x32xf32>
    %670 = math.tanh %669 : vector<2x32xf32>
    %671 = arith.mulf %664, %670 : vector<2x32xf32>
    %c1_345 = arith.constant 1 : index
    %c0_346 = arith.constant 0 : index
    %c0_347 = arith.constant 0 : index
    %672 = vector.load %arg9[%c1_345, %c0_346, %c0_347] : memref<2x2x32xf32, #tpu.memory_space<vmem>>, vector<1x2x32xf32>
    %673 = vector.shape_cast %672 : vector<1x2x32xf32> to vector<2x32xf32>
    %674 = vector.shape_cast %669 : vector<2x32xf32> to vector<1x2x32xf32>
    tpu.vector_store %arg9[%c1_345, %c0_346, %c0_347], %674 {strides = array<i32>} : memref<2x2x32xf32, #tpu.memory_space<vmem>>, vector<1x2x32xf32>,
    %675 = arith.truncf %671 : vector<2x32xf32> to vector<2x32xbf16>
    %c1_348 = arith.constant 1 : index
    %c0_349 = arith.constant 0 : index
    %c0_350 = arith.constant 0 : index
    %676 = vector.load %arg8[%c1_348, %c0_349, %c0_350] : memref<2x2x32xbf16, #tpu.memory_space<vmem>>, vector<1x2x32xbf16>
    %677 = vector.shape_cast %676 : vector<1x2x32xbf16> to vector<2x32xbf16>
    %678 = vector.shape_cast %675 : vector<2x32xbf16> to vector<1x2x32xbf16>
    tpu.vector_store %arg8[%c1_348, %c0_349, %c0_350], %678 {strides = array<i32>} : memref<2x2x32xbf16, #tpu.memory_space<vmem>>, vector<1x2x32xbf16>,
    %679 = arith.index_cast %c5_i32_329 : i32 to index
    %c0_351 = arith.constant 0 : index
    %c0_352 = arith.constant 0 : index
    %680 = vector.load %arg10[%679, %c0_351, %c0_352] : memref<8x2x32xbf16, #tpu.memory_space<vmem>>, vector<1x2x32xbf16>
    %681 = vector.shape_cast %680 : vector<1x2x32xbf16> to vector<2x32xbf16>
    %682 = vector.shape_cast %675 : vector<2x32xbf16> to vector<1x2x32xbf16>
    tpu.vector_store %arg10[%679, %c0_351, %c0_352], %682 {strides = array<i32>} : memref<8x2x32xbf16, #tpu.memory_space<vmem>>, vector<1x2x32xbf16>,
    %c6_i32_353 = arith.constant 6 : i32
    %683 = arith.index_cast %c6_i32_353 : i32 to index
    %c0_354 = arith.constant 0 : index
    %c0_355 = arith.constant 0 : index
    %684 = vector.load %arg11[%683, %c0_354, %c0_355] : memref<8x2x128xf32, #tpu.memory_space<vmem>>, vector<1x2x128xf32>
    %685 = vector.shape_cast %684 : vector<1x2x128xf32> to vector<2x128xf32>
    %c1_356 = arith.constant 1 : index
    %c0_357 = arith.constant 0 : index
    %c0_358 = arith.constant 0 : index
    %686 = vector.load %arg8[%c1_356, %c0_357, %c0_358] : memref<2x2x32xbf16, #tpu.memory_space<vmem>>, vector<1x2x32xbf16>
    %687 = vector.shape_cast %686 : vector<1x2x32xbf16> to vector<2x32xbf16>
    %c1_359 = arith.constant 1 : index
    %c0_360 = arith.constant 0 : index
    %c0_361 = arith.constant 0 : index
    %688 = vector.load %arg3[%c1_359, %c0_360, %c0_361] : memref<2x32x128xbf16, #tpu.memory_space<vmem>>, vector<1x32x128xbf16>
    %689 = vector.shape_cast %688 : vector<1x32x128xbf16> to vector<32x128xbf16>
    %cst_362 = arith.constant dense<0.000000e+00> : vector<2x128xf32>
    %690 = tpu.matmul %687, %689, %cst_362 {dimension_numbers = #tpu.dot_dimension_numbers<[1], [0], [0], [1], [0, 0, 1, 1], [], []>} : vector<2x32xbf16>, vector<32x128xbf16>, vector<2x128xf32> -> vector<2x128xf32>
    %691 = arith.addf %685, %690 : vector<2x128xf32>
    %692 = vector.extract_strided_slice %691 {offsets = [0, 0], sizes = [2, 32], strides = [1, 1]} : vector<2x128xf32> to vector<2x32xf32>
    %693 = arith.negf %692 : vector<2x32xf32>
    %694 = math.exp %693 : vector<2x32xf32>
    %cst_363 = arith.constant 1.000000e+00 : f32
    %695 = vector.broadcast %cst_363 : f32 to vector<2x32xf32>
    %696 = arith.addf %695, %694 : vector<2x32xf32>
    %697 = arith.divf %695, %696 : vector<2x32xf32>
    %698 = vector.extract_strided_slice %691 {offsets = [0, 32], sizes = [2, 32], strides = [1, 1]} : vector<2x128xf32> to vector<2x32xf32>
    %699 = arith.negf %698 : vector<2x32xf32>
    %700 = math.exp %699 : vector<2x32xf32>
    %cst_364 = arith.constant 1.000000e+00 : f32
    %701 = vector.broadcast %cst_364 : f32 to vector<2x32xf32>
    %702 = arith.addf %701, %700 : vector<2x32xf32>
    %703 = arith.divf %701, %702 : vector<2x32xf32>
    %704 = vector.extract_strided_slice %691 {offsets = [0, 64], sizes = [2, 32], strides = [1, 1]} : vector<2x128xf32> to vector<2x32xf32>
    %705 = math.tanh %704 : vector<2x32xf32>
    %706 = vector.extract_strided_slice %691 {offsets = [0, 96], sizes = [2, 32], strides = [1, 1]} : vector<2x128xf32> to vector<2x32xf32>
    %707 = arith.negf %706 : vector<2x32xf32>
    %708 = math.exp %707 : vector<2x32xf32>
    %cst_365 = arith.constant 1.000000e+00 : f32
    %709 = vector.broadcast %cst_365 : f32 to vector<2x32xf32>
    %710 = arith.addf %709, %708 : vector<2x32xf32>
    %711 = arith.divf %709, %710 : vector<2x32xf32>
    %c1_366 = arith.constant 1 : index
    %c0_367 = arith.constant 0 : index
    %c0_368 = arith.constant 0 : index
    %712 = vector.load %arg9[%c1_366, %c0_367, %c0_368] : memref<2x2x32xf32, #tpu.memory_space<vmem>>, vector<1x2x32xf32>
    %713 = vector.shape_cast %712 : vector<1x2x32xf32> to vector<2x32xf32>
    %714 = arith.mulf %703, %713 : vector<2x32xf32>
    %715 = arith.mulf %697, %705 : vector<2x32xf32>
    %716 = arith.addf %714, %715 : vector<2x32xf32>
    %717 = math.tanh %716 : vector<2x32xf32>
    %718 = arith.mulf %711, %717 : vector<2x32xf32>
    %c1_369 = arith.constant 1 : index
    %c0_370 = arith.constant 0 : index
    %c0_371 = arith.constant 0 : index
    %719 = vector.load %arg9[%c1_369, %c0_370, %c0_371] : memref<2x2x32xf32, #tpu.memory_space<vmem>>, vector<1x2x32xf32>
    %720 = vector.shape_cast %719 : vector<1x2x32xf32> to vector<2x32xf32>
    %721 = vector.shape_cast %716 : vector<2x32xf32> to vector<1x2x32xf32>
    tpu.vector_store %arg9[%c1_369, %c0_370, %c0_371], %721 {strides = array<i32>} : memref<2x2x32xf32, #tpu.memory_space<vmem>>, vector<1x2x32xf32>,
    %722 = arith.truncf %718 : vector<2x32xf32> to vector<2x32xbf16>
    %c1_372 = arith.constant 1 : index
    %c0_373 = arith.constant 0 : index
    %c0_374 = arith.constant 0 : index
    %723 = vector.load %arg8[%c1_372, %c0_373, %c0_374] : memref<2x2x32xbf16, #tpu.memory_space<vmem>>, vector<1x2x32xbf16>
    %724 = vector.shape_cast %723 : vector<1x2x32xbf16> to vector<2x32xbf16>
    %725 = vector.shape_cast %722 : vector<2x32xbf16> to vector<1x2x32xbf16>
    tpu.vector_store %arg8[%c1_372, %c0_373, %c0_374], %725 {strides = array<i32>} : memref<2x2x32xbf16, #tpu.memory_space<vmem>>, vector<1x2x32xbf16>,
    %726 = arith.index_cast %c6_i32_353 : i32 to index
    %c0_375 = arith.constant 0 : index
    %c0_376 = arith.constant 0 : index
    %727 = vector.load %arg10[%726, %c0_375, %c0_376] : memref<8x2x32xbf16, #tpu.memory_space<vmem>>, vector<1x2x32xbf16>
    %728 = vector.shape_cast %727 : vector<1x2x32xbf16> to vector<2x32xbf16>
    %729 = vector.shape_cast %722 : vector<2x32xbf16> to vector<1x2x32xbf16>
    tpu.vector_store %arg10[%726, %c0_375, %c0_376], %729 {strides = array<i32>} : memref<8x2x32xbf16, #tpu.memory_space<vmem>>, vector<1x2x32xbf16>,
    %c7_i32_377 = arith.constant 7 : i32
    %730 = arith.index_cast %c7_i32_377 : i32 to index
    %c0_378 = arith.constant 0 : index
    %c0_379 = arith.constant 0 : index
    %731 = vector.load %arg11[%730, %c0_378, %c0_379] : memref<8x2x128xf32, #tpu.memory_space<vmem>>, vector<1x2x128xf32>
    %732 = vector.shape_cast %731 : vector<1x2x128xf32> to vector<2x128xf32>
    %c1_380 = arith.constant 1 : index
    %c0_381 = arith.constant 0 : index
    %c0_382 = arith.constant 0 : index
    %733 = vector.load %arg8[%c1_380, %c0_381, %c0_382] : memref<2x2x32xbf16, #tpu.memory_space<vmem>>, vector<1x2x32xbf16>
    %734 = vector.shape_cast %733 : vector<1x2x32xbf16> to vector<2x32xbf16>
    %c1_383 = arith.constant 1 : index
    %c0_384 = arith.constant 0 : index
    %c0_385 = arith.constant 0 : index
    %735 = vector.load %arg3[%c1_383, %c0_384, %c0_385] : memref<2x32x128xbf16, #tpu.memory_space<vmem>>, vector<1x32x128xbf16>
    %736 = vector.shape_cast %735 : vector<1x32x128xbf16> to vector<32x128xbf16>
    %cst_386 = arith.constant dense<0.000000e+00> : vector<2x128xf32>
    %737 = tpu.matmul %734, %736, %cst_386 {dimension_numbers = #tpu.dot_dimension_numbers<[1], [0], [0], [1], [0, 0, 1, 1], [], []>} : vector<2x32xbf16>, vector<32x128xbf16>, vector<2x128xf32> -> vector<2x128xf32>
    %738 = arith.addf %732, %737 : vector<2x128xf32>
    %739 = vector.extract_strided_slice %738 {offsets = [0, 0], sizes = [2, 32], strides = [1, 1]} : vector<2x128xf32> to vector<2x32xf32>
    %740 = arith.negf %739 : vector<2x32xf32>
    %741 = math.exp %740 : vector<2x32xf32>
    %cst_387 = arith.constant 1.000000e+00 : f32
    %742 = vector.broadcast %cst_387 : f32 to vector<2x32xf32>
    %743 = arith.addf %742, %741 : vector<2x32xf32>
    %744 = arith.divf %742, %743 : vector<2x32xf32>
    %745 = vector.extract_strided_slice %738 {offsets = [0, 32], sizes = [2, 32], strides = [1, 1]} : vector<2x128xf32> to vector<2x32xf32>
    %746 = arith.negf %745 : vector<2x32xf32>
    %747 = math.exp %746 : vector<2x32xf32>
    %cst_388 = arith.constant 1.000000e+00 : f32
    %748 = vector.broadcast %cst_388 : f32 to vector<2x32xf32>
    %749 = arith.addf %748, %747 : vector<2x32xf32>
    %750 = arith.divf %748, %749 : vector<2x32xf32>
    %751 = vector.extract_strided_slice %738 {offsets = [0, 64], sizes = [2, 32], strides = [1, 1]} : vector<2x128xf32> to vector<2x32xf32>
    %752 = math.tanh %751 : vector<2x32xf32>
    %753 = vector.extract_strided_slice %738 {offsets = [0, 96], sizes = [2, 32], strides = [1, 1]} : vector<2x128xf32> to vector<2x32xf32>
    %754 = arith.negf %753 : vector<2x32xf32>
    %755 = math.exp %754 : vector<2x32xf32>
    %cst_389 = arith.constant 1.000000e+00 : f32
    %756 = vector.broadcast %cst_389 : f32 to vector<2x32xf32>
    %757 = arith.addf %756, %755 : vector<2x32xf32>
    %758 = arith.divf %756, %757 : vector<2x32xf32>
    %c1_390 = arith.constant 1 : index
    %c0_391 = arith.constant 0 : index
    %c0_392 = arith.constant 0 : index
    %759 = vector.load %arg9[%c1_390, %c0_391, %c0_392] : memref<2x2x32xf32, #tpu.memory_space<vmem>>, vector<1x2x32xf32>
    %760 = vector.shape_cast %759 : vector<1x2x32xf32> to vector<2x32xf32>
    %761 = arith.mulf %750, %760 : vector<2x32xf32>
    %762 = arith.mulf %744, %752 : vector<2x32xf32>
    %763 = arith.addf %761, %762 : vector<2x32xf32>
    %764 = math.tanh %763 : vector<2x32xf32>
    %765 = arith.mulf %758, %764 : vector<2x32xf32>
    %c1_393 = arith.constant 1 : index
    %c0_394 = arith.constant 0 : index
    %c0_395 = arith.constant 0 : index
    %766 = vector.load %arg9[%c1_393, %c0_394, %c0_395] : memref<2x2x32xf32, #tpu.memory_space<vmem>>, vector<1x2x32xf32>
    %767 = vector.shape_cast %766 : vector<1x2x32xf32> to vector<2x32xf32>
    %768 = vector.shape_cast %763 : vector<2x32xf32> to vector<1x2x32xf32>
    tpu.vector_store %arg9[%c1_393, %c0_394, %c0_395], %768 {strides = array<i32>} : memref<2x2x32xf32, #tpu.memory_space<vmem>>, vector<1x2x32xf32>,
    %769 = arith.truncf %765 : vector<2x32xf32> to vector<2x32xbf16>
    %c1_396 = arith.constant 1 : index
    %c0_397 = arith.constant 0 : index
    %c0_398 = arith.constant 0 : index
    %770 = vector.load %arg8[%c1_396, %c0_397, %c0_398] : memref<2x2x32xbf16, #tpu.memory_space<vmem>>, vector<1x2x32xbf16>
    %771 = vector.shape_cast %770 : vector<1x2x32xbf16> to vector<2x32xbf16>
    %772 = vector.shape_cast %769 : vector<2x32xbf16> to vector<1x2x32xbf16>
    tpu.vector_store %arg8[%c1_396, %c0_397, %c0_398], %772 {strides = array<i32>} : memref<2x2x32xbf16, #tpu.memory_space<vmem>>, vector<1x2x32xbf16>,
    %773 = arith.index_cast %c7_i32_377 : i32 to index
    %c0_399 = arith.constant 0 : index
    %c0_400 = arith.constant 0 : index
    %774 = vector.load %arg10[%773, %c0_399, %c0_400] : memref<8x2x32xbf16, #tpu.memory_space<vmem>>, vector<1x2x32xbf16>
    %775 = vector.shape_cast %774 : vector<1x2x32xbf16> to vector<2x32xbf16>
    %776 = vector.shape_cast %769 : vector<2x32xbf16> to vector<1x2x32xbf16>
    tpu.vector_store %arg10[%773, %c0_399, %c0_400], %776 {strides = array<i32>} : memref<8x2x32xbf16, #tpu.memory_space<vmem>>, vector<1x2x32xbf16>,
    %c8_i32_401 = arith.constant 8 : i32
    %c0_402 = arith.constant 0 : index
    %c0_403 = arith.constant 0 : index
    %c0_404 = arith.constant 0 : index
    %777 = vector.load %arg10[%c0_402, %c0_403, %c0_404] : memref<8x2x32xbf16, #tpu.memory_space<vmem>>, vector<8x2x32xbf16>
    %778 = arith.extf %777 : vector<8x2x32xbf16> to vector<8x2x32xf32>
    %c0_405 = arith.constant 0 : index
    %c0_406 = arith.constant 0 : index
    %779 = vector.load %arg5[%c0_405, %c0_406] : memref<1x32xf32, #tpu.memory_space<vmem>>, vector<1x32xf32>
    %780 = vector.shape_cast %779 : vector<1x32xf32> to vector<1x1x32xf32>
    %781 = vector.broadcast %780 : vector<1x1x32xf32> to vector<8x2x32xf32>
    %782 = arith.mulf %778, %781 : vector<8x2x32xf32>
    %cst_407 = arith.constant dense<0.000000e+00> : vector<8x2xf32>
    %783 = vector.multi_reduction <add>, %782, %cst_407 [2] : vector<8x2x32xf32> to vector<8x2xf32>
    %784 = tpu.transpose %783, [1, 0] : vector<8x2xf32> -> vector<2x8xf32>
    %c0_408 = arith.constant 0 : index
    %c0_409 = arith.constant 0 : index
    %785 = vector.load %arg6[%c0_408, %c0_409] : memref<1x1xf32, #tpu.memory_space<vmem>>, vector<1x1xf32>
    %786 = vector.broadcast %785 : vector<1x1xf32> to vector<2x8xf32>
    %787 = arith.addf %784, %786 : vector<2x8xf32>
    %c0_410 = arith.constant 0 : index
    %c0_411 = arith.constant 0 : index
    %788 = vector.load %arg7[%c0_410, %c0_411] : memref<2x8xf32, #tpu.memory_space<vmem>>, vector<2x8xf32>
    tpu.vector_store %arg7[%c0_410, %c0_411], %787 {strides = array<i32>} : memref<2x8xf32, #tpu.memory_space<vmem>>, vector<2x8xf32>,
    return
  }
  func.func @transform_0(%arg0: i32) -> (i32, i32, i32) {
    %c0_i32 = arith.constant 0 : i32
    %c0_i32_0 = arith.constant 0 : i32
    %c0_i32_1 = arith.constant 0 : i32
    return %arg0, %c0_i32, %c0_i32_0 : i32, i32, i32
  }
  func.func @transform_1(%arg0: i32) -> (i32, i32, i32) {
    %c0_i32 = arith.constant 0 : i32
    %c0_i32_0 = arith.constant 0 : i32
    %c0_i32_1 = arith.constant 0 : i32
    %c0_i32_2 = arith.constant 0 : i32
    return %c0_i32, %c0_i32_0, %c0_i32_1 : i32, i32, i32
  }
  func.func @transform_2(%arg0: i32) -> (i32, i32, i32) {
    %c0_i32 = arith.constant 0 : i32
    %c0_i32_0 = arith.constant 0 : i32
    %c0_i32_1 = arith.constant 0 : i32
    %c0_i32_2 = arith.constant 0 : i32
    return %c0_i32, %c0_i32_0, %c0_i32_1 : i32, i32, i32
  }
  func.func @transform_3(%arg0: i32) -> (i32, i32, i32) {
    %c0_i32 = arith.constant 0 : i32
    %c0_i32_0 = arith.constant 0 : i32
    %c0_i32_1 = arith.constant 0 : i32
    %c0_i32_2 = arith.constant 0 : i32
    return %c0_i32, %c0_i32_0, %c0_i32_1 : i32, i32, i32
  }
  func.func @transform_4(%arg0: i32) -> (i32, i32) {
    %c0_i32 = arith.constant 0 : i32
    %c0_i32_0 = arith.constant 0 : i32
    %c0_i32_1 = arith.constant 0 : i32
    return %c0_i32, %c0_i32_0 : i32, i32
  }
  func.func @transform_5(%arg0: i32) -> (i32, i32) {
    %c0_i32 = arith.constant 0 : i32
    %c0_i32_0 = arith.constant 0 : i32
    %c0_i32_1 = arith.constant 0 : i32
    return %c0_i32, %c0_i32_0 : i32, i32
  }
  func.func @transform_6(%arg0: i32) -> (i32, i32) {
    %c0_i32 = arith.constant 0 : i32
    %c0_i32_0 = arith.constant 0 : i32
    return %c0_i32, %arg0 : i32, i32
  }
}

</mosaic_0001>

<bundles_post_ra>
// kernel: lstm_forward.2
= control target key start
LH: loop header
LB: loop body
LE: loop exit
PB: predicated region body
PF: predicated region fallthrough
CT: control target
= control target key end

     0   :  { %v1382_v0 = vmov 0   ;;  %v1383_v3 = vmov 1966171168   ;;  %v85_v5 = vlaneseq  ;;  %v1384_v8 = vmov 0.0   ;;  %s1899_s1 = inlined_call_operand.vmem [shape: f32[8,2,3], index: 1, kind: input, shape index: {}]   ;;  %s1900_s2 = inlined_call_operand.vmem [shape: bf16[32,32], index: 2, kind: input, shape index: {}]   ;;  %s1901_s0 = inlined_call_operand.vmem [shape: bf16[8,2,32], index: 0, kind: input, shape index: {}]   ;;  %s1902_s6 = inlined_call_operand.vmem [shape: f32[3,32], index: 6, kind: input, shape index: {}]   ;;  %s1903_s7 = inlined_call_operand.vmem [shape: f32[1,32], index: 7, kind: input, shape index: {}]   ;;  %s1904_s3 = inlined_call_operand.vmem [shape: f32[1,32], index: 3, kind: input, shape index: {}]   ;;  %s1905_s11 = inlined_call_operand.vmem [shape: bf16[32,32], index: 11, kind: input, shape index: {}]   ;;  %s1906_s10 = inlined_call_operand.vmem [shape: bf16[32,32], index: 10, kind: input, shape index: {}]   ;;  %s1907_s8 = inlined_call_operand.vmem [shape: f32[1,32], index: 8, kind: input, shape index: {}]   ;;  %s1908_s9 = inlined_call_operand.vmem [shape: f32[1,32], index: 9, kind: input, shape index: {}]   ;;  %s1909_s4 = inlined_call_operand.vmem [shape: f32[1,32], index: 4, kind: input, shape index: {}]   ;;  %s1910_s5 = inlined_call_operand.vmem [shape: f32[1,32], index: 5, kind: input, shape index: {}]   ;;  %s1911_s12 = inlined_call_operand.vmem [shape: f32[1,32], index: 12, kind: input, shape index: {}]   ;;  %s1912_s13 = inlined_call_operand.vmem [shape: f32[1,32], index: 13, kind: input, shape index: {}]   ;;  %s1913_s14 = inlined_call_operand.vmem [shape: f32[1,32], index: 14, kind: input, shape index: {}]   ;;  %s1914_s15 = inlined_call_operand.vmem [shape: bf16[8,2,32], index: 15, kind: output, shape index: {}]  }
   0x1   :  { %1359 = vset.pattern.permute.xlu1 %v1382_v0  ;;  %1358 = vset.pattern.permute.xlu0 %v1382_v0  ;;  %v1476_v1 = vld [vmem:[%s1899_s1 + $0x4] sm:$0x3]  ;;  %v1481_v2 = vld [vmem:[%s1899_s1] sm:$0x3]  ;;  %v83_v4 = vunpack.c.l.s4 %v1383_v3  ;;  %v1488_v6 = vld [vmem:[%s1899_s1 + $0x6] sm:$0x3] }
   0x2   :  { %264 = vperm.xlu1 %1359, %v1476_v1   ;;  %240 = vperm.xlu0 %1358, %v1481_v2   ;;  %v1493_v7 = vld [vmem:[%s1899_s1 + $0x2] sm:$0x3]  ;;  %v1364_v9 = vld [vmem:[%s1900_s2 + $0x8] sm:$0xff]   ;;  %vm1385_vm0 = vmmov 0   ;;  %v1501_v11 = vshrl.u32 %v85_v5, 7  ;;  %vm139_vm1 = vcmask 261120  }
   0x3   :  { %1323 = vmatprep.subr.bf16.mxu0 %v1384_v8  ;;  %1327 = vmatprep.mubr.msk.bf16.mxu0 %vm1385_vm0, %v1384_v8  ;;  %v84_v10 = vunpack.c.0.s8 %v83_v4  ;;  %v234_v12 = vld [vmem:[%s1899_s1 + $0xa] sm:$0x3]  ;;  %v233_v13 = vld [vmem:[%s1899_s1 + $0x8] sm:$0x3]  ;;  %v1365_v14 = vld [vmem:[%s1900_s2] sm:$0xff]   ;;  %v1386_v39 = vmov 1  }
   0x4   :  { %1331 = vmatprep.subr.bf16.mxu1 %v1384_v8  ;;  %1335 = vmatprep.mubr.msk.bf16.mxu1 %vm1385_vm0, %v1384_v8  ;;  %v51_v15 = vld [vmem:[%s1901_s0] sm:$0x1]  ;;  %v52_v17 = vld [vmem:[%s1901_s0 + $0x1] sm:$0x1]  ;;  %v53_v18 = vld [vmem:[%s1901_s0 + $0x2] sm:$0x1] }
   0x5   :  { %1324 = vmatpush3.bf16.msra.mxu0 %v1364_v9  ;;  %v87_v16 = vsub.s32 %v84_v10, %v1501_v11  ;;  %v54_v19 = vld [vmem:[%s1901_s0 + $0x3] sm:$0x1]  ;;  %v55_v20 = vld [vmem:[%s1901_s0 + $0x4] sm:$0x1]  ;;  %v56_v21 = vld [vmem:[%s1901_s0 + $0x5] sm:$0x1]  ;;  %v78_v23 = vcombine.low %v51_v15, %v52_v17 }
   0x6   :  { %276 = vperm.xlu1 %1359, %v1488_v6   ;;  %252 = vperm.xlu0 %1358, %v1493_v7   ;;  %v57_v22 = vld [vmem:[%s1901_s0 + $0x6] sm:$0x1]  ;;  %v79_v24 = vcombine.low %v53_v18, %v54_v19  ;;  %v58_v25 = vld [vmem:[%s1901_s0 + $0x7] sm:$0x1]  ;;  %v80_v26 = vcombine.low %v55_v20, %v56_v21  ;;  %v236_v31 = vld [vmem:[%s1899_s1 + $0xe] sm:$0x3] }
   0x7   :  { %1325 = vmatprep.subr.bf16.mxu0 %v1384_v8  ;;  %v81_v27 = vcombine.low %v57_v22, %v58_v25  ;;  %v88_v28 = vrot.slane %v78_v23, %v87_v16  ;;  %v235_v32 = vld [vmem:[%s1899_s1 + $0xc] sm:$0x3]  ;;  %v1387_v40 = vmov 2   ;;  %v1388_v49 = vmov 1983009808  }
   0x8   :  { %v95_v29 = vrot.slane %v79_v24, %v87_v16  ;;  %v102_v30 = vrot.slane %v80_v26, %v87_v16  ;;  %v341_v50 = vunpack.c.l.s4 %v1388_v49  ;;  %v1389_v54 = vmov 269488144   ;;  %v1300_v57 = vld [vmem:[%s1902_s6 + $0x1] ss:$0 sm:$0xff]  ;;  %v1299_v61 = vld [vmem:[%s1902_s6] ss:$0 sm:$0xff] }
   0x9   :  { %1326 = vmatpush3.bf16.msra.mxu0 %v1365_v14  ;;  %v109_v33 = vrot.slane %v81_v27, %v87_v16  ;;  %v244_v55 = vunpack.c.l.s4 %v1389_v54  ;;  %v462_v5 = vcombine.high %v1300_v57, %v1300_v57  ;;  %v1302_v10 = vld [vmem:[%s1903_s7] ss:$0 sm:$0xff]  ;;  %vm1280_vm2 = vcmask 253952  }
   0xa   :  { %300 = vperm.xlu1 %1359, %v234_v12   ;;  %288 = vperm.xlu0 %1358, %v233_v13   ;;  %v110_v34 = vcombine.low %v88_v28, %v95_v29  ;;  %v342_v53 = vunpack.c.0.s8 %v341_v50  ;;  %v636_v23 = vcombine.high %v1302_v10, %v1302_v10 }
   0xb   :  { %1339 = vmatprep.subr.bf16.mxu0 %v1384_v8  ;;  %v111_v35 = vcombine.low %v102_v30, %v109_v33  ;;  %v245_v60 = vunpack.c.0.s8 %v244_v55 }
   0xc   :  { %v118_v36 = vrot.slane %v110_v34, %v87_v16  ;;  %v1579_v59 = vsub.s32 %v342_v53, %v1501_v11 }
   0xd   :  { %v125_v37 = vrot.slane %v111_v35, %v87_v16  ;;  %v1595_v3 = vsub.s32 %v245_v60, %v1501_v11 }
   0xe   :  { %324 = vperm.xlu1 %1359, %v236_v31   ;;  %312 = vperm.xlu0 %1358, %v235_v32   ;;  %v1585_v62 = vrot.slane %v1300_v57, %v1579_v59  ;;  %v1598_v4 = vrot.slane %v1299_v61, %v1579_v59  ;;  %v476_v19 = vrot.slane %v462_v5, %v1579_v59 }
   0xf   :  { %v126_v38 = vcombine.low %v118_v36, %v125_v37  ;;  %v1623_v20 = vrot.slane %v1302_v10, %v1579_v59  ;;  %v1652_v50 = vrot.slane %v636_v23, %v1579_v59 }
  0x10   :  { %v354_v18 = vcombine.high %v1598_v4, %v1598_v4  ;;  %v478_v33 = vcombine.high %v476_v19, %v476_v19 }
  0x11   :  { %1328 = vmatmul.mubr.msk.bf16.vlgmr.msra.gmra.mxu0 %vm139_vm1, %v126_v38  ;;  %v1639_v34 = vcombine.high %v1623_v20, %v1623_v20 }
  0x12   :  { %1361 = vset.pattern.permute.xlu1 %v1386_v39  ;;  %1360 = vset.pattern.permute.xlu0 %v1386_v39 }
  0x13   :  { %381 = vperm.xlu1 %1361, %v1493_v7   ;;  %370 = vperm.xlu0 %1360, %v1481_v2  }
  0x14   :  { %1343 = vmatprep.mubr.msk.bf16.mxu0 %vm1385_vm0, %v1384_v8 }
  0x17   :  { %392 = vperm.xlu1 %1361, %v1476_v1   ;;  %403 = vperm.xlu0 %1360, %v1488_v6  }
  0x1b   :  { %414 = vperm.xlu1 %1361, %v233_v13   ;;  %425 = vperm.xlu0 %1360, %v234_v12  }
  0x1f   :  { %436 = vperm.xlu1 %1361, %v235_v32   ;;  %447 = vperm.xlu0 %1360, %v236_v31  }
  0x23   :  { %1362 = vset.pattern.permute.xlu1 %v1387_v40  ;;  %1363 = vset.pattern.permute.xlu0 %v1387_v40 }
  0x24   :  { %501 = vperm.xlu1 %1362, %v1481_v2   ;;  %512 = vperm.xlu0 %1363, %v1493_v7   ;;  %v339_v2 = vcombine.high %v1299_v61, %v1299_v61 }
  0x26   :  { %v1617_v17 = vrot.slane %v339_v2, %v1579_v59 }
  0x28   :  { %523 = vperm.xlu1 %1362, %v1476_v1   ;;  %545 = vperm.xlu0 %1363, %v233_v13   ;;  %v1301_v1 = vld [vmem:[%s1902_s6 + $0x2] ss:$0 sm:$0xff]  ;;  %v1633_v29 = vcombine.high %v1617_v17, %v1617_v17 }
  0x29   :  { %v1605_v9 = vrot.slane %v1301_v1, %v1579_v59  ;;  %v593_v21 = vcombine.high %v1301_v1, %v1301_v1 }
  0x2b   :  { %v1627_v22 = vcombine.high %v1605_v9, %v1605_v9  ;;  %v607_v36 = vrot.slane %v593_v21, %v1579_v59 }
  0x2c   :  { %534 = vperm.xlu1 %1362, %v1488_v6   ;;  %567 = vperm.xlu0 %1363, %v235_v32   ;;  %v477_v6 = vcombine.high %v1585_v62, %v1585_v62 }
  0x2d   :  { %v609_v54 = vcombine.high %v607_v36, %v607_v36 }
  0x30   :  { %556 = vperm.xlu1 %1362, %v234_v12  }
  0x34   :  { %578 = vperm.xlu1 %1362, %v236_v31  }
  0x7d   :  { %v1561_v41 = vpop.permute.xlu1 %264  ;;  %v241_v42 = vpop.permute.xlu0 %240 }
  0x7e   :  { %v249_v12 = vrot.slane %v241_v42, %v1595_v3  ;;  %v273_v37 = vrot.slane %v1561_v41, %v1595_v3 }
  0x80   :  { %v360_v24 = vmul.f32 %v1598_v4, %v249_v12  ;;  %v362_v60 = vmul.f32 %v1617_v17, %v273_v37 }
  0x81   :  { %v1563_v43 = vpop.permute.xlu1 %276  ;;  %v253_v44 = vpop.permute.xlu0 %252 }
  0x82   :  { %v261_v13 = vrot.slane %v253_v44, %v1595_v3  ;;  %v285_v38 = vrot.slane %v1563_v43, %v1595_v3 }
  0x84   :  { %v361_v25 = vmul.f32 %v354_v18, %v261_v13  ;;  %v363_v61 = vmul.f32 %v1633_v29, %v285_v38 }
  0x85   :  { %v1565_v45 = vpop.permute.xlu1 %300  ;;  %v1567_v46 = vpop.permute.xlu0 %288 }
  0x86   :  { %v297_v5 = vrot.slane %v1567_v46, %v1595_v3 }
  0x89   :  { %v1569_v47 = vpop.permute.xlu1 %324  ;;  %v1571_v48 = vpop.permute.xlu0 %312 }
  0x8e   :  { %v382_v51 = vpop.permute.xlu1 %381  ;;  %v371_v52 = vpop.permute.xlu0 %370 }
  0x8f   :  { %v390_v14 = vrot.slane %v382_v51, %v1595_v3  ;;  %v379_v15 = vrot.slane %v371_v52, %v1595_v3 }
  0x91   :  { %v484_v26 = vmul.f32 %v477_v6, %v390_v14  ;;  %v483_v27 = vmul.f32 %v1585_v62, %v379_v15 }
  0x92   :  { %v393_v56 = vpop.permute.xlu1 %392  ;;  %v1576_v58 = vpop.permute.xlu0 %403 }
  0x93   :  { %v401_v30 = vrot.slane %v393_v56, %v1595_v3  ;;  %v412_v39 = vrot.slane %v1576_v58, %v1595_v3  ;;  %v492_v42 = vadd.f32 %v484_v26, %v361_v25  ;;  %v491_v44 = vadd.f32 %v483_v27, %v360_v24 }
  0x94   :  { %v652_v58 = vcombine.high %v1652_v50, %v1652_v50 }
  0x95   :  { %v485_v52 = vmul.f32 %v476_v19, %v401_v30  ;;  %v486_v1 = vmul.f32 %v478_v33, %v412_v39 }
  0x96   :  { %v1587_v63 = vpop.permute.xlu1 %414  ;;  %v1589_v0 = vpop.permute.xlu0 %425 }
  0x97   :  { %v423_v41 = vrot.slane %v1587_v63, %v1595_v3  ;;  %v434_v55 = vrot.slane %v1589_v0, %v1595_v3  ;;  %v309_v63 = vrot.slane %v1565_v45, %v1595_v3  ;;  %v321_v0 = vrot.slane %v1571_v48, %v1595_v3 }
  0x98   :  { %v493_v13 = vadd.f32 %v485_v52, %v362_v60 }
  0x99   :  { %v487_v14 = vmul.f32 %v1585_v62, %v423_v41  ;;  %v488_v24 = vmul.f32 %v477_v6, %v434_v55  ;;  %v365_v27 = vmul.f32 %v354_v18, %v309_v63  ;;  %v333_v6 = vrot.slane %v1569_v47, %v1595_v3 }
  0x9a   :  { %v1602_v7 = vpop.permute.xlu1 %436  ;;  %v1614_v16 = vpop.permute.xlu0 %447 }
  0x9b   :  { %v445_v10 = vrot.slane %v1602_v7, %v1595_v3  ;;  %v456_v45 = vrot.slane %v1614_v16, %v1595_v3  ;;  %v494_v7 = vadd.f32 %v486_v1, %v363_v61  ;;  %v366_v16 = vmul.f32 %v1617_v17, %v321_v0 }
  0x9c   :  { %v496_v39 = vadd.f32 %v488_v24, %v365_v27  ;;  %v367_v17 = vmul.f32 %v1633_v29, %v333_v6 }
  0x9d   :  { %v489_v30 = vmul.f32 %v476_v19, %v445_v10 }
  0x9f   :  { %v502_v28 = vpop.permute.xlu1 %501  ;;  %v513_v32 = vpop.permute.xlu0 %512 }
  0xa0   :  { %v510_v31 = vrot.slane %v502_v28, %v1595_v3  ;;  %v521_v35 = vrot.slane %v513_v32, %v1595_v3  ;;  %v364_v28 = vmul.f32 %v1598_v4, %v297_v5 }
  0xa2   :  { %v614_v40 = vmul.f32 %v1605_v9, %v510_v31  ;;  %v615_v49 = vmul.f32 %v1627_v22, %v521_v35  ;;  %v495_v38 = vadd.f32 %v487_v14, %v364_v28 }
  0xa3   :  { %v524_v51 = vpop.permute.xlu1 %523  ;;  %v546_v43 = vpop.permute.xlu0 %545 }
  0xa4   :  { %v532_v53 = vrot.slane %v524_v51, %v1595_v3  ;;  %v622_v56 = vadd.f32 %v614_v40, %v491_v44  ;;  %v623_v57 = vadd.f32 %v615_v49, %v492_v42  ;;  %v554_v15 = vrot.slane %v546_v43, %v1595_v3 }
  0xa5   :  { %v490_v40 = vmul.f32 %v478_v33, %v456_v45  ;;  %v1391_v45 = vmov 1414812756  }
  0xa6   :  { %v616_v2 = vmul.f32 %v607_v36, %v532_v53  ;;  %v1677_v46 = vadd.f32 %v1623_v20, %v622_v56  ;;  %v1680_v48 = vadd.f32 %v1639_v34, %v623_v57  ;;  %v618_v32 = vmul.f32 %v1605_v9, %v554_v15 }
  0xa7   :  { %v535_v12 = vpop.permute.xlu1 %534  ;;  %v568_v23 = vpop.permute.xlu0 %567  ;;  %v497_v9 = vadd.f32 %v489_v30, %v366_v16  ;;  %v498_v41 = vadd.f32 %v490_v40, %v367_v17 }
  0xa8   :  { %v543_v21 = vrot.slane %v535_v12, %v1595_v3  ;;  %v624_v25 = vadd.f32 %v616_v2, %v493_v13  ;;  %v576_v62 = vrot.slane %v568_v23, %v1595_v3  ;;  %v675_v18 = vcombine.low %v1677_v46, %v1680_v48 }
  0xa9   :  { %v626_v49 = vadd.f32 %v618_v32, %v495_v38  ;;  %v1390_v23 = vmov 842150450  }
  0xaa   :  { %v617_v26 = vmul.f32 %v609_v54, %v543_v21  ;;  %v1692_v4 = vadd.f32 %v1652_v50, %v624_v25  ;;  %v620_v47 = vmul.f32 %v607_v36, %v576_v62  ;;  %v683_v53 = vrot.slane %v675_v18, %v1579_v59 }
  0xab   :  { %v557_v31 = vpop.permute.xlu1 %556  ;;  %v661_v29 = vadd.f32 %v1623_v20, %v626_v49  ;;  %v1293_v20 = vld [vmem:[%s1904_s3] ss:$0 sm:$0xff]  ;;  %v729_v24 = vunpack.c.l.s4 %v1390_v23  ;;  %v1392_v25 = vmov 1987475062  }
  0xac   :  { %v625_v35 = vadd.f32 %v617_v26, %v494_v7  ;;  %v565_v37 = vrot.slane %v557_v31, %v1595_v3  ;;  %v628_v43 = vadd.f32 %v620_v47, %v497_v9  ;;  %v736_v7 = vunpack.c.l.s4 %v1391_v45 }
  0xad   :  { %v743_v26 = vunpack.c.l.s4 %v1392_v25  ;;  %v730_v62 = vunpack.c.0.s8 %v729_v24  ;;  %v1369_v25 = vld [vmem:[%s1906_s10] sm:$0xff]  }
  0xae   :  { %v1694_v42 = vadd.f32 %v652_v58, %v625_v35  ;;  %v619_v19 = vmul.f32 %v1627_v22, %v565_v37  ;;  %v663_v60 = vadd.f32 %v1652_v50, %v628_v43  ;;  %v737_v27 = vunpack.c.0.s8 %v736_v7  ;;  %v1368_v7 = vld [vmem:[%s1906_s10 + $0x8] sm:$0xff]  }
  0xaf   :  { %v579_v44 = vpop.permute.xlu1 %578  ;;  %v744_v28 = vunpack.c.0.s8 %v743_v26  ;;  %v1725_v6 = vsub.s32 %v730_v62, %v1501_v11  ;;  %1340 = vmatpush3.bf16.msra.mxu0 %v1368_v7 }
  0xb0   :  { %v627_v51 = vadd.f32 %v619_v19, %v496_v39  ;;  %v587_v52 = vrot.slane %v579_v44, %v1595_v3  ;;  %v676_v33 = vcombine.low %v1692_v4, %v1694_v42  ;;  %v1728_v30 = vsub.s32 %v737_v27, %v1501_v11  ;;  %1341 = vmatprep.subr.bf16.mxu0 %v1384_v8 }
  0xb1   :  { %v1731_v31 = vsub.s32 %v744_v28, %v1501_v11 }
  0xb2   :  { %v1703_v55 = vadd.f32 %v1639_v34, %v627_v51  ;;  %v621_v36 = vmul.f32 %v609_v54, %v587_v52  ;;  %v690_v22 = vrot.slane %v676_v33, %v1579_v59 }
  0xb3   :  { %1342 = vmatpush3.bf16.msra.mxu0 %v1369_v25 }
  0xb4   :  { %v629_v56 = vadd.f32 %v621_v36, %v498_v41  ;;  %v691_v57 = vcombine.low %v683_v53, %v690_v22  ;;  %v692_v2 = vcombine.low %v661_v29, %v1703_v55 }
  0xb6   :  { %v664_v61 = vadd.f32 %v652_v58, %v629_v56  ;;  %v711_v1 = vsel %vm139_vm1, %v691_v57, 0.0  ;;  %v700_v5 = vrot.slane %v692_v2, %v1579_v59 }
  0xb7   :  { %712 = vadd.xlane.f32.xlu0 %v711_v1 }
  0xb8   :  { %v693_v63 = vcombine.low %v663_v60, %v664_v61 }
  0xba   :  { %v707_v34 = vrot.slane %v693_v63, %v1579_v59 }
  0xbc   :  { %v708_v54 = vcombine.low %v700_v5, %v707_v34 }
  0xbe   :  { %v714_v0 = vsel %vm139_vm1, %v708_v54, 0.0 }
  0xbf   :  { %715 = vadd.xlane.f32.xlu1 %v714_v0 }
  0xd1   :  { %v177_v50 = vpop.f32.mrf.mxu0 }
  0xd2   :  { %v1716_v58 = vadd.f32 %v1293_v20, %v177_v50 }
  0xd3   :  { %v1329_v10 = vpop.f32.mrf.mxu0 }
  0xd4   :  { %v186_v12 = vsel %vm139_vm1, %v1716_v58, 0.0 }
  0xd5   :  { %187 = vadd.xlane.f32.xlu0 %v186_v12  ;;  %v180_v13 = vpop.f32.mrf.mxu0 }
  0xd6   :  { %v1720_v14 = vadd.f32 %v1293_v20, %v180_v13 }
  0xd7   :  { %v1330_v15 = vpop.f32.mrf.mxu0 }
  0xd8   :  { %v189_v21 = vsel %vm139_vm1, %v1720_v14, 0.0 }
  0xd9   :  { %190 = vadd.xlane.f32.xlu0 %v189_v21 }
 0x140   :  { %v713_v16 = vpop.xlane.xlu0 %712 }
 0x141   :  { %v717_v32 = vmul.f32 0.03125, %v713_v16  ;;  %v1303_v16 = vld [vmem:[%s1907_s8] ss:$0 sm:$0xff] }
 0x143   :  { %v727_v35 = vrot.slane %v717_v32, %v1595_v3  ;;  %v734_v37 = vrot.slane %v717_v32, %v1725_v6  ;;  %v741_v38 = vrot.slane %v717_v32, %v1728_v30  ;;  %v748_v39 = vrot.slane %v717_v32, %v1731_v31 }
 0x145   :  { %v1738_v40 = vsub.f32 %v1677_v46, %v727_v35  ;;  %v1741_v18 = vsub.f32 %v1680_v48, %v734_v37  ;;  %v1744_v47 = vsub.f32 %v1692_v4, %v741_v38  ;;  %v1747_v11 = vsub.f32 %v1694_v42, %v748_v39  ;;  %v1304_v35 = vld [vmem:[%s1908_s9] ss:$0 sm:$0xff] }
 0x146   :  { %v936_v38 = vcombine.high %v1303_v16, %v1303_v16  ;;  %v970_v39 = vcombine.high %v1304_v35, %v1304_v35 }
 0x147   :  { %v793_v19 = vmul.f32 %v1738_v40, %v1738_v40  ;;  %v794_v17 = vmul.f32 %v1741_v18, %v1741_v18  ;;  %v795_v9 = vmul.f32 %v1744_v47, %v1744_v47  ;;  %v796_v46 = vmul.f32 %v1747_v11, %v1747_v11 }
 0x148   :  { %v716_v48 = vpop.xlane.xlu1 %715 }
 0x149   :  { %v718_v44 = vmul.f32 0.03125, %v716_v48  ;;  %v809_v49 = vcombine.low %v793_v19, %v794_v17  ;;  %v810_v4 = vcombine.low %v795_v9, %v796_v46  ;;  %v950_v19 = vrot.slane %v936_v38, %v1579_v59 }
 0x14a   :  { %v977_v17 = vrot.slane %v1304_v35, %v1579_v59  ;;  %v984_v9 = vrot.slane %v970_v39, %v1579_v59 }
 0x14b   :  { %v755_v51 = vrot.slane %v718_v44, %v1595_v3  ;;  %v762_v42 = vrot.slane %v718_v44, %v1725_v6  ;;  %v769_v52 = vrot.slane %v718_v44, %v1728_v30  ;;  %v776_v33 = vrot.slane %v718_v44, %v1731_v31 }
 0x14c   :  { %v817_v41 = vrot.slane %v809_v49, %v1579_v59  ;;  %v824_v53 = vrot.slane %v810_v4, %v1579_v59  ;;  %v952_v44 = vcombine.high %v950_v19, %v950_v19 }
 0x14d   :  { %v1763_v43 = vsub.f32 %v661_v29, %v755_v51  ;;  %v1766_v36 = vsub.f32 %v1703_v55, %v762_v42  ;;  %v1768_v22 = vsub.f32 %v663_v60, %v769_v52  ;;  %v1770_v56 = vsub.f32 %v664_v61, %v776_v33 }
 0x14e   :  { %v825_v57 = vcombine.low %v817_v41, %v824_v53  ;;  %v985_v52 = vcombine.high %v977_v17, %v977_v17  ;;  %v986_v33 = vcombine.high %v984_v9, %v984_v9 }
 0x14f   :  { %v797_v1 = vmul.f32 %v1763_v43, %v1763_v43  ;;  %v798_v2 = vmul.f32 %v1766_v36, %v1766_v36  ;;  %v799_v63 = vmul.f32 %v1768_v22, %v1768_v22  ;;  %v800_v29 = vmul.f32 %v1770_v56, %v1770_v56 }
 0x150   :  { %v845_v55 = vsel %vm139_vm1, %v825_v57, 0.0 }
 0x151   :  { %846 = vadd.xlane.f32.xlu1 %v845_v55  ;;  %v826_v60 = vcombine.low %v797_v1, %v798_v2  ;;  %v827_v5 = vcombine.low %v799_v63, %v800_v29 }
 0x153   :  { %v834_v61 = vrot.slane %v826_v60, %v1579_v59  ;;  %v841_v34 = vrot.slane %v827_v5, %v1579_v59 }
 0x155   :  { %v842_v54 = vcombine.low %v834_v61, %v841_v34 }
 0x157   :  { %v848_v0 = vsel %vm139_vm1, %v842_v54, 0.0 }
 0x158   :  { %849 = vadd.xlane.f32.xlu0 %v848_v0 }
 0x15e   :  { %v188_v20 = vpop.xlane.xlu0 %187 }
 0x15f   :  { %v193_v50 = vmul.f32 0.03125, %v188_v20 }
 0x161   :  { %v1785_v10 = vsub.f32 %v1716_v58, %v193_v50  ;;  %v1366_v58 = vld [vmem:[%s1905_s11 + $0x8] sm:$0xff]  }
 0x162   :  { %v191_v12 = vpop.xlane.xlu0 %190  ;;  %1332 = vmatpush3.bf16.msra.mxu1 %v1366_v58 }
 0x163   :  { %v194_v13 = vmul.f32 0.03125, %v191_v12  ;;  %v197_v15 = vmul.f32 %v1785_v10, %v1785_v10  ;;  %1333 = vmatprep.subr.bf16.mxu1 %v1384_v8  ;;  %v943_v8 = vrot.slane %v1303_v16, %v1579_v59 }
 0x165   :  { %v1790_v21 = vsub.f32 %v1720_v14, %v194_v13  ;;  %v199_v23 = vsel %vm139_vm1, %v197_v15, 0.0  ;;  %v1367_v14 = vld [vmem:[%s1905_s11] sm:$0xff]   ;;  %v951_v48 = vcombine.high %v943_v8, %v943_v8 }
 0x166   :  { %200 = vadd.xlane.f32.xlu1 %v199_v23  ;;  %1334 = vmatpush3.bf16.msra.mxu1 %v1367_v14 }
 0x167   :  { %v198_v24 = vmul.f32 %v1790_v21, %v1790_v21 }
 0x169   :  { %v202_v45 = vsel %vm139_vm1, %v198_v24, 0.0 }
 0x16a   :  { %203 = vadd.xlane.f32.xlu0 %v202_v45 }
 0x1da   :  { %v847_v26 = vpop.xlane.xlu1 %846 }
 0x1db   :  { %v851_v62 = vmul.f32 0.03125, %v847_v26 }
 0x1dd   :  { %v853_v27 = vadd.f32 1e-05, %v851_v62 }
 0x1df   :  { %1370 = vrsqrt.f32 %v853_v27 }
 0x1e1   :  { %v850_v28 = vpop.xlane.xlu0 %849 }
 0x1e2   :  { %v852_v32 = vmul.f32 0.03125, %v850_v28 }
 0x1e4   :  { %v854_v37 = vadd.f32 1e-05, %v852_v32 }
 0x1e6   :  { %1372 = vrsqrt.f32 %v854_v37 }
 0x1ec   :  { %v1371_v46 = vpop.eup %1370 }
 0x1ed   :  { %v865_v49 = vrot.slane %v1371_v46, %v1595_v3  ;;  %v872_v4 = vrot.slane %v1371_v46, %v1725_v6  ;;  %v879_v51 = vrot.slane %v1371_v46, %v1728_v30  ;;  %v886_v42 = vrot.slane %v1371_v46, %v1731_v31 }
 0x1ef   :  { %v923_v41 = vmul.f32 %v865_v49, %v1738_v40  ;;  %v924_v53 = vmul.f32 %v872_v4, %v1741_v18  ;;  %v925_v57 = vmul.f32 %v879_v51, %v1744_v47  ;;  %v926_v1 = vmul.f32 %v886_v42, %v1747_v11  ;;  %v201_v2 = vpop.xlane.xlu1 %200 }
 0x1f0   :  { %v205_v5 = vmul.f32 0.03125, %v201_v2 }
 0x1f1   :  { %v957_v63 = vmul.f32 %v943_v8, %v923_v41  ;;  %v958_v29 = vmul.f32 %v951_v48, %v924_v53  ;;  %v959_v55 = vmul.f32 %v950_v19, %v925_v57  ;;  %v960_v60 = vmul.f32 %v952_v44, %v926_v1 }
 0x1f2   :  { %v207_v50 = vadd.f32 1e-05, %v205_v5 }
 0x1f3   :  { %v1373_v61 = vpop.eup %1372  ;;  %v991_v34 = vadd.f32 %v977_v17, %v957_v63  ;;  %v992_v54 = vadd.f32 %v985_v52, %v958_v29  ;;  %v993_v0 = vadd.f32 %v984_v9, %v959_v55  ;;  %v994_v20 = vadd.f32 %v986_v33, %v960_v60  ;;  %v204_v12 = vpop.xlane.xlu0 %203 }
 0x1f4   :  { %v893_v40 = vrot.slane %v1373_v61, %v1595_v3  ;;  %v900_v18 = vrot.slane %v1373_v61, %v1725_v6  ;;  %v907_v47 = vrot.slane %v1373_v61, %v1728_v30  ;;  %v914_v11 = vrot.slane %v1373_v61, %v1731_v31  ;;  %v1311_v61 = vld [vmem:[%s1911_s12] ss:$0 sm:$0xff] }
 0x1f5   :  { %v1002_v13 = vmax.f32 %v991_v34, 0.0  ;;  %v1003_v15 = vmax.f32 %v992_v54, 0.0  ;;  %1374 = vrsqrt.f32 %v207_v50  ;;  %v206_v23 = vmul.f32 0.03125, %v204_v12 }
 0x1f6   :  { %v927_v24 = vmul.f32 %v893_v40, %v1763_v43  ;;  %v928_v45 = vmul.f32 %v900_v18, %v1766_v36  ;;  %v929_v58 = vmul.f32 %v907_v47, %v1768_v22  ;;  %v930_v14 = vmul.f32 %v914_v11, %v1770_v56 }
 0x1f7   :  { %v1004_v3 = vmax.f32 %v993_v0, 0.0  ;;  %v1005_v7 = vmax.f32 %v994_v20, 0.0  ;;  %v208_v6 = vadd.f32 1e-05, %v206_v23  ;;  %v1018_v32 = vcombine.low %v1002_v13, %v1003_v15 }
 0x1f8   :  { %v961_v25 = vmul.f32 %v943_v8, %v927_v24  ;;  %v962_v30 = vmul.f32 %v951_v48, %v928_v45  ;;  %v963_v26 = vmul.f32 %v950_v19, %v929_v58  ;;  %v964_v62 = vmul.f32 %v952_v44, %v930_v14  ;;  %v1297_v44 = vld [vmem:[%s1909_s4] ss:$0 sm:$0xff] }
 0x1f9   :  { %1376 = vrsqrt.f32 %v208_v6  ;;  %v1019_v43 = vcombine.low %v1004_v3, %v1005_v7  ;;  %v1026_v56 = vrot.slane %v1018_v32, %v1579_v59 }
 0x1fa   :  { %v995_v31 = vadd.f32 %v977_v17, %v961_v25  ;;  %v996_v27 = vadd.f32 %v985_v52, %v962_v30  ;;  %v997_v28 = vadd.f32 %v984_v9, %v963_v26  ;;  %v998_v16 = vadd.f32 %v986_v33, %v964_v62  ;;  %v1298_v52 = vld [vmem:[%s1910_s5] ss:$0 sm:$0xff] }
 0x1fb   :  { %v1033_v39 = vrot.slane %v1019_v43, %v1579_v59 }
 0x1fc   :  { %v1006_v35 = vmax.f32 %v995_v31, 0.0  ;;  %v1007_v36 = vmax.f32 %v996_v27, 0.0  ;;  %v1008_v37 = vmax.f32 %v997_v28, 0.0  ;;  %v1009_v22 = vmax.f32 %v998_v16, 0.0  ;;  %v1312_v27 = vld [vmem:[%s1912_s13] ss:$0 sm:$0xff] }
 0x1fd   :  { %v1034_v48 = vcombine.low %v1026_v56, %v1033_v39  ;;  %v1313_v16 = vld [vmem:[%s1913_s14] ss:$0 sm:$0xff] }
 0x1fe   :  { %v1035_v38 = vcombine.low %v1006_v35, %v1007_v36  ;;  %v1036_v8 = vcombine.low %v1008_v37, %v1009_v22 }
 0x200   :  { %v1043_v19 = vrot.slane %v1035_v38, %v1579_v59  ;;  %v1050_v46 = vrot.slane %v1036_v8, %v1579_v59 }
 0x202   :  { %v1375_v17 = vpop.eup %1374  ;;  %v1051_v9 = vcombine.low %v1043_v19, %v1050_v46 }
 0x203   :  { %v211_v49 = vmul.f32 %v1375_v17, %v1785_v10 }
 0x204   :  { %v1054_v4 = vpack.c.bf16 %v1051_v9, %v1034_v48 }
 0x205   :  { %v219_v51 = vmul.f32 %v1297_v44, %v211_v49 }
 0x206   :  { %v1377_v42 = vpop.eup %1376  ;;  %1336 = vmatmul.mubr.msk.bf16.vlgmr.msra.gmra.mxu1 %vm139_vm1, %v1054_v4 }
 0x207   :  { %v212_v33 = vmul.f32 %v1377_v42, %v1790_v21  ;;  %v227_v53 = vadd.f32 %v1298_v52, %v219_v51 }
 0x209   :  { %v220_v41 = vmul.f32 %v1297_v44, %v212_v33  ;;  %v999_v1 = vmax.f32 %v227_v53, 0.0 }
 0x20b   :  { %v228_v57 = vadd.f32 %v1298_v52, %v220_v41 }
 0x20d   :  { %v1000_v2 = vmax.f32 %v228_v57, 0.0 }
 0x20f   :  { %v1001_v63 = vpack.c.bf16 %v1000_v2, %v999_v1 }
 0x211   :  { %1344 = vmatmul.mubr.msk.bf16.vlgmr.msra.gmra.mxu0 %vm139_vm1, %v1001_v63 }
 0x2c6   :  { %v1112_v10 = vpop.f32.mrf.mxu1 }
 0x2c8   :  { %v1337_v29 = vpop.f32.mrf.mxu1 }
 0x2ca   :  { %v1115_v55 = vpop.f32.mrf.mxu1 }
 0x2cc   :  { %v1338_v60 = vpop.f32.mrf.mxu1 }
 0x2d1   :  { %v1168_v5 = vpop.f32.mrf.mxu0 }
 0x2d2   :  { %v1169_v34 = vadd.f32 %v1168_v5, %v1112_v10 }
 0x2d3   :  { %v1345_v54 = vpop.f32.mrf.mxu0 }
 0x2d4   :  { %v1182_v21 = vadd.f32 %v1311_v61, %v1169_v34 }
 0x2d5   :  { %v1171_v0 = vpop.f32.mrf.mxu0 }
 0x2d6   :  { %v1172_v20 = vadd.f32 %v1171_v0, %v1115_v55  ;;  %v1186_v50 = vsel %vm139_vm1, %v1182_v21, 0.0 }
 0x2d7   :  { %1187 = vadd.xlane.f32.xlu1 %v1186_v50  ;;  %v1346_v40 = vpop.f32.mrf.mxu0 }
 0x2d8   :  { %v1183_v18 = vadd.f32 %v1311_v61, %v1172_v20 }
 0x2da   :  { %v1189_v47 = vsel %vm139_vm1, %v1183_v18, 0.0 }
 0x2db   :  { %1190 = vadd.xlane.f32.xlu0 %v1189_v47 }
 0x360   :  { %v1188_v12 = vpop.xlane.xlu1 %1187 }
 0x361   :  { %v1192_v11 = vmul.f32 0.03125, %v1188_v12 }
 0x363   :  { %v1194_v13 = vsub.f32 %v1182_v21, %v1192_v11 }
 0x364   :  { %v1191_v15 = vpop.xlane.xlu0 %1190 }
 0x365   :  { %v1193_v23 = vmul.f32 0.03125, %v1191_v15  ;;  %v1196_v24 = vmul.f32 %v1194_v13, %v1194_v13 }
 0x367   :  { %v1195_v45 = vsub.f32 %v1183_v18, %v1193_v23  ;;  %v1198_v58 = vsel %vm139_vm1, %v1196_v24, 0.0 }
 0x368   :  { %1199 = vadd.xlane.f32.xlu1 %v1198_v58 }
 0x369   :  { %v1197_v14 = vmul.f32 %v1195_v45, %v1195_v45 }
 0x36b   :  { %v1201_v3 = vsel %vm139_vm1, %v1197_v14, 0.0 }
 0x36c   :  { %1202 = vadd.xlane.f32.xlu0 %v1201_v3 }
 0x3f1   :  { %v1200_v7 = vpop.xlane.xlu1 %1199 }
 0x3f2   :  { %v1204_v6 = vmul.f32 0.03125, %v1200_v7 }
 0x3f4   :  { %v1206_v25 = vadd.f32 1e-05, %v1204_v6 }
 0x3f5   :  { %v1203_v30 = vpop.xlane.xlu0 %1202 }
 0x3f6   :  { %1378 = vrsqrt.f32 %v1206_v25  ;;  %v1205_v26 = vmul.f32 0.03125, %v1203_v30 }
 0x3f8   :  { %v1207_v62 = vadd.f32 1e-05, %v1205_v26 }
 0x3fa   :  { %1380 = vrsqrt.f32 %v1207_v62 }
 0x403   :  { %v1379_v31 = vpop.eup %1378 }
 0x404   :  { %v1210_v28 = vmul.f32 %v1379_v31, %v1194_v13 }
 0x406   :  { %v1218_v32 = vmul.f32 %v1312_v27, %v1210_v28 }
 0x407   :  { %v1381_v43 = vpop.eup %1380 }
 0x408   :  { %v1226_v35 = vadd.f32 %v1313_v16, %v1218_v32  ;;  %v1211_v36 = vmul.f32 %v1381_v43, %v1195_v45 }
 0x40a   :  { %v1230_v37 = vcombine.high %v1226_v35, %v1226_v35  ;;  %v1237_v22 = vrot.slane %v1226_v35, %v1579_v59  ;;  %v1219_v38 = vmul.f32 %v1312_v27, %v1211_v36 }
 0x40c   :  { %v1244_v56 = vrot.slane %v1230_v37, %v1579_v59  ;;  %v1245_v39 = vcombine.high %v1237_v22, %v1237_v22  ;;  %v1272_v8 = vpack.c.bf16 %v1237_v22, %v1237_v22  ;;  %v1227_v19 = vadd.f32 %v1313_v16, %v1219_v38 }
 0x40e   :  { %v1246_v46 = vcombine.high %v1244_v56, %v1244_v56  ;;  %v1273_v17 = vpack.c.bf16 %v1245_v39, %v1245_v39  ;;  %v1274_v48 = vpack.c.bf16 %v1244_v56, %v1244_v56  ;;  %1281 = vst.msk [vmem:[%s1914_s15] sm:$0x1] %vm1280_vm2, %v1272_v8  ;;  %v1247_v9 = vcombine.high %v1227_v19, %v1227_v19 }
 0x40f   :  { %v1254_v44 = vrot.slane %v1227_v19, %v1579_v59 }
 0x410   :  { %v1275_v49 = vpack.c.bf16 %v1246_v46, %v1246_v46  ;;  %1282 = vst.msk [vmem:[%s1914_s15 + $0x1] sm:$0x1] %vm1280_vm2, %v1273_v17  ;;  %1283 = vst.msk [vmem:[%s1914_s15 + $0x2] sm:$0x1] %vm1280_vm2, %v1274_v48  ;;  %v1261_v4 = vrot.slane %v1247_v9, %v1579_v59 }
 0x411   :  { %v1262_v51 = vcombine.high %v1254_v44, %v1254_v44  ;;  %v1276_v42 = vpack.c.bf16 %v1254_v44, %v1254_v44 }
 0x412   :  { %1284 = vst.msk [vmem:[%s1914_s15 + $0x3] sm:$0x1] %vm1280_vm2, %v1275_v49  ;;  %v1263_v52 = vcombine.high %v1261_v4, %v1261_v4  ;;  %v1278_v33 = vpack.c.bf16 %v1261_v4, %v1261_v4 }
 0x413   :  { %v1277_v41 = vpack.c.bf16 %v1262_v51, %v1262_v51  ;;  %1285 = vst.msk [vmem:[%s1914_s15 + $0x4] sm:$0x1] %vm1280_vm2, %v1276_v42 }
 0x414   :  { %v1279_v53 = vpack.c.bf16 %v1263_v52, %v1263_v52  ;;  %1287 = vst.msk [vmem:[%s1914_s15 + $0x6] sm:$0x1] %vm1280_vm2, %v1278_v33 }
 0x415   :  { %1286 = vst.msk [vmem:[%s1914_s15 + $0x5] sm:$0x1] %vm1280_vm2, %v1277_v41 }
 0x416   :  { %1288 = vst.msk [vmem:[%s1914_s15 + $0x7] sm:$0x1] %vm1280_vm2, %v1279_v53 }

// kernel: lstm_forward.3
= control target key start
LH: loop header
LB: loop body
LE: loop exit
PB: predicated region body
PF: predicated region fallthrough
CT: control target
= control target key end

     0   :  { %s3490_s0 = inlined_call_operand.vmem [shape: bf16[8,2,32], index: 0, kind: input, shape index: {}]   ;;  %s3491_s1 = inlined_call_operand.vmem [shape: bf16[2,32,128], index: 1, kind: input, shape index: {}]   ;;  %s3492_s2 = inlined_call_operand.vmem [shape: bf16[2,32,128], index: 2, kind: input, shape index: {}]   ;;  %s3493_s3 = inlined_call_operand.vmem [shape: f32[2,1,128], index: 3, kind: input, shape index: {}]   ;;  %s3494_s4 = inlined_call_operand.vmem [shape: f32[1,32], index: 4, kind: input, shape index: {}]   ;;  %s3495_s5 = inlined_call_operand.<no memory space> [shape: f32[1,1], index: 5, kind: input, shape index: {}]   ;;  %s3496_s6 = inlined_call_operand.hbm [shape: f32[2,8], index: 6, kind: output, shape index: {}]  }
   0x1   :  { %v11_v0 = vstv %s3495_s5 }
   0x2   :  { %12 = vst [vmem:[#allocation6] sm:$0x1] %v11_v0 }
   0x3   :  { %v2798_v1 = vld [vmem:[%s3491_s1 + $0x8] sm:$0xff]   ;;  %v2984_v2 = vmov 0.0   ;;  %v2799_v3 = vld [vmem:[%s3491_s1] sm:$0xff]   ;;  %vm2985_vm0 = vmmov 0   ;;  %v71_v5 = vlaneseq  ;;  %v2986_v14 = vmov 1966171168  }
   0x4   :  { %2643 = vmatprep.subr.bf16.mxu0 %v2984_v2  ;;  %2651 = vmatprep.subr.bf16.mxu1 %v2984_v2  ;;  %v2800_v4 = vld [vmem:[%s3492_s2 + $0x8] sm:$0xff]   ;;  %v37_v6 = vld [vmem:[%s3490_s0] sm:$0x1]  ;;  %v38_v7 = vld [vmem:[%s3490_s0 + $0x1] sm:$0x1]  ;;  %v69_v15 = vunpack.c.l.s4 %v2986_v14  ;;  %vm125_vm1 = vcmask 261120  }
   0x5   :  { %2644 = vmatpush3.bf16.msra.mxu0 %v2798_v1  ;;  %2647 = vmatprep.mubr.msk.bf16.mxu0 %vm2985_vm0, %v2984_v2  ;;  %v39_v8 = vld [vmem:[%s3490_s0 + $0x2] sm:$0x1]  ;;  %v40_v9 = vld [vmem:[%s3490_s0 + $0x3] sm:$0x1]  ;;  %v41_v10 = vld [vmem:[%s3490_s0 + $0x4] sm:$0x1]  ;;  %v64_v18 = vcombine.low %v37_v6, %v38_v7 }
   0x6   :  { %2645 = vmatprep.subr.bf16.mxu0 %v2984_v2  ;;  %2655 = vmatprep.mubr.msk.bf16.mxu1 %vm2985_vm0, %v2984_v2  ;;  %v42_v11 = vld [vmem:[%s3490_s0 + $0x5] sm:$0x1]  ;;  %v43_v12 = vld [vmem:[%s3490_s0 + $0x6] sm:$0x1]  ;;  %v44_v13 = vld [vmem:[%s3490_s0 + $0x7] sm:$0x1]  ;;  %v65_v19 = vcombine.low %v39_v8, %v40_v9  ;;  %v70_v22 = vunpack.c.0.s8 %v69_v15 }
   0x7   :  { %2652 = vmatpush3.bf16.msra.mxu1 %v2800_v4  ;;  %v3073_v16 = vshrl.u32 %v71_v5, 7  ;;  %v2801_v17 = vld [vmem:[%s3492_s2] sm:$0xff]   ;;  %vm31_vm2 = vcmask 253952   ;;  %v66_v20 = vcombine.low %v41_v10, %v42_v11  ;;  %v67_v21 = vcombine.low %v43_v12, %v44_v13 }
   0x8   :  { %2653 = vmatprep.subr.bf16.mxu1 %v2984_v2  ;;  %v2987_v23 = vmov 0  }
   0x9   :  { %2646 = vmatpush3.bf16.msra.mxu0 %v2799_v3  ;;  %32 = vst.msk [vmem:[#allocation2] sm:$0x1] %vm31_vm2, %v2987_v23  ;;  %33 = vst.msk [vmem:[#allocation2 + $0x1] sm:$0x1] %vm31_vm2, %v2987_v23  ;;  %2796 = vset.pattern.permute.xlu1 %v2987_v23  ;;  %v3083_v24 = vsub.s32 %v70_v22, %v3073_v16 }
   0xa   :  { %2659 = vmatprep.subr.bf16.mxu0 %v2984_v2  ;;  %2797 = vset.pattern.permute.xlu0 %v2987_v23 }
   0xb   :  { %2654 = vmatpush3.bf16.msra.mxu1 %v2801_v17  ;;  %v74_v25 = vrot.slane %v64_v18, %v3083_v24  ;;  %v81_v26 = vrot.slane %v65_v19, %v3083_v24  ;;  %v88_v27 = vrot.slane %v66_v20, %v3083_v24  ;;  %v95_v28 = vrot.slane %v67_v21, %v3083_v24 }
   0xc   :  { %2667 = vmatprep.subr.bf16.mxu1 %v2984_v2 }
   0xd   :  { %v96_v29 = vcombine.low %v74_v25, %v81_v26  ;;  %v97_v30 = vcombine.low %v88_v27, %v95_v28 }
   0xf   :  { %v104_v32 = vrot.slane %v96_v29, %v3083_v24  ;;  %v111_v33 = vrot.slane %v97_v30, %v3083_v24 }
  0x10   :  { %v223_v31 = vld [vmem:[#allocation2] sm:$0x1] }
  0x11   :  { %2656 = vmatmul.mubr.msk.bf16.vlgmr.msra.gmra.mxu1 %vm125_vm1, %v223_v31  ;;  %v112_v34 = vcombine.low %v104_v32, %v111_v33 }
  0x12   :  { %2671 = vmatprep.mubr.msk.bf16.mxu1 %vm2985_vm0, %v2984_v2 }
  0x13   :  { %2648 = vmatmul.mubr.msk.bf16.vlgmr.msra.gmra.mxu0 %vm125_vm1, %v112_v34 }
  0x14   :  { %2663 = vmatprep.mubr.msk.bf16.mxu0 %vm2985_vm0, %v2984_v2 }
  0x15   :  { %13 = vsyncpa [#allocation8], 0  ;;  %vm34_vm3 = vcmask 254976   ;;  %v2988_v35 = vmov 1983009808   ;;  %s2989_s23 = smov 64  }
  0x16   :  { %35 = vst.msk [vmem:[#allocation3] sm:$0x3] %vm34_vm3, %v2984_v2  ;;  %36 = vst.msk [vmem:[#allocation3 + $0x2] sm:$0x3] %vm34_vm3, %v2984_v2  ;;  %v174_v36 = vunpack.c.l.s4 %v2988_v35  ;;  %v2470_v39 = vld [vmem:[%s3493_s3] ss:$0 sm:$0xff] }
  0x17   :  { %s2990_s24 = smov 32   ;;  %s2991_s25 = smov 96   ;;  %v2802_v13 = vld [vmem:[%s3492_s2 + $0x8] sm:$0xff]   ;;  %v2803_v14 = vld [vmem:[%s3492_s2] sm:$0xff]   ;;  %vm2396_vm4 = vcmask 1041409   ;;  %vm2398_vm5 = vcmask 1042434  }
  0x18   :  { %v175_v37 = vunpack.c.0.s8 %v174_v36  ;;  %2660 = vmatpush3.bf16.msra.mxu0 %v2802_v13  ;;  %v2807_v13 = vld [vmem:[%s3492_s2] sm:$0xff]   ;;  %vm2400_vm6 = vcmask 1043459   ;;  %vm2402_vm7 = vcmask 1044484   ;;  %vm2404_vm8 = vcmask 1045509  }
  0x19   :  { %2661 = vmatprep.subr.bf16.mxu0 %v2984_v2  ;;  %vm2406_vm9 = vcmask 1046534   ;;  %vm2408_vm10 = vcmask 1047559   ;;  %vm2454_vm11 = vcmask 58368  }
  0x1a   :  { %v3105_v41 = vsub.s32 %v175_v37, %v3073_v16 }
  0x1c   :  { %2662 = vmatpush3.bf16.msra.mxu0 %v2803_v14 }
  0x1d   :  { %v291_v63 = vld [vmem:[#allocation3] sm:$0x3]  ;;  %2675 = vmatprep.subr.bf16.mxu0 %v2984_v2 }
  0xd1   :  { %v277_v38 = vpop.f32.mrf.mxu1 }
  0xd3   :  { %v2657_v40 = vpop.f32.mrf.mxu1  ;;  %v163_v42 = vpop.f32.mrf.mxu0 }
  0xd4   :  { %v164_v44 = vadd.f32 %v2470_v39, %v163_v42 }
  0xd5   :  { %v280_v43 = vpop.f32.mrf.mxu1  ;;  %v2649_v45 = vpop.f32.mrf.mxu0 }
  0xd6   :  { %v172_v47 = vcombine.high %v164_v44, %v164_v44  ;;  %v179_v48 = vrot.slane %v164_v44, %v3105_v41  ;;  %2474 = vst.sshfl [vmem:[#allocation5] sm:$0x3 pattern:$0x76325410] %v164_v44  ;;  %v2804_v45 = vld [vmem:[%s3492_s2 + $0x8] sm:$0xff]  }
  0xd7   :  { %v2658_v46 = vpop.f32.mrf.mxu1  ;;  %v166_v49 = vpop.f32.mrf.mxu0  ;;  %2668 = vmatpush3.bf16.msra.mxu1 %v2804_v45  ;;  %v2809_v45 = vld [vmem:[%s3492_s2] sm:$0xff]  }
  0xd8   :  { %v186_v50 = vrot.slane %v172_v47, %v3105_v41  ;;  %v187_v51 = vcombine.high %v179_v48, %v179_v48  ;;  %2475 = vst.sshfl [vmem:[#allocation5 + $0x4] sm:$0x3 pattern:$0x76325410] %v172_v47  ;;  %v167_v52 = vadd.f32 %v2470_v39, %v166_v49  ;;  %2669 = vmatprep.subr.bf16.mxu1 %v2984_v2  ;;  %v2805_v46 = vld [vmem:[%s3492_s2] sm:$0xff]  }
  0xd9   :  { %v2650_v53 = vpop.f32.mrf.mxu0 }
  0xda   :  { %v188_v54 = vcombine.high %v186_v50, %v186_v50  ;;  %215 = vst [vmem:[#allocation5 + $0x2] sm:$0x3] %v187_v51  ;;  %v189_v55 = vcombine.high %v167_v52, %v167_v52  ;;  %v196_v56 = vrot.slane %v167_v52, %v3105_v41  ;;  %2476 = vst.sshfl [vmem:[#allocation5 + $0x8] sm:$0x3 pattern:$0x76325410] %v167_v52 }
  0xdb   :  { %2670 = vmatpush3.bf16.msra.mxu1 %v2805_v46 }
  0xdc   :  { %217 = vst [vmem:[#allocation5 + $0x6] sm:$0x3] %v188_v54  ;;  %v203_v57 = vrot.slane %v189_v55, %v3105_v41  ;;  %v204_v58 = vcombine.high %v196_v56, %v196_v56  ;;  %2477 = vst.sshfl [vmem:[#allocation5 + $0xc] sm:$0x3 pattern:$0x76325410] %v189_v55  ;;  %2683 = vmatprep.subr.bf16.mxu1 %v2984_v2 }
  0xdd   :  { %v222_v59 = vld [vmem:[#allocation5] sm:$0x3] }
  0xde   :  { %v205_v60 = vcombine.high %v203_v57, %v203_v57  ;;  %219 = vst [vmem:[#allocation5 + $0xa] sm:$0x3] %v204_v58  ;;  %v283_v61 = vadd.f32 %v277_v38, %v222_v59 }
  0xdf   :  { %v461_v56 = vld [vmem:[#allocation5 + $0x4] sm:$0x3] }
  0xe0   :  { %221 = vst [vmem:[#allocation5 + $0xe] sm:$0x3] %v205_v60  ;;  %2834 = vtanh.f32 %v283_v61  ;;  %v2481_v0 = vmul.f32 -1.442695, %v283_v61 }
  0xe1   :  { %v342_v26 = vld [vmem:[#allocation5 + $0x2] sm:$0x3] }
  0xe2   :  { %2836 = vpow2.f32 %v2481_v0 }
  0xed   :  { %v2835_v62 = vpop.eup %2834 }
  0xee   :  { %298 = vrot.lane.b32.xlu0 %v2835_v62, %s2989_s23 }
  0xef   :  { %v2837_v1 = vpop.eup %2836 }
  0xf0   :  { %v287_v3 = vadd.f32 1.0, %v2837_v1 }
  0xf2   :  { %293 = vrot.lane.b32.xlu0 %v291_v63, %s2990_s24  ;;  %2838 = vrcp.f32 %v287_v3 }
  0xff   :  { %v2839_v4 = vpop.eup %2838 }
 0x160   :  { %v299_v6 = vpop.permute.xlu0 %298 }
 0x161   :  { %v301_v7 = vmul.f32 %v2839_v4, %v299_v6 }
 0x163   :  { %303 = vrot.lane.b32.xlu1 %v301_v7, %s2990_s24 }
 0x164   :  { %v294_v8 = vpop.permute.xlu0 %293 }
 0x165   :  { %v296_v9 = vmul.f32 %v2839_v4, %v294_v8 }
 0x1d5   :  { %v304_v10 = vpop.permute.xlu1 %303 }
 0x1d6   :  { %v306_v11 = vadd.f32 %v304_v10, %v296_v9 }
 0x1d8   :  { %2840 = vtanh.f32 %v306_v11 }
 0x1e5   :  { %v2841_v12 = vpop.eup %2840 }
 0x1e6   :  { %309 = vrot.lane.b32.xlu1 %v2841_v12, %s2989_s23  ;;  %v2806_v12 = vld [vmem:[%s3492_s2 + $0x8] sm:$0xff]  }
 0x1ea   :  { %314 = vrot.lane.b32.xlu1 %v306_v11, %s2991_s25 }
 0x258   :  { %v310_v15 = vpop.permute.xlu1 %309 }
 0x259   :  { %v312_v17 = vmul.f32 %v2839_v4, %v310_v15 }
 0x25b   :  { %v319_v18 = vpack.c.bf16 %v312_v17, %v312_v17 }
 0x25c   :  { %v315_v19 = vpop.permute.xlu1 %314 }
 0x25d   :  { %v327_v20 = vrot.slane %v319_v18, %v3083_v24  ;;  %318 = vst.msk [vmem:[#allocation3] sm:$0x3] %vm34_vm3, %v315_v19 }
 0x25f   :  { %v334_v21 = vrot.slane %v327_v20, %v3083_v24 }
 0x261   :  { %335 = vrot.lane.b32.xlu0 %v334_v21, %s2990_s24 }
 0x264   :  { %v411_v22 = vld [vmem:[#allocation3] sm:$0x3] }
 0x265   :  { %413 = vrot.lane.b32.xlu1 %v411_v22, %s2990_s24 }
 0x2d3   :  { %v336_v23 = vpop.permute.xlu0 %335 }
 0x2d4   :  { %339 = vst.msk [vmem:[#allocation2] sm:$0x1] %vm31_vm2, %v336_v23  ;;  %340 = vst.msk [vmem:[#allocation4] sm:$0x1] %vm31_vm2, %v336_v23 }
 0x2d7   :  { %v414_v39 = vpop.permute.xlu1 %413 }
 0x2db   :  { %v343_v25 = vld [vmem:[#allocation2] sm:$0x1] }
 0x2dc   :  { %2664 = vmatmul.mubr.msk.bf16.vlgmr.msra.gmra.mxu0 %vm125_vm1, %v343_v25  ;;  %v580_v25 = vld [vmem:[#allocation5 + $0x6] sm:$0x3] }
 0x2dd   :  { %2679 = vmatprep.mubr.msk.bf16.mxu0 %vm2985_vm0, %v2984_v2  ;;  %2676 = vmatpush3.bf16.msra.mxu0 %v2806_v12  ;;  %v2811_v12 = vld [vmem:[%s3492_s2] sm:$0xff]  }
 0x2de   :  { %2677 = vmatprep.subr.bf16.mxu0 %v2984_v2 }
 0x2e1   :  { %2678 = vmatpush3.bf16.msra.mxu0 %v2807_v13 }
 0x2e2   :  { %2691 = vmatprep.subr.bf16.mxu0 %v2984_v2 }
 0x39c   :  { %v397_v27 = vpop.f32.mrf.mxu0 }
 0x39d   :  { %v403_v28 = vadd.f32 %v397_v27, %v342_v26 }
 0x39e   :  { %v2665_v29 = vpop.f32.mrf.mxu0 }
 0x39f   :  { %2842 = vtanh.f32 %v403_v28  ;;  %v2485_v33 = vmul.f32 -1.442695, %v403_v28 }
 0x3a0   :  { %v400_v30 = vpop.f32.mrf.mxu0 }
 0x3a1   :  { %2844 = vpow2.f32 %v2485_v33 }
 0x3a2   :  { %v2666_v31 = vpop.f32.mrf.mxu0 }
 0x3ac   :  { %v2843_v32 = vpop.eup %2842 }
 0x3ad   :  { %418 = vrot.lane.b32.xlu0 %v2843_v32, %s2989_s23 }
 0x3ae   :  { %v2845_v34 = vpop.eup %2844 }
 0x3af   :  { %v407_v35 = vadd.f32 1.0, %v2845_v34 }
 0x3b1   :  { %2846 = vrcp.f32 %v407_v35 }
 0x3be   :  { %v2847_v36 = vpop.eup %2846 }
 0x3bf   :  { %v416_v40 = vmul.f32 %v2847_v36, %v414_v39 }
 0x41f   :  { %v419_v37 = vpop.permute.xlu0 %418 }
 0x420   :  { %v421_v38 = vmul.f32 %v2847_v36, %v419_v37 }
 0x422   :  { %423 = vrot.lane.b32.xlu0 %v421_v38, %s2990_s24 }
 0x494   :  { %v424_v42 = vpop.permute.xlu0 %423 }
 0x495   :  { %v426_v43 = vadd.f32 %v424_v42, %v416_v40 }
 0x497   :  { %2848 = vtanh.f32 %v426_v43 }
 0x4a4   :  { %v2849_v44 = vpop.eup %2848 }
 0x4a5   :  { %429 = vrot.lane.b32.xlu1 %v2849_v44, %s2989_s23  ;;  %v2808_v44 = vld [vmem:[%s3492_s2 + $0x8] sm:$0xff]  }
 0x4a9   :  { %434 = vrot.lane.b32.xlu1 %v426_v43, %s2991_s25 }
 0x517   :  { %v430_v47 = vpop.permute.xlu1 %429 }
 0x518   :  { %v432_v48 = vmul.f32 %v2847_v36, %v430_v47 }
 0x51a   :  { %v438_v49 = vpack.c.bf16 %v432_v48, %v432_v48 }
 0x51b   :  { %v435_v50 = vpop.permute.xlu1 %434 }
 0x51c   :  { %v446_v51 = vrot.slane %v438_v49, %v3083_v24  ;;  %437 = vst.msk [vmem:[#allocation3] sm:$0x3] %vm34_vm3, %v435_v50 }
 0x51e   :  { %v453_v52 = vrot.slane %v446_v51, %v3083_v24 }
 0x520   :  { %454 = vrot.lane.b32.xlu0 %v453_v52, %s2990_s24 }
 0x523   :  { %v530_v53 = vld [vmem:[#allocation3] sm:$0x3] }
 0x524   :  { %532 = vrot.lane.b32.xlu1 %v530_v53, %s2990_s24 }
 0x592   :  { %v455_v54 = vpop.permute.xlu0 %454 }
 0x593   :  { %457 = vst.msk [vmem:[#allocation2] sm:$0x1] %vm31_vm2, %v455_v54  ;;  %459 = vst.msk [vmem:[#allocation4 + $0x1] sm:$0x1] %vm31_vm2, %v455_v54 }
 0x596   :  { %v533_v7 = vpop.permute.xlu1 %532 }
 0x59a   :  { %v462_v55 = vld [vmem:[#allocation2] sm:$0x1] }
 0x59b   :  { %2672 = vmatmul.mubr.msk.bf16.vlgmr.msra.gmra.mxu1 %vm125_vm1, %v462_v55  ;;  %v699_v55 = vld [vmem:[#allocation5 + $0x8] sm:$0x3] }
 0x59c   :  { %2687 = vmatprep.mubr.msk.bf16.mxu1 %vm2985_vm0, %v2984_v2  ;;  %2684 = vmatpush3.bf16.msra.mxu1 %v2808_v44  ;;  %v2813_v44 = vld [vmem:[%s3492_s2] sm:$0xff]  }
 0x59d   :  { %2685 = vmatprep.subr.bf16.mxu1 %v2984_v2 }
 0x5a0   :  { %2686 = vmatpush3.bf16.msra.mxu1 %v2809_v45 }
 0x5a1   :  { %2699 = vmatprep.subr.bf16.mxu1 %v2984_v2 }
 0x65b   :  { %v516_v57 = vpop.f32.mrf.mxu1 }
 0x65c   :  { %v522_v58 = vadd.f32 %v516_v57, %v461_v56 }
 0x65d   :  { %v2673_v59 = vpop.f32.mrf.mxu1 }
 0x65e   :  { %2850 = vtanh.f32 %v522_v58  ;;  %v2489_v63 = vmul.f32 -1.442695, %v522_v58 }
 0x65f   :  { %v519_v60 = vpop.f32.mrf.mxu1 }
 0x660   :  { %2852 = vpow2.f32 %v2489_v63 }
 0x661   :  { %v2674_v61 = vpop.f32.mrf.mxu1 }
 0x66b   :  { %v2851_v62 = vpop.eup %2850 }
 0x66c   :  { %537 = vrot.lane.b32.xlu0 %v2851_v62, %s2989_s23 }
 0x66d   :  { %v2853_v0 = vpop.eup %2852 }
 0x66e   :  { %v526_v1 = vadd.f32 1.0, %v2853_v0 }
 0x670   :  { %2854 = vrcp.f32 %v526_v1 }
 0x67d   :  { %v2855_v3 = vpop.eup %2854 }
 0x67e   :  { %v535_v8 = vmul.f32 %v2855_v3, %v533_v7 }
 0x6de   :  { %v538_v4 = vpop.permute.xlu0 %537 }
 0x6df   :  { %v540_v6 = vmul.f32 %v2855_v3, %v538_v4 }
 0x6e1   :  { %542 = vrot.lane.b32.xlu0 %v540_v6, %s2990_s24 }
 0x753   :  { %v543_v9 = vpop.permute.xlu0 %542 }
 0x754   :  { %v545_v10 = vadd.f32 %v543_v9, %v535_v8 }
 0x756   :  { %2856 = vtanh.f32 %v545_v10 }
 0x763   :  { %v2857_v11 = vpop.eup %2856 }
 0x764   :  { %548 = vrot.lane.b32.xlu1 %v2857_v11, %s2989_s23  ;;  %v2810_v11 = vld [vmem:[%s3492_s2 + $0x8] sm:$0xff]  }
 0x768   :  { %553 = vrot.lane.b32.xlu1 %v545_v10, %s2991_s25 }
 0x7d6   :  { %v549_v14 = vpop.permute.xlu1 %548 }
 0x7d7   :  { %v551_v15 = vmul.f32 %v2855_v3, %v549_v14 }
 0x7d9   :  { %v557_v17 = vpack.c.bf16 %v551_v15, %v551_v15 }
 0x7da   :  { %v554_v18 = vpop.permute.xlu1 %553 }
 0x7db   :  { %v565_v19 = vrot.slane %v557_v17, %v3083_v24  ;;  %556 = vst.msk [vmem:[#allocation3] sm:$0x3] %vm34_vm3, %v554_v18 }
 0x7dd   :  { %v572_v20 = vrot.slane %v565_v19, %v3083_v24 }
 0x7df   :  { %573 = vrot.lane.b32.xlu0 %v572_v20, %s2990_s24 }
 0x7e2   :  { %v649_v21 = vld [vmem:[#allocation3] sm:$0x3] }
 0x7e3   :  { %651 = vrot.lane.b32.xlu1 %v649_v21, %s2990_s24 }
 0x851   :  { %v574_v22 = vpop.permute.xlu0 %573 }
 0x852   :  { %576 = vst.msk [vmem:[#allocation2] sm:$0x1] %vm31_vm2, %v574_v22  ;;  %578 = vst.msk [vmem:[#allocation4 + $0x2] sm:$0x1] %vm31_vm2, %v574_v22 }
 0x855   :  { %v652_v38 = vpop.permute.xlu1 %651 }
 0x859   :  { %v581_v23 = vld [vmem:[#allocation2] sm:$0x1] }
 0x85a   :  { %2680 = vmatmul.mubr.msk.bf16.vlgmr.msra.gmra.mxu0 %vm125_vm1, %v581_v23  ;;  %v818_v23 = vld [vmem:[#allocation5 + $0xa] sm:$0x3] }
 0x85b   :  { %2695 = vmatprep.mubr.msk.bf16.mxu0 %vm2985_vm0, %v2984_v2  ;;  %2692 = vmatpush3.bf16.msra.mxu0 %v2810_v11  ;;  %v2815_v11 = vld [vmem:[%s3492_s2] sm:$0xff]  }
 0x85c   :  { %2693 = vmatprep.subr.bf16.mxu0 %v2984_v2 }
 0x85f   :  { %2694 = vmatpush3.bf16.msra.mxu0 %v2811_v12 }
 0x860   :  { %2707 = vmatprep.subr.bf16.mxu0 %v2984_v2 }
 0x91a   :  { %v635_v26 = vpop.f32.mrf.mxu0 }
 0x91b   :  { %v641_v27 = vadd.f32 %v635_v26, %v580_v25 }
 0x91c   :  { %v2681_v28 = vpop.f32.mrf.mxu0 }
 0x91d   :  { %2858 = vtanh.f32 %v641_v27  ;;  %v2493_v32 = vmul.f32 -1.442695, %v641_v27 }
 0x91e   :  { %v638_v29 = vpop.f32.mrf.mxu0 }
 0x91f   :  { %2860 = vpow2.f32 %v2493_v32 }
 0x920   :  { %v2682_v30 = vpop.f32.mrf.mxu0 }
 0x92a   :  { %v2859_v31 = vpop.eup %2858 }
 0x92b   :  { %656 = vrot.lane.b32.xlu0 %v2859_v31, %s2989_s23 }
 0x92c   :  { %v2861_v33 = vpop.eup %2860 }
 0x92d   :  { %v645_v34 = vadd.f32 1.0, %v2861_v33 }
 0x92f   :  { %2862 = vrcp.f32 %v645_v34 }
 0x93c   :  { %v2863_v35 = vpop.eup %2862 }
 0x93d   :  { %v654_v39 = vmul.f32 %v2863_v35, %v652_v38 }
 0x99d   :  { %v657_v36 = vpop.permute.xlu0 %656 }
 0x99e   :  { %v659_v37 = vmul.f32 %v2863_v35, %v657_v36 }
 0x9a0   :  { %661 = vrot.lane.b32.xlu0 %v659_v37, %s2990_s24 }
 0xa12   :  { %v662_v40 = vpop.permute.xlu0 %661 }
 0xa13   :  { %v664_v42 = vadd.f32 %v662_v40, %v654_v39 }
 0xa15   :  { %2864 = vtanh.f32 %v664_v42 }
 0xa22   :  { %v2865_v43 = vpop.eup %2864 }
 0xa23   :  { %667 = vrot.lane.b32.xlu1 %v2865_v43, %s2989_s23  ;;  %v2812_v43 = vld [vmem:[%s3492_s2 + $0x8] sm:$0xff]  }
 0xa27   :  { %672 = vrot.lane.b32.xlu1 %v664_v42, %s2991_s25 }
 0xa95   :  { %v668_v46 = vpop.permute.xlu1 %667 }
 0xa96   :  { %v670_v47 = vmul.f32 %v2863_v35, %v668_v46 }
 0xa98   :  { %v676_v48 = vpack.c.bf16 %v670_v47, %v670_v47 }
 0xa99   :  { %v673_v49 = vpop.permute.xlu1 %672 }
 0xa9a   :  { %v684_v50 = vrot.slane %v676_v48, %v3083_v24  ;;  %675 = vst.msk [vmem:[#allocation3] sm:$0x3] %vm34_vm3, %v673_v49 }
 0xa9c   :  { %v691_v51 = vrot.slane %v684_v50, %v3083_v24 }
 0xa9e   :  { %692 = vrot.lane.b32.xlu0 %v691_v51, %s2990_s24 }
 0xaa1   :  { %v768_v52 = vld [vmem:[#allocation3] sm:$0x3] }
 0xaa2   :  { %770 = vrot.lane.b32.xlu1 %v768_v52, %s2990_s24 }
 0xb10   :  { %v693_v53 = vpop.permute.xlu0 %692 }
 0xb11   :  { %695 = vst.msk [vmem:[#allocation2] sm:$0x1] %vm31_vm2, %v693_v53  ;;  %697 = vst.msk [vmem:[#allocation4 + $0x3] sm:$0x1] %vm31_vm2, %v693_v53 }
 0xb14   :  { %v771_v6 = vpop.permute.xlu1 %770 }
 0xb18   :  { %v700_v54 = vld [vmem:[#allocation2] sm:$0x1] }
 0xb19   :  { %2688 = vmatmul.mubr.msk.bf16.vlgmr.msra.gmra.mxu1 %vm125_vm1, %v700_v54  ;;  %v937_v54 = vld [vmem:[#allocation5 + $0xc] sm:$0x3] }
 0xb1a   :  { %2703 = vmatprep.mubr.msk.bf16.mxu1 %vm2985_vm0, %v2984_v2  ;;  %2700 = vmatpush3.bf16.msra.mxu1 %v2812_v43  ;;  %v2818_v43 = vld [vmem:[%s3492_s2 + $0x18] sm:$0xff]  }
 0xb1b   :  { %2701 = vmatprep.subr.bf16.mxu1 %v2984_v2 }
 0xb1e   :  { %2702 = vmatpush3.bf16.msra.mxu1 %v2813_v44  ;;  %v2817_v44 = vld [vmem:[%s3491_s1 + $0x10] sm:$0xff]  }
 0xb1f   :  { %2715 = vmatprep.subr.bf16.mxu1 %v2984_v2 }
 0xbd9   :  { %v754_v56 = vpop.f32.mrf.mxu1 }
 0xbda   :  { %v760_v57 = vadd.f32 %v754_v56, %v699_v55 }
 0xbdb   :  { %v2689_v58 = vpop.f32.mrf.mxu1 }
 0xbdc   :  { %2866 = vtanh.f32 %v760_v57  ;;  %v2497_v62 = vmul.f32 -1.442695, %v760_v57 }
 0xbdd   :  { %v757_v59 = vpop.f32.mrf.mxu1 }
 0xbde   :  { %2868 = vpow2.f32 %v2497_v62 }
 0xbdf   :  { %v2690_v60 = vpop.f32.mrf.mxu1 }
 0xbe9   :  { %v2867_v61 = vpop.eup %2866 }
 0xbea   :  { %775 = vrot.lane.b32.xlu0 %v2867_v61, %s2989_s23 }
 0xbeb   :  { %v2869_v63 = vpop.eup %2868 }
 0xbec   :  { %v764_v0 = vadd.f32 1.0, %v2869_v63 }
 0xbee   :  { %2870 = vrcp.f32 %v764_v0 }
 0xbfb   :  { %v2871_v1 = vpop.eup %2870 }
 0xbfc   :  { %v773_v7 = vmul.f32 %v2871_v1, %v771_v6 }
 0xc5c   :  { %v776_v3 = vpop.permute.xlu0 %775 }
 0xc5d   :  { %v778_v4 = vmul.f32 %v2871_v1, %v776_v3 }
 0xc5f   :  { %780 = vrot.lane.b32.xlu0 %v778_v4, %s2990_s24 }
 0xcd1   :  { %v781_v8 = vpop.permute.xlu0 %780 }
 0xcd2   :  { %v783_v9 = vadd.f32 %v781_v8, %v773_v7 }
 0xcd4   :  { %2872 = vtanh.f32 %v783_v9 }
 0xce1   :  { %v2873_v10 = vpop.eup %2872 }
 0xce2   :  { %786 = vrot.lane.b32.xlu1 %v2873_v10, %s2989_s23  ;;  %v2814_v10 = vld [vmem:[%s3492_s2 + $0x8] sm:$0xff]  }
 0xce6   :  { %791 = vrot.lane.b32.xlu1 %v783_v9, %s2991_s25 }
 0xd54   :  { %v787_v13 = vpop.permute.xlu1 %786 }
 0xd55   :  { %v789_v14 = vmul.f32 %v2871_v1, %v787_v13 }
 0xd57   :  { %v795_v15 = vpack.c.bf16 %v789_v14, %v789_v14 }
 0xd58   :  { %v792_v17 = vpop.permute.xlu1 %791 }
 0xd59   :  { %v803_v18 = vrot.slane %v795_v15, %v3083_v24  ;;  %794 = vst.msk [vmem:[#allocation3] sm:$0x3] %vm34_vm3, %v792_v17 }
 0xd5b   :  { %v810_v19 = vrot.slane %v803_v18, %v3083_v24 }
 0xd5d   :  { %811 = vrot.lane.b32.xlu0 %v810_v19, %s2990_s24 }
 0xd60   :  { %v887_v20 = vld [vmem:[#allocation3] sm:$0x3] }
 0xd61   :  { %889 = vrot.lane.b32.xlu1 %v887_v20, %s2990_s24 }
 0xdcf   :  { %v812_v21 = vpop.permute.xlu0 %811 }
 0xdd0   :  { %814 = vst.msk [vmem:[#allocation2] sm:$0x1] %vm31_vm2, %v812_v21  ;;  %816 = vst.msk [vmem:[#allocation4 + $0x4] sm:$0x1] %vm31_vm2, %v812_v21 }
 0xdd3   :  { %v890_v37 = vpop.permute.xlu1 %889 }
 0xdd7   :  { %v819_v22 = vld [vmem:[#allocation2] sm:$0x1] }
 0xdd8   :  { %2696 = vmatmul.mubr.msk.bf16.vlgmr.msra.gmra.mxu0 %vm125_vm1, %v819_v22  ;;  %v1056_v22 = vld [vmem:[#allocation5 + $0xe] sm:$0x3] }
 0xdd9   :  { %2711 = vmatprep.mubr.msk.bf16.mxu0 %vm2985_vm0, %v2984_v2  ;;  %2708 = vmatpush3.bf16.msra.mxu0 %v2814_v10 }
 0xdda   :  { %2709 = vmatprep.subr.bf16.mxu0 %v2984_v2 }
 0xddd   :  { %2710 = vmatpush3.bf16.msra.mxu0 %v2815_v11 }
 0xdde   :  { %2723 = vmatprep.subr.bf16.mxu0 %v2984_v2 }
 0xe98   :  { %v873_v25 = vpop.f32.mrf.mxu0 }
 0xe99   :  { %v879_v26 = vadd.f32 %v873_v25, %v818_v23 }
 0xe9a   :  { %v2697_v27 = vpop.f32.mrf.mxu0 }
 0xe9b   :  { %2874 = vtanh.f32 %v879_v26  ;;  %v2501_v31 = vmul.f32 -1.442695, %v879_v26 }
 0xe9c   :  { %v876_v28 = vpop.f32.mrf.mxu0 }
 0xe9d   :  { %2876 = vpow2.f32 %v2501_v31 }
 0xe9e   :  { %v2698_v29 = vpop.f32.mrf.mxu0 }
 0xea8   :  { %v2875_v30 = vpop.eup %2874 }
 0xea9   :  { %894 = vrot.lane.b32.xlu0 %v2875_v30, %s2989_s23 }
 0xeaa   :  { %v2877_v32 = vpop.eup %2876 }
 0xeab   :  { %v883_v33 = vadd.f32 1.0, %v2877_v32 }
 0xead   :  { %2878 = vrcp.f32 %v883_v33 }
 0xeba   :  { %v2879_v34 = vpop.eup %2878 }
 0xebb   :  { %v892_v38 = vmul.f32 %v2879_v34, %v890_v37 }
 0xf1b   :  { %v895_v35 = vpop.permute.xlu0 %894 }
 0xf1c   :  { %v897_v36 = vmul.f32 %v2879_v34, %v895_v35 }
 0xf1e   :  { %899 = vrot.lane.b32.xlu0 %v897_v36, %s2990_s24 }
 0xf90   :  { %v900_v39 = vpop.permute.xlu0 %899 }
 0xf91   :  { %v902_v40 = vadd.f32 %v900_v39, %v892_v38 }
 0xf93   :  { %2880 = vtanh.f32 %v902_v40 }
 0xfa0   :  { %v2881_v42 = vpop.eup %2880 }
 0xfa1   :  { %905 = vrot.lane.b32.xlu1 %v2881_v42, %s2989_s23  ;;  %v2816_v42 = vld [vmem:[%s3491_s1 + $0x18] sm:$0xff]  }
 0xfa5   :  { %910 = vrot.lane.b32.xlu1 %v902_v40, %s2991_s25 }
0x1013   :  { %v906_v45 = vpop.permute.xlu1 %905 }
0x1014   :  { %v908_v46 = vmul.f32 %v2879_v34, %v906_v45 }
0x1016   :  { %v914_v47 = vpack.c.bf16 %v908_v46, %v908_v46 }
0x1017   :  { %v911_v48 = vpop.permute.xlu1 %910 }
0x1018   :  { %v922_v49 = vrot.slane %v914_v47, %v3083_v24  ;;  %913 = vst.msk [vmem:[#allocation3] sm:$0x3] %vm34_vm3, %v911_v48 }
0x101a   :  { %v929_v50 = vrot.slane %v922_v49, %v3083_v24 }
0x101c   :  { %930 = vrot.lane.b32.xlu0 %v929_v50, %s2990_s24  ;;  %v2819_v50 = vld [vmem:[%s3492_s2 + $0x10] sm:$0xff]  }
0x101f   :  { %v1006_v51 = vld [vmem:[#allocation3] sm:$0x3] }
0x1020   :  { %1008 = vrot.lane.b32.xlu1 %v1006_v51, %s2990_s24  ;;  %v1432_v51 = vld [vmem:[#allocation3 + $0x2] sm:$0x3] }
0x108e   :  { %v931_v52 = vpop.permute.xlu0 %930 }
0x108f   :  { %933 = vst.msk [vmem:[#allocation2] sm:$0x1] %vm31_vm2, %v931_v52  ;;  %935 = vst.msk [vmem:[#allocation4 + $0x5] sm:$0x1] %vm31_vm2, %v931_v52  ;;  %v1362_v52 = vld [vmem:[#allocation2 + $0x1] sm:$0x1] }
0x1092   :  { %v1009_v4 = vpop.permute.xlu1 %1008 }
0x1096   :  { %v938_v53 = vld [vmem:[#allocation2] sm:$0x1] }
0x1097   :  { %2704 = vmatmul.mubr.msk.bf16.vlgmr.msra.gmra.mxu1 %vm125_vm1, %v938_v53 }
0x1098   :  { %2719 = vmatprep.mubr.msk.bf16.mxu1 %vm2985_vm0, %v2984_v2  ;;  %2716 = vmatpush3.bf16.msra.mxu1 %v2816_v42 }
0x1099   :  { %2717 = vmatprep.subr.bf16.mxu1 %v2984_v2 }
0x109c   :  { %2718 = vmatpush3.bf16.msra.mxu1 %v2817_v44 }
0x109d   :  { %2731 = vmatprep.subr.bf16.mxu1 %v2984_v2 }
0x1157   :  { %v992_v55 = vpop.f32.mrf.mxu1 }
0x1158   :  { %v998_v56 = vadd.f32 %v992_v55, %v937_v54  ;;  %v1177_v54 = vld [vmem:[#allocation4 + $0x3] sm:$0x1]  ;;  %v1175_v55 = vld [vmem:[#allocation4 + $0x1] sm:$0x1] }
0x1159   :  { %v2705_v57 = vpop.f32.mrf.mxu1 }
0x115a   :  { %2882 = vtanh.f32 %v998_v56  ;;  %v2505_v61 = vmul.f32 -1.442695, %v998_v56  ;;  %v1176_v56 = vld [vmem:[#allocation4 + $0x2] sm:$0x1] }
0x115b   :  { %v995_v58 = vpop.f32.mrf.mxu1  ;;  %v1204_v57 = vcombine.low %v1176_v56, %v1177_v54 }
0x115c   :  { %2884 = vpow2.f32 %v2505_v61  ;;  %v1174_v58 = vld [vmem:[#allocation4] sm:$0x1]  ;;  %v1178_v61 = vld [vmem:[#allocation4 + $0x4] sm:$0x1] }
0x115d   :  { %v2706_v59 = vpop.f32.mrf.mxu1 }
0x115e   :  { %v1179_v59 = vld [vmem:[#allocation4 + $0x5] sm:$0x1] }
0x1167   :  { %v2883_v60 = vpop.eup %2882 }
0x1168   :  { %1013 = vrot.lane.b32.xlu0 %v2883_v60, %s2989_s23  ;;  %v1203_v60 = vcombine.low %v1174_v58, %v1175_v55 }
0x1169   :  { %v2885_v62 = vpop.eup %2884 }
0x116a   :  { %v1002_v63 = vadd.f32 1.0, %v2885_v62  ;;  %v1205_v62 = vcombine.low %v1178_v61, %v1179_v59 }
0x116c   :  { %2886 = vrcp.f32 %v1002_v63  ;;  %v1220_v63 = vrot.slane %v1204_v57, %v3083_v24 }
0x1179   :  { %v2887_v0 = vpop.eup %2886 }
0x117a   :  { %v1011_v6 = vmul.f32 %v2887_v0, %v1009_v4  ;;  %v1213_v4 = vrot.slane %v1203_v60, %v3083_v24 }
0x11da   :  { %v1014_v1 = vpop.permute.xlu0 %1013 }
0x11db   :  { %v1016_v3 = vmul.f32 %v2887_v0, %v1014_v1 }
0x11dd   :  { %1018 = vrot.lane.b32.xlu0 %v1016_v3, %s2990_s24 }
0x124f   :  { %v1019_v7 = vpop.permute.xlu0 %1018 }
0x1250   :  { %v1021_v8 = vadd.f32 %v1019_v7, %v1011_v6  ;;  %v1227_v6 = vrot.slane %v1205_v62, %v3083_v24 }
0x1252   :  { %2888 = vtanh.f32 %v1021_v8 }
0x125f   :  { %v2889_v9 = vpop.eup %2888 }
0x1260   :  { %1024 = vrot.lane.b32.xlu1 %v2889_v9, %s2989_s23 }
0x1264   :  { %1029 = vrot.lane.b32.xlu1 %v1021_v8, %s2991_s25  ;;  %v1235_v8 = vcombine.low %v1213_v4, %v1220_v63 }
0x1266   :  { %v1243_v10 = vrot.slane %v1235_v8, %v3083_v24 }
0x12d2   :  { %v1025_v12 = vpop.permute.xlu1 %1024 }
0x12d3   :  { %v1027_v13 = vmul.f32 %v2887_v0, %v1025_v12 }
0x12d5   :  { %v1033_v14 = vpack.c.bf16 %v1027_v13, %v1027_v13 }
0x12d6   :  { %v1030_v15 = vpop.permute.xlu1 %1029 }
0x12d7   :  { %v1041_v17 = vrot.slane %v1033_v14, %v3083_v24  ;;  %1032 = vst.msk [vmem:[#allocation3] sm:$0x3] %vm34_vm3, %v1030_v15 }
0x12d9   :  { %v1048_v18 = vrot.slane %v1041_v17, %v3083_v24 }
0x12db   :  { %1049 = vrot.lane.b32.xlu0 %v1048_v18, %s2990_s24  ;;  %v2515_v18 = vld [vmem:[%s3493_s3 + $0x1] ss:$0 sm:$0xff] }
0x12de   :  { %v1125_v19 = vld [vmem:[#allocation3] sm:$0x3] }
0x12df   :  { %1127 = vrot.lane.b32.xlu1 %v1125_v19, %s2990_s24 }
0x134d   :  { %v1050_v20 = vpop.permute.xlu0 %1049 }
0x134e   :  { %1052 = vst.msk [vmem:[#allocation2] sm:$0x1] %vm31_vm2, %v1050_v20  ;;  %1054 = vst.msk [vmem:[#allocation4 + $0x6] sm:$0x1] %vm31_vm2, %v1050_v20 }
0x1351   :  { %v1128_v36 = vpop.permute.xlu1 %1127 }
0x1355   :  { %v1057_v21 = vld [vmem:[#allocation2] sm:$0x1]  ;;  %v1180_v0 = vld [vmem:[#allocation4 + $0x6] sm:$0x1] }
0x1356   :  { %2712 = vmatmul.mubr.msk.bf16.vlgmr.msra.gmra.mxu0 %vm125_vm1, %v1057_v21 }
0x1357   :  { %2727 = vmatprep.mubr.msk.bf16.mxu0 %vm2985_vm0, %v2984_v2  ;;  %2724 = vmatpush3.bf16.msra.mxu0 %v2818_v43 }
0x1358   :  { %2725 = vmatprep.subr.bf16.mxu0 %v2984_v2 }
0x135b   :  { %2726 = vmatpush3.bf16.msra.mxu0 %v2819_v50 }
0x135c   :  { %2739 = vmatprep.subr.bf16.mxu0 %v2984_v2 }
0x135e   :  { %2728 = vmatmul.mubr.msk.bf16.vlgmr.msra.gmra.mxu0 %vm125_vm1, %v1362_v52  ;;  %v2821_v52 = vld [vmem:[%s3492_s2 + $0x10] sm:$0xff]  }
0x135f   :  { %2743 = vmatprep.mubr.msk.bf16.mxu0 %vm2985_vm0, %v2984_v2 }
0x1416   :  { %v1111_v23 = vpop.f32.mrf.mxu0 }
0x1417   :  { %v1117_v25 = vadd.f32 %v1111_v23, %v1056_v22 }
0x1418   :  { %v2713_v26 = vpop.f32.mrf.mxu0 }
0x1419   :  { %2890 = vtanh.f32 %v1117_v25  ;;  %v2509_v30 = vmul.f32 -1.442695, %v1117_v25 }
0x141a   :  { %v1114_v27 = vpop.f32.mrf.mxu0 }
0x141b   :  { %2892 = vpow2.f32 %v2509_v30 }
0x141c   :  { %v2714_v28 = vpop.f32.mrf.mxu0 }
0x141e   :  { %v1417_v13 = vpop.f32.mrf.mxu0 }
0x1420   :  { %v2729_v14 = vpop.f32.mrf.mxu0 }
0x1422   :  { %v1420_v15 = vpop.f32.mrf.mxu0 }
0x1424   :  { %v2730_v17 = vpop.f32.mrf.mxu0 }
0x1426   :  { %v2891_v29 = vpop.eup %2890 }
0x1427   :  { %1132 = vrot.lane.b32.xlu0 %v2891_v29, %s2989_s23 }
0x1428   :  { %v2893_v31 = vpop.eup %2892 }
0x1429   :  { %v1121_v32 = vadd.f32 1.0, %v2893_v31 }
0x142b   :  { %2894 = vrcp.f32 %v1121_v32 }
0x1438   :  { %v2895_v33 = vpop.eup %2894 }
0x1439   :  { %v1130_v37 = vmul.f32 %v2895_v33, %v1128_v36 }
0x1499   :  { %v1133_v34 = vpop.permute.xlu0 %1132 }
0x149a   :  { %v1135_v35 = vmul.f32 %v2895_v33, %v1133_v34 }
0x149c   :  { %1137 = vrot.lane.b32.xlu0 %v1135_v35, %s2990_s24 }
0x150e   :  { %v1138_v38 = vpop.permute.xlu0 %1137 }
0x150f   :  { %v3268_v39 = vadd.f32 %v1138_v38, %v1130_v37 }
0x1511   :  { %2896 = vtanh.f32 %v3268_v39 }
0x151e   :  { %v2897_v40 = vpop.eup %2896 }
0x151f   :  { %1143 = vrot.lane.b32.xlu1 %v2897_v40, %s2989_s23 }
0x1591   :  { %v1144_v45 = vpop.permute.xlu1 %1143 }
0x1592   :  { %v1146_v46 = vmul.f32 %v2895_v33, %v1144_v45 }
0x1594   :  { %v1152_v47 = vpack.c.bf16 %v1146_v46, %v1146_v46 }
0x1596   :  { %v1160_v48 = vrot.slane %v1152_v47, %v3083_v24 }
0x1598   :  { %v1167_v49 = vrot.slane %v1160_v48, %v3083_v24 }
0x159a   :  { %1168 = vrot.lane.b32.xlu0 %v1167_v49, %s2990_s24 }
0x159e   :  { %1434 = vrot.lane.b32.xlu0 %v1432_v51, %s2990_s24  ;;  %v2820_v51 = vld [vmem:[%s3492_s2 + $0x18] sm:$0xff]  }
0x160c   :  { %v1169_v53 = vpop.permute.xlu0 %1168 }
0x160d   :  { %1171 = vst.msk [vmem:[#allocation2] sm:$0x1] %vm31_vm2, %v1169_v53  ;;  %1173 = vst.msk [vmem:[#allocation4 + $0x7] sm:$0x1] %vm31_vm2, %v1169_v53 }
0x1614   :  { %v1181_v1 = vld [vmem:[#allocation4 + $0x7] sm:$0x1] }
0x1615   :  { %v1206_v3 = vcombine.low %v1180_v0, %v1181_v1 }
0x1617   :  { %v1234_v7 = vrot.slane %v1206_v3, %v3083_v24 }
0x1619   :  { %v1236_v9 = vcombine.low %v1227_v6, %v1234_v7 }
0x161b   :  { %v1250_v11 = vrot.slane %v1236_v9, %v3083_v24 }
0x161d   :  { %v1251_v12 = vcombine.low %v1243_v10, %v1250_v11 }
0x161f   :  { %2720 = vmatmul.mubr.msk.bf16.vlgmr.msra.gmra.mxu1 %vm125_vm1, %v1251_v12 }
0x1620   :  { %2735 = vmatprep.mubr.msk.bf16.mxu1 %vm2985_vm0, %v2984_v2  ;;  %2732 = vmatpush3.bf16.msra.mxu1 %v2820_v51  ;;  %v2825_v51 = vld [vmem:[%s3492_s2 + $0x10] sm:$0xff]  }
0x1621   :  { %2733 = vmatprep.subr.bf16.mxu1 %v2984_v2 }
0x1624   :  { %2734 = vmatpush3.bf16.msra.mxu1 %v2821_v52 }
0x1625   :  { %2747 = vmatprep.subr.bf16.mxu1 %v2984_v2 }
0x16df   :  { %v1301_v19 = vpop.f32.mrf.mxu1 }
0x16e0   :  { %v1302_v20 = vadd.f32 %v2515_v18, %v1301_v19  ;;  %v2822_v19 = vld [vmem:[%s3492_s2 + $0x18] sm:$0xff]  }
0x16e1   :  { %v2721_v21 = vpop.f32.mrf.mxu1  ;;  %2740 = vmatpush3.bf16.msra.mxu0 %v2822_v19  ;;  %v2827_v19 = vld [vmem:[%s3492_s2 + $0x10] sm:$0xff]  }
0x16e2   :  { %v1310_v22 = vcombine.high %v1302_v20, %v1302_v20  ;;  %v1317_v23 = vrot.slane %v1302_v20, %v3105_v41  ;;  %2519 = vst.sshfl [vmem:[#allocation5] sm:$0x3 pattern:$0x76325410] %v1302_v20  ;;  %2741 = vmatprep.subr.bf16.mxu0 %v2984_v2  ;;  %v2823_v20 = vld [vmem:[%s3492_s2 + $0x10] sm:$0xff]  }
0x16e3   :  { %v1304_v25 = vpop.f32.mrf.mxu1 }
0x16e4   :  { %v1324_v26 = vrot.slane %v1310_v22, %v3105_v41  ;;  %v1325_v27 = vcombine.high %v1317_v23, %v1317_v23  ;;  %2520 = vst.sshfl [vmem:[#allocation5 + $0x4] sm:$0x3 pattern:$0x76325410] %v1310_v22  ;;  %v1305_v28 = vadd.f32 %v2515_v18, %v1304_v25 }
0x16e5   :  { %v2722_v29 = vpop.f32.mrf.mxu1  ;;  %2742 = vmatpush3.bf16.msra.mxu0 %v2823_v20 }
0x16e6   :  { %v1326_v30 = vcombine.high %v1324_v26, %v1324_v26  ;;  %1353 = vst [vmem:[#allocation5 + $0x2] sm:$0x3] %v1325_v27  ;;  %v1327_v31 = vcombine.high %v1305_v28, %v1305_v28  ;;  %v1334_v32 = vrot.slane %v1305_v28, %v3105_v41  ;;  %2521 = vst.sshfl [vmem:[#allocation5 + $0x8] sm:$0x3 pattern:$0x76325410] %v1305_v28  ;;  %2755 = vmatprep.subr.bf16.mxu0 %v2984_v2 }
0x16e8   :  { %1355 = vst [vmem:[#allocation5 + $0x6] sm:$0x3] %v1326_v30  ;;  %v1341_v33 = vrot.slane %v1327_v31, %v3105_v41  ;;  %v1342_v34 = vcombine.high %v1334_v32, %v1334_v32  ;;  %2522 = vst.sshfl [vmem:[#allocation5 + $0xc] sm:$0x3 pattern:$0x76325410] %v1327_v31  ;;  %v1435_v41 = vpop.permute.xlu0 %1434 }
0x16e9   :  { %v1360_v35 = vld [vmem:[#allocation5] sm:$0x3] }
0x16ea   :  { %v1343_v36 = vcombine.high %v1341_v33, %v1341_v33  ;;  %1357 = vst [vmem:[#allocation5 + $0xa] sm:$0x3] %v1342_v34  ;;  %v1423_v37 = vadd.f32 %v1417_v13, %v1360_v35 }
0x16eb   :  { %v1597_v31 = vld [vmem:[#allocation5 + $0x4] sm:$0x3] }
0x16ec   :  { %1359 = vst [vmem:[#allocation5 + $0xe] sm:$0x3] %v1343_v36  ;;  %2898 = vtanh.f32 %v1423_v37  ;;  %v2530_v40 = vmul.f32 -1.442695, %v1423_v37 }
0x16ed   :  { %v1480_v62 = vld [vmem:[#allocation5 + $0x2] sm:$0x3] }
0x16ee   :  { %2900 = vpow2.f32 %v2530_v40 }
0x16f9   :  { %v2899_v38 = vpop.eup %2898 }
0x16fa   :  { %1439 = vrot.lane.b32.xlu1 %v2899_v38, %s2989_s23 }
0x16fb   :  { %v2901_v42 = vpop.eup %2900 }
0x16fc   :  { %v1427_v43 = vadd.f32 1.0, %v2901_v42 }
0x16fe   :  { %2902 = vrcp.f32 %v1427_v43 }
0x170b   :  { %v2903_v44 = vpop.eup %2902 }
0x170c   :  { %v1437_v47 = vmul.f32 %v2903_v44, %v1435_v41 }
0x176c   :  { %v1440_v45 = vpop.permute.xlu1 %1439 }
0x176d   :  { %v1442_v46 = vmul.f32 %v2903_v44, %v1440_v45 }
0x176f   :  { %1444 = vrot.lane.b32.xlu1 %v1442_v46, %s2990_s24 }
0x17e1   :  { %v1445_v48 = vpop.permute.xlu1 %1444 }
0x17e2   :  { %v1447_v49 = vadd.f32 %v1445_v48, %v1437_v47 }
0x17e4   :  { %2904 = vtanh.f32 %v1447_v49 }
0x17f1   :  { %v2905_v50 = vpop.eup %2904 }
0x17f2   :  { %1450 = vrot.lane.b32.xlu0 %v2905_v50, %s2989_s23  ;;  %v2824_v50 = vld [vmem:[%s3492_s2 + $0x18] sm:$0xff]  }
0x17f6   :  { %1455 = vrot.lane.b32.xlu0 %v1447_v49, %s2991_s25 }
0x1864   :  { %v1451_v53 = vpop.permute.xlu0 %1450 }
0x1865   :  { %v1453_v54 = vmul.f32 %v2903_v44, %v1451_v53 }
0x1867   :  { %v1459_v55 = vpack.c.bf16 %v1453_v54, %v1453_v54 }
0x1868   :  { %v1456_v56 = vpop.permute.xlu0 %1455 }
0x1869   :  { %v1467_v57 = vrot.slane %v1459_v55, %v3083_v24  ;;  %1458 = vst.msk [vmem:[#allocation3 + $0x2] sm:$0x3] %vm34_vm3, %v1456_v56 }
0x186b   :  { %v1474_v58 = vrot.slane %v1467_v57, %v3083_v24 }
0x186d   :  { %1475 = vrot.lane.b32.xlu1 %v1474_v58, %s2990_s24 }
0x1870   :  { %v1549_v59 = vld [vmem:[#allocation3 + $0x2] sm:$0x3] }
0x1871   :  { %1551 = vrot.lane.b32.xlu0 %v1549_v59, %s2990_s24 }
0x18df   :  { %v1476_v60 = vpop.permute.xlu1 %1475 }
0x18e0   :  { %1478 = vst.msk [vmem:[#allocation2 + $0x1] sm:$0x1] %vm31_vm2, %v1476_v60  ;;  %1479 = vst.msk [vmem:[#allocation4] sm:$0x1] %vm31_vm2, %v1476_v60 }
0x18e3   :  { %v1552_v13 = vpop.permute.xlu0 %1551 }
0x18e7   :  { %v1481_v61 = vld [vmem:[#allocation2 + $0x1] sm:$0x1] }
0x18e8   :  { %2736 = vmatmul.mubr.msk.bf16.vlgmr.msra.gmra.mxu1 %vm125_vm1, %v1481_v61  ;;  %v1714_v61 = vld [vmem:[#allocation5 + $0x6] sm:$0x3] }
0x18e9   :  { %2751 = vmatprep.mubr.msk.bf16.mxu1 %vm2985_vm0, %v2984_v2  ;;  %2748 = vmatpush3.bf16.msra.mxu1 %v2824_v50  ;;  %v2829_v50 = vld [vmem:[%s3492_s2 + $0x10] sm:$0xff]  }
0x18ea   :  { %2749 = vmatprep.subr.bf16.mxu1 %v2984_v2 }
0x18ed   :  { %2750 = vmatpush3.bf16.msra.mxu1 %v2825_v51 }
0x18ee   :  { %2763 = vmatprep.subr.bf16.mxu1 %v2984_v2 }
0x19a8   :  { %v1535_v63 = vpop.f32.mrf.mxu1 }
0x19a9   :  { %v1541_v0 = vadd.f32 %v1535_v63, %v1480_v62 }
0x19aa   :  { %v2737_v1 = vpop.f32.mrf.mxu1 }
0x19ab   :  { %2906 = vtanh.f32 %v1541_v0  ;;  %v2538_v7 = vmul.f32 -1.442695, %v1541_v0 }
0x19ac   :  { %v1538_v3 = vpop.f32.mrf.mxu1 }
0x19ad   :  { %2908 = vpow2.f32 %v2538_v7 }
0x19ae   :  { %v2738_v4 = vpop.f32.mrf.mxu1 }
0x19b8   :  { %v2907_v6 = vpop.eup %2906 }
0x19b9   :  { %1556 = vrot.lane.b32.xlu1 %v2907_v6, %s2989_s23 }
0x19ba   :  { %v2909_v8 = vpop.eup %2908 }
0x19bb   :  { %v1545_v9 = vadd.f32 1.0, %v2909_v8 }
0x19bd   :  { %2910 = vrcp.f32 %v1545_v9 }
0x19ca   :  { %v2911_v10 = vpop.eup %2910 }
0x19cb   :  { %v1554_v14 = vmul.f32 %v2911_v10, %v1552_v13 }
0x1a2b   :  { %v1557_v11 = vpop.permute.xlu1 %1556 }
0x1a2c   :  { %v1559_v12 = vmul.f32 %v2911_v10, %v1557_v11 }
0x1a2e   :  { %1561 = vrot.lane.b32.xlu1 %v1559_v12, %s2990_s24 }
0x1aa0   :  { %v1562_v15 = vpop.permute.xlu1 %1561 }
0x1aa1   :  { %v1564_v17 = vadd.f32 %v1562_v15, %v1554_v14 }
0x1aa3   :  { %2912 = vtanh.f32 %v1564_v17 }
0x1ab0   :  { %v2913_v18 = vpop.eup %2912 }
0x1ab1   :  { %1567 = vrot.lane.b32.xlu0 %v2913_v18, %s2989_s23  ;;  %v2826_v18 = vld [vmem:[%s3492_s2 + $0x18] sm:$0xff]  }
0x1ab5   :  { %1572 = vrot.lane.b32.xlu0 %v1564_v17, %s2991_s25 }
0x1b23   :  { %v1568_v21 = vpop.permute.xlu0 %1567 }
0x1b24   :  { %v1570_v22 = vmul.f32 %v2911_v10, %v1568_v21 }
0x1b26   :  { %v1576_v23 = vpack.c.bf16 %v1570_v22, %v1570_v22 }
0x1b27   :  { %v1573_v25 = vpop.permute.xlu0 %1572 }
0x1b28   :  { %v1584_v26 = vrot.slane %v1576_v23, %v3083_v24  ;;  %1575 = vst.msk [vmem:[#allocation3 + $0x2] sm:$0x3] %vm34_vm3, %v1573_v25 }
0x1b2a   :  { %v1591_v27 = vrot.slane %v1584_v26, %v3083_v24 }
0x1b2c   :  { %1592 = vrot.lane.b32.xlu1 %v1591_v27, %s2990_s24 }
0x1b2f   :  { %v1666_v28 = vld [vmem:[#allocation3 + $0x2] sm:$0x3] }
0x1b30   :  { %1668 = vrot.lane.b32.xlu0 %v1666_v28, %s2990_s24 }
0x1b9e   :  { %v1593_v29 = vpop.permute.xlu1 %1592 }
0x1b9f   :  { %1595 = vst.msk [vmem:[#allocation2 + $0x1] sm:$0x1] %vm31_vm2, %v1593_v29  ;;  %1596 = vst.msk [vmem:[#allocation4 + $0x1] sm:$0x1] %vm31_vm2, %v1593_v29 }
0x1ba2   :  { %v1669_v46 = vpop.permute.xlu0 %1668 }
0x1ba6   :  { %v1598_v30 = vld [vmem:[#allocation2 + $0x1] sm:$0x1] }
0x1ba7   :  { %2744 = vmatmul.mubr.msk.bf16.vlgmr.msra.gmra.mxu0 %vm125_vm1, %v1598_v30  ;;  %v1831_v30 = vld [vmem:[#allocation5 + $0x8] sm:$0x3] }
0x1ba8   :  { %2759 = vmatprep.mubr.msk.bf16.mxu0 %vm2985_vm0, %v2984_v2  ;;  %2756 = vmatpush3.bf16.msra.mxu0 %v2826_v18  ;;  %v2831_v18 = vld [vmem:[%s3492_s2 + $0x10] sm:$0xff]  }
0x1ba9   :  { %2757 = vmatprep.subr.bf16.mxu0 %v2984_v2 }
0x1bac   :  { %2758 = vmatpush3.bf16.msra.mxu0 %v2827_v19 }
0x1bad   :  { %2771 = vmatprep.subr.bf16.mxu0 %v2984_v2 }
0x1c67   :  { %v1652_v32 = vpop.f32.mrf.mxu0 }
0x1c68   :  { %v1658_v33 = vadd.f32 %v1652_v32, %v1597_v31 }
0x1c69   :  { %v2745_v34 = vpop.f32.mrf.mxu0 }
0x1c6a   :  { %2914 = vtanh.f32 %v1658_v33  ;;  %v2546_v38 = vmul.f32 -1.442695, %v1658_v33 }
0x1c6b   :  { %v1655_v35 = vpop.f32.mrf.mxu0 }
0x1c6c   :  { %2916 = vpow2.f32 %v2546_v38 }
0x1c6d   :  { %v2746_v36 = vpop.f32.mrf.mxu0 }
0x1c77   :  { %v2915_v37 = vpop.eup %2914 }
0x1c78   :  { %1673 = vrot.lane.b32.xlu1 %v2915_v37, %s2989_s23 }
0x1c79   :  { %v2917_v40 = vpop.eup %2916 }
0x1c7a   :  { %v1662_v42 = vadd.f32 1.0, %v2917_v40 }
0x1c7c   :  { %2918 = vrcp.f32 %v1662_v42 }
0x1c89   :  { %v2919_v43 = vpop.eup %2918 }
0x1c8a   :  { %v1671_v41 = vmul.f32 %v2919_v43, %v1669_v46 }
0x1cea   :  { %v1674_v44 = vpop.permute.xlu1 %1673 }
0x1ceb   :  { %v1676_v45 = vmul.f32 %v2919_v43, %v1674_v44 }
0x1ced   :  { %1678 = vrot.lane.b32.xlu1 %v1676_v45, %s2990_s24 }
0x1d5f   :  { %v1679_v47 = vpop.permute.xlu1 %1678 }
0x1d60   :  { %v1681_v48 = vadd.f32 %v1679_v47, %v1671_v41 }
0x1d62   :  { %2920 = vtanh.f32 %v1681_v48 }
0x1d6f   :  { %v2921_v49 = vpop.eup %2920 }
0x1d70   :  { %1684 = vrot.lane.b32.xlu0 %v2921_v49, %s2989_s23  ;;  %v2828_v49 = vld [vmem:[%s3492_s2 + $0x18] sm:$0xff]  }
0x1d74   :  { %1689 = vrot.lane.b32.xlu0 %v1681_v48, %s2991_s25 }
0x1de2   :  { %v1685_v52 = vpop.permute.xlu0 %1684 }
0x1de3   :  { %v1687_v53 = vmul.f32 %v2919_v43, %v1685_v52 }
0x1de5   :  { %v1693_v54 = vpack.c.bf16 %v1687_v53, %v1687_v53 }
0x1de6   :  { %v1690_v55 = vpop.permute.xlu0 %1689 }
0x1de7   :  { %v1701_v56 = vrot.slane %v1693_v54, %v3083_v24  ;;  %1692 = vst.msk [vmem:[#allocation3 + $0x2] sm:$0x3] %vm34_vm3, %v1690_v55 }
0x1de9   :  { %v1708_v57 = vrot.slane %v1701_v56, %v3083_v24 }
0x1deb   :  { %1709 = vrot.lane.b32.xlu1 %v1708_v57, %s2990_s24 }
0x1dee   :  { %v1783_v58 = vld [vmem:[#allocation3 + $0x2] sm:$0x3] }
0x1def   :  { %1785 = vrot.lane.b32.xlu0 %v1783_v58, %s2990_s24 }
0x1e5d   :  { %v1710_v59 = vpop.permute.xlu1 %1709 }
0x1e5e   :  { %1712 = vst.msk [vmem:[#allocation2 + $0x1] sm:$0x1] %vm31_vm2, %v1710_v59  ;;  %1713 = vst.msk [vmem:[#allocation4 + $0x2] sm:$0x1] %vm31_vm2, %v1710_v59 }
0x1e61   :  { %v1786_v12 = vpop.permute.xlu0 %1785 }
0x1e65   :  { %v1715_v60 = vld [vmem:[#allocation2 + $0x1] sm:$0x1] }
0x1e66   :  { %2752 = vmatmul.mubr.msk.bf16.vlgmr.msra.gmra.mxu1 %vm125_vm1, %v1715_v60  ;;  %v1948_v60 = vld [vmem:[#allocation5 + $0xa] sm:$0x3] }
0x1e67   :  { %2767 = vmatprep.mubr.msk.bf16.mxu1 %vm2985_vm0, %v2984_v2  ;;  %2764 = vmatpush3.bf16.msra.mxu1 %v2828_v49  ;;  %v2833_v49 = vld [vmem:[%s3492_s2 + $0x10] sm:$0xff]  }
0x1e68   :  { %2765 = vmatprep.subr.bf16.mxu1 %v2984_v2 }
0x1e6b   :  { %2766 = vmatpush3.bf16.msra.mxu1 %v2829_v50 }
0x1e6c   :  { %2779 = vmatprep.subr.bf16.mxu1 %v2984_v2 }
0x1f26   :  { %v1769_v62 = vpop.f32.mrf.mxu1 }
0x1f27   :  { %v1775_v63 = vadd.f32 %v1769_v62, %v1714_v61 }
0x1f28   :  { %v2753_v0 = vpop.f32.mrf.mxu1 }
0x1f29   :  { %2922 = vtanh.f32 %v1775_v63  ;;  %v2554_v6 = vmul.f32 -1.442695, %v1775_v63 }
0x1f2a   :  { %v1772_v1 = vpop.f32.mrf.mxu1 }
0x1f2b   :  { %2924 = vpow2.f32 %v2554_v6 }
0x1f2c   :  { %v2754_v3 = vpop.f32.mrf.mxu1 }
0x1f36   :  { %v2923_v4 = vpop.eup %2922 }
0x1f37   :  { %1790 = vrot.lane.b32.xlu1 %v2923_v4, %s2989_s23 }
0x1f38   :  { %v2925_v7 = vpop.eup %2924 }
0x1f39   :  { %v1779_v8 = vadd.f32 1.0, %v2925_v7 }
0x1f3b   :  { %2926 = vrcp.f32 %v1779_v8 }
0x1f48   :  { %v2927_v9 = vpop.eup %2926 }
0x1f49   :  { %v1788_v13 = vmul.f32 %v2927_v9, %v1786_v12 }
0x1fa9   :  { %v1791_v10 = vpop.permute.xlu1 %1790 }
0x1faa   :  { %v1793_v11 = vmul.f32 %v2927_v9, %v1791_v10 }
0x1fac   :  { %1795 = vrot.lane.b32.xlu1 %v1793_v11, %s2990_s24 }
0x201e   :  { %v1796_v14 = vpop.permute.xlu1 %1795 }
0x201f   :  { %v1798_v15 = vadd.f32 %v1796_v14, %v1788_v13 }
0x2021   :  { %2928 = vtanh.f32 %v1798_v15 }
0x202e   :  { %v2929_v17 = vpop.eup %2928 }
0x202f   :  { %1801 = vrot.lane.b32.xlu0 %v2929_v17, %s2989_s23  ;;  %v2830_v17 = vld [vmem:[%s3492_s2 + $0x18] sm:$0xff]  }
0x2033   :  { %1806 = vrot.lane.b32.xlu0 %v1798_v15, %s2991_s25 }
0x20a1   :  { %v1802_v20 = vpop.permute.xlu0 %1801 }
0x20a2   :  { %v1804_v21 = vmul.f32 %v2927_v9, %v1802_v20 }
0x20a4   :  { %v1810_v22 = vpack.c.bf16 %v1804_v21, %v1804_v21 }
0x20a5   :  { %v1807_v23 = vpop.permute.xlu0 %1806 }
0x20a6   :  { %v1818_v25 = vrot.slane %v1810_v22, %v3083_v24  ;;  %1809 = vst.msk [vmem:[#allocation3 + $0x2] sm:$0x3] %vm34_vm3, %v1807_v23 }
0x20a8   :  { %v1825_v26 = vrot.slane %v1818_v25, %v3083_v24 }
0x20aa   :  { %1826 = vrot.lane.b32.xlu1 %v1825_v26, %s2990_s24 }
0x20ad   :  { %v1900_v27 = vld [vmem:[#allocation3 + $0x2] sm:$0x3] }
0x20ae   :  { %1902 = vrot.lane.b32.xlu0 %v1900_v27, %s2990_s24 }
0x211c   :  { %v1827_v28 = vpop.permute.xlu1 %1826 }
0x211d   :  { %1829 = vst.msk [vmem:[#allocation2 + $0x1] sm:$0x1] %vm31_vm2, %v1827_v28  ;;  %1830 = vst.msk [vmem:[#allocation4 + $0x3] sm:$0x1] %vm31_vm2, %v1827_v28 }
0x2120   :  { %v1903_v45 = vpop.permute.xlu0 %1902 }
0x2124   :  { %v1832_v29 = vld [vmem:[#allocation2 + $0x1] sm:$0x1] }
0x2125   :  { %2760 = vmatmul.mubr.msk.bf16.vlgmr.msra.gmra.mxu0 %vm125_vm1, %v1832_v29  ;;  %v2065_v29 = vld [vmem:[#allocation5 + $0xc] sm:$0x3] }
0x2126   :  { %2775 = vmatprep.mubr.msk.bf16.mxu0 %vm2985_vm0, %v2984_v2  ;;  %2772 = vmatpush3.bf16.msra.mxu0 %v2830_v17  ;;  %v2587_v17 = vld [vmem:[%s3494_s4] ss:$0 sm:$0xff]  ;;  %s2992_s4 = smov [#allocation7]  }
0x2127   :  { %2773 = vmatprep.subr.bf16.mxu0 %v2984_v2 }
0x212a   :  { %2774 = vmatpush3.bf16.msra.mxu0 %v2831_v18  ;;  %v2301_v18 = vld [vmem:[#allocation4 + $0x2] sm:$0x1] }
0x21e5   :  { %v1886_v31 = vpop.f32.mrf.mxu0 }
0x21e6   :  { %v1892_v32 = vadd.f32 %v1886_v31, %v1831_v30 }
0x21e7   :  { %v2761_v33 = vpop.f32.mrf.mxu0 }
0x21e8   :  { %2930 = vtanh.f32 %v1892_v32  ;;  %v2562_v37 = vmul.f32 -1.442695, %v1892_v32 }
0x21e9   :  { %v1889_v34 = vpop.f32.mrf.mxu0 }
0x21ea   :  { %2932 = vpow2.f32 %v2562_v37 }
0x21eb   :  { %v2762_v35 = vpop.f32.mrf.mxu0 }
0x21f5   :  { %v2931_v36 = vpop.eup %2930 }
0x21f6   :  { %1907 = vrot.lane.b32.xlu1 %v2931_v36, %s2989_s23 }
0x21f7   :  { %v2933_v38 = vpop.eup %2932 }
0x21f8   :  { %v1896_v40 = vadd.f32 1.0, %v2933_v38 }
0x21fa   :  { %2934 = vrcp.f32 %v1896_v40 }
0x2207   :  { %v2935_v42 = vpop.eup %2934 }
0x2208   :  { %v1905_v46 = vmul.f32 %v2935_v42, %v1903_v45 }
0x2268   :  { %v1908_v43 = vpop.permute.xlu1 %1907 }
0x2269   :  { %v1910_v44 = vmul.f32 %v2935_v42, %v1908_v43 }
0x226b   :  { %1912 = vrot.lane.b32.xlu1 %v1910_v44, %s2990_s24 }
0x22dd   :  { %v1913_v41 = vpop.permute.xlu1 %1912 }
0x22de   :  { %v1915_v47 = vadd.f32 %v1913_v41, %v1905_v46 }
0x22e0   :  { %2936 = vtanh.f32 %v1915_v47 }
0x22ed   :  { %v2937_v48 = vpop.eup %2936 }
0x22ee   :  { %1918 = vrot.lane.b32.xlu0 %v2937_v48, %s2989_s23  ;;  %v2832_v48 = vld [vmem:[%s3492_s2 + $0x18] sm:$0xff]  }
0x22f2   :  { %1923 = vrot.lane.b32.xlu0 %v1915_v47, %s2991_s25 }
0x2360   :  { %v1919_v51 = vpop.permute.xlu0 %1918 }
0x2361   :  { %v1921_v52 = vmul.f32 %v2935_v42, %v1919_v51 }
0x2363   :  { %v1927_v53 = vpack.c.bf16 %v1921_v52, %v1921_v52 }
0x2364   :  { %v1924_v54 = vpop.permute.xlu0 %1923 }
0x2365   :  { %v1935_v55 = vrot.slane %v1927_v53, %v3083_v24  ;;  %1926 = vst.msk [vmem:[#allocation3 + $0x2] sm:$0x3] %vm34_vm3, %v1924_v54 }
0x2367   :  { %v1942_v56 = vrot.slane %v1935_v55, %v3083_v24 }
0x2369   :  { %1943 = vrot.lane.b32.xlu1 %v1942_v56, %s2990_s24 }
0x236c   :  { %v2017_v57 = vld [vmem:[#allocation3 + $0x2] sm:$0x3] }
0x236d   :  { %2019 = vrot.lane.b32.xlu0 %v2017_v57, %s2990_s24 }
0x23db   :  { %v1944_v58 = vpop.permute.xlu1 %1943 }
0x23dc   :  { %1946 = vst.msk [vmem:[#allocation2 + $0x1] sm:$0x1] %vm31_vm2, %v1944_v58  ;;  %1947 = vst.msk [vmem:[#allocation4 + $0x4] sm:$0x1] %vm31_vm2, %v1944_v58  ;;  %v2182_v58 = vld [vmem:[#allocation5 + $0xe] sm:$0x3] }
0x23df   :  { %v2020_v11 = vpop.permute.xlu0 %2019 }
0x23e3   :  { %v1949_v59 = vld [vmem:[#allocation2 + $0x1] sm:$0x1] }
0x23e4   :  { %2768 = vmatmul.mubr.msk.bf16.vlgmr.msra.gmra.mxu1 %vm125_vm1, %v1949_v59 }
0x23e5   :  { %2783 = vmatprep.mubr.msk.bf16.mxu1 %vm2985_vm0, %v2984_v2  ;;  %2780 = vmatpush3.bf16.msra.mxu1 %v2832_v48 }
0x23e6   :  { %2781 = vmatprep.subr.bf16.mxu1 %v2984_v2 }
0x23e9   :  { %2782 = vmatpush3.bf16.msra.mxu1 %v2833_v49 }
0x24a4   :  { %v2003_v61 = vpop.f32.mrf.mxu1 }
0x24a5   :  { %v2009_v62 = vadd.f32 %v2003_v61, %v1948_v60 }
0x24a6   :  { %v2769_v63 = vpop.f32.mrf.mxu1 }
0x24a7   :  { %2938 = vtanh.f32 %v2009_v62  ;;  %v2570_v4 = vmul.f32 -1.442695, %v2009_v62 }
0x24a8   :  { %v2006_v0 = vpop.f32.mrf.mxu1 }
0x24a9   :  { %2940 = vpow2.f32 %v2570_v4 }
0x24aa   :  { %v2770_v1 = vpop.f32.mrf.mxu1 }
0x24b4   :  { %v2939_v3 = vpop.eup %2938 }
0x24b5   :  { %2024 = vrot.lane.b32.xlu1 %v2939_v3, %s2989_s23 }
0x24b6   :  { %v2941_v6 = vpop.eup %2940 }
0x24b7   :  { %v2013_v7 = vadd.f32 1.0, %v2941_v6 }
0x24b9   :  { %2942 = vrcp.f32 %v2013_v7 }
0x24c6   :  { %v2943_v8 = vpop.eup %2942 }
0x24c7   :  { %v2022_v12 = vmul.f32 %v2943_v8, %v2020_v11 }
0x2527   :  { %v2025_v9 = vpop.permute.xlu1 %2024 }
0x2528   :  { %v2027_v10 = vmul.f32 %v2943_v8, %v2025_v9 }
0x252a   :  { %2029 = vrot.lane.b32.xlu1 %v2027_v10, %s2990_s24 }
0x259c   :  { %v2030_v13 = vpop.permute.xlu1 %2029 }
0x259d   :  { %v2032_v14 = vadd.f32 %v2030_v13, %v2022_v12 }
0x259f   :  { %2944 = vtanh.f32 %v2032_v14 }
0x25ac   :  { %v2945_v15 = vpop.eup %2944 }
0x25ad   :  { %2035 = vrot.lane.b32.xlu0 %v2945_v15, %s2989_s23 }
0x25b1   :  { %2040 = vrot.lane.b32.xlu0 %v2032_v14, %s2991_s25  ;;  %v2299_v14 = vld [vmem:[#allocation4] sm:$0x1] }
0x25b2   :  { %v2307_v15 = vunpack.c.l.bf16 %v2299_v14 }
0x261f   :  { %v2036_v19 = vpop.permute.xlu0 %2035 }
0x2620   :  { %v2038_v20 = vmul.f32 %v2943_v8, %v2036_v19  ;;  %v2322_v19 = vmul.f32 %v2587_v17, %v2307_v15 }
0x2622   :  { %v2044_v21 = vpack.c.bf16 %v2038_v20, %v2038_v20  ;;  %v2309_v20 = vunpack.c.l.bf16 %v2301_v18 }
0x2623   :  { %v2041_v22 = vpop.permute.xlu0 %2040 }
0x2624   :  { %v2052_v23 = vrot.slane %v2044_v21, %v3083_v24  ;;  %2043 = vst.msk [vmem:[#allocation3 + $0x2] sm:$0x3] %vm34_vm3, %v2041_v22  ;;  %v2302_v21 = vld [vmem:[#allocation4 + $0x3] sm:$0x1]  ;;  %v2330_v22 = vsel %vm34_vm3, %v2322_v19, 0.0 }
0x2626   :  { %v2059_v25 = vrot.slane %v2052_v23, %v3083_v24  ;;  %v2324_v23 = vmul.f32 %v2587_v17, %v2309_v20 }
0x2628   :  { %2060 = vrot.lane.b32.xlu1 %v2059_v25, %s2990_s24  ;;  %v2310_v25 = vunpack.c.l.bf16 %v2302_v21 }
0x262b   :  { %v2134_v26 = vld [vmem:[#allocation3 + $0x2] sm:$0x3] }
0x262c   :  { %2136 = vrot.lane.b32.xlu0 %v2134_v26, %s2990_s24 }
0x269a   :  { %v2061_v27 = vpop.permute.xlu1 %2060 }
0x269b   :  { %2063 = vst.msk [vmem:[#allocation2 + $0x1] sm:$0x1] %vm31_vm2, %v2061_v27  ;;  %2064 = vst.msk [vmem:[#allocation4 + $0x5] sm:$0x1] %vm31_vm2, %v2061_v27  ;;  %v2336_v27 = vsel %vm34_vm3, %v2324_v23, 0.0 }
0x269e   :  { %v2137_v44 = vpop.permute.xlu0 %2136 }
0x26a2   :  { %v2066_v28 = vld [vmem:[#allocation2 + $0x1] sm:$0x1]  ;;  %v2304_v26 = vld [vmem:[#allocation4 + $0x5] sm:$0x1] }
0x26a3   :  { %2776 = vmatmul.mubr.msk.bf16.vlgmr.msra.gmra.mxu0 %vm125_vm1, %v2066_v28  ;;  %v2325_v28 = vmul.f32 %v2587_v17, %v2310_v25 }
0x2763   :  { %v2120_v30 = vpop.f32.mrf.mxu0 }
0x2764   :  { %v2126_v31 = vadd.f32 %v2120_v30, %v2065_v29  ;;  %v2312_v29 = vunpack.c.l.bf16 %v2304_v26  ;;  %v2339_v30 = vsel %vm34_vm3, %v2325_v28, 0.0 }
0x2765   :  { %v2777_v32 = vpop.f32.mrf.mxu0 }
0x2766   :  { %2946 = vtanh.f32 %v2126_v31  ;;  %v2578_v36 = vmul.f32 -1.442695, %v2126_v31  ;;  %v2327_v31 = vmul.f32 %v2587_v17, %v2312_v29 }
0x2767   :  { %v2123_v33 = vpop.f32.mrf.mxu0 }
0x2768   :  { %2948 = vpow2.f32 %v2578_v36  ;;  %v2345_v32 = vsel %vm34_vm3, %v2327_v31, 0.0 }
0x2769   :  { %v2778_v34 = vpop.f32.mrf.mxu0 }
0x2773   :  { %v2947_v35 = vpop.eup %2946 }
0x2774   :  { %2141 = vrot.lane.b32.xlu1 %v2947_v35, %s2989_s23 }
0x2775   :  { %v2949_v37 = vpop.eup %2948 }
0x2776   :  { %v2130_v38 = vadd.f32 1.0, %v2949_v37 }
0x2778   :  { %2950 = vrcp.f32 %v2130_v38  ;;  %v2300_v38 = vld [vmem:[#allocation4 + $0x1] sm:$0x1] }
0x2785   :  { %v2951_v40 = vpop.eup %2950 }
0x2786   :  { %v2139_v45 = vmul.f32 %v2951_v40, %v2137_v44 }
0x27e6   :  { %v2142_v42 = vpop.permute.xlu1 %2141 }
0x27e7   :  { %v2144_v43 = vmul.f32 %v2951_v40, %v2142_v42  ;;  %v2303_v42 = vld [vmem:[#allocation4 + $0x4] sm:$0x1] }
0x27e8   :  { %v2311_v44 = vunpack.c.l.bf16 %v2303_v42 }
0x27e9   :  { %2146 = vrot.lane.b32.xlu1 %v2144_v43, %s2990_s24 }
0x285b   :  { %v2147_v46 = vpop.permute.xlu1 %2146 }
0x285c   :  { %v2149_v41 = vadd.f32 %v2147_v46, %v2139_v45 }
0x285e   :  { %2952 = vtanh.f32 %v2149_v41 }
0x286b   :  { %v2953_v47 = vpop.eup %2952 }
0x286c   :  { %2152 = vrot.lane.b32.xlu0 %v2953_v47, %s2989_s23 }
0x2870   :  { %2157 = vrot.lane.b32.xlu0 %v2149_v41, %s2991_s25  ;;  %v2326_v41 = vmul.f32 %v2587_v17, %v2311_v44 }
0x2872   :  { %v2342_v48 = vsel %vm34_vm3, %v2326_v41, 0.0 }
0x28de   :  { %v2153_v50 = vpop.permute.xlu0 %2152 }
0x28df   :  { %v2155_v51 = vmul.f32 %v2951_v40, %v2153_v50  ;;  %v2308_v40 = vunpack.c.l.bf16 %v2300_v38 }
0x28e1   :  { %v2161_v52 = vpack.c.bf16 %v2155_v51, %v2155_v51  ;;  %v2323_v43 = vmul.f32 %v2587_v17, %v2308_v40 }
0x28e2   :  { %v2158_v53 = vpop.permute.xlu0 %2157 }
0x28e3   :  { %v2169_v54 = vrot.slane %v2161_v52, %v3083_v24  ;;  %2160 = vst.msk [vmem:[#allocation3 + $0x2] sm:$0x3] %vm34_vm3, %v2158_v53  ;;  %v2333_v46 = vsel %vm34_vm3, %v2323_v43, 0.0 }
0x28e5   :  { %v2176_v55 = vrot.slane %v2169_v54, %v3083_v24 }
0x28e7   :  { %2177 = vrot.lane.b32.xlu1 %v2176_v55, %s2990_s24 }
0x28ea   :  { %v2251_v56 = vld [vmem:[#allocation3 + $0x2] sm:$0x3] }
0x28eb   :  { %2253 = vrot.lane.b32.xlu0 %v2251_v56, %s2990_s24 }
0x2959   :  { %v2178_v2 = vpop.permute.xlu1 %2177 }
0x295a   :  { %2180 = vst.msk [vmem:[#allocation2 + $0x1] sm:$0x1] %vm31_vm2, %v2178_v2  ;;  %2181 = vst.msk [vmem:[#allocation4 + $0x6] sm:$0x1] %vm31_vm2, %v2178_v2  ;;  %v2363_v2 = vand.u32 127, %v71_v5 }
0x295d   :  { %v2254_v9 = vpop.permute.xlu0 %2253 }
0x2961   :  { %v2183_v57 = vld [vmem:[#allocation2 + $0x1] sm:$0x1]  ;;  %v2305_v45 = vld [vmem:[#allocation4 + $0x6] sm:$0x1] }
0x2962   :  { %2784 = vmatmul.mubr.msk.bf16.vlgmr.msra.gmra.mxu1 %vm125_vm1, %v2183_v57  ;;  %v2313_v47 = vunpack.c.l.bf16 %v2305_v45 }
0x2964   :  { %v2328_v49 = vmul.f32 %v2587_v17, %v2313_v47 }
0x2966   :  { %v2348_v50 = vsel %vm34_vm3, %v2328_v49, 0.0 }
0x2a22   :  { %v2237_v59 = vpop.f32.mrf.mxu1 }
0x2a23   :  { %v2243_v60 = vadd.f32 %v2237_v59, %v2182_v58  ;;  %v2366_v58 = vsub.s32 %v2363_v2, %v3073_v16 }
0x2a24   :  { %v2785_v61 = vpop.f32.mrf.mxu1 }
0x2a25   :  { %2954 = vtanh.f32 %v2243_v60  ;;  %v2586_v1 = vmul.f32 -1.442695, %v2243_v60 }
0x2a26   :  { %v2240_v62 = vpop.f32.mrf.mxu1 }
0x2a27   :  { %2956 = vpow2.f32 %v2586_v1 }
0x2a28   :  { %v2786_v63 = vpop.f32.mrf.mxu1 }
0x2a32   :  { %v2955_v0 = vpop.eup %2954 }
0x2a33   :  { %2258 = vrot.lane.b32.xlu1 %v2955_v0, %s2989_s23 }
0x2a34   :  { %v2957_v3 = vpop.eup %2956 }
0x2a35   :  { %v2247_v4 = vadd.f32 1.0, %v2957_v3 }
0x2a37   :  { %2958 = vrcp.f32 %v2247_v4 }
0x2a44   :  { %v2959_v6 = vpop.eup %2958 }
0x2a45   :  { %v2256_v10 = vmul.f32 %v2959_v6, %v2254_v9 }
0x2aa5   :  { %v2259_v7 = vpop.permute.xlu1 %2258 }
0x2aa6   :  { %v2261_v8 = vmul.f32 %v2959_v6, %v2259_v7 }
0x2aa8   :  { %2263 = vrot.lane.b32.xlu1 %v2261_v8, %s2990_s24 }
0x2b1a   :  { %v2264_v11 = vpop.permute.xlu1 %2263 }
0x2b1b   :  { %v2266_v12 = vadd.f32 %v2264_v11, %v2256_v10 }
0x2b1d   :  { %2960 = vtanh.f32 %v2266_v12 }
0x2b2a   :  { %v2961_v13 = vpop.eup %2960 }
0x2b2b   :  { %2269 = vrot.lane.b32.xlu0 %v2961_v13, %s2989_s23  ;;  %s2462_s23 = sshll.u32 %s2992_s4, 4  ;;  %s2463_s23 = int_to_ptr.vmem [resolvable:$true] %s2462_s23 }
0x2b2c   :  { %p2967_p1 = scmp.lt.s32.totalorder %s2463_s23, %s2463_s23 }
0x2b4a   :  { %2331 = vadd.xlane.f32.xlu0 %v2330_v22 }
0x2b4e   :  { %2337 = vadd.xlane.f32.xlu0 %v2336_v27 }
0x2b52   :  { %2340 = vadd.xlane.f32.xlu0 %v2339_v30 }
0x2b56   :  { %2346 = vadd.xlane.f32.xlu0 %v2345_v32 }
0x2b9d   :  { %v2270_v33 = vpop.permute.xlu0 %2269 }
0x2b9e   :  { %v2272_v34 = vmul.f32 %v2959_v6, %v2270_v33 }
0x2ba0   :  { %v2278_v35 = vpack.c.bf16 %v2272_v34, %v2272_v34 }
0x2ba2   :  { %v2286_v36 = vrot.slane %v2278_v35, %v3083_v24 }
0x2ba4   :  { %v2293_v37 = vrot.slane %v2286_v36, %v3083_v24  ;;  %v2588_v24 = vld [vmem:[#allocation6] ss:$0 sm:$0xff] }
0x2ba6   :  { %2294 = vrot.lane.b32.xlu1 %v2293_v37, %s2990_s24  ;;  %s2962_s24 = scalar_lea.vmem %s2463_s23, 32 }
0x2ba7   :  { %p2963_p0 = scmp.ne.s32.totalorder %s2463_s23, %s2962_s24  ;;  %p2968_p2 = scmp.lt.s32.totalorder %s2962_s24, %s2962_s24 }
0x2ba9   :  { %p2969_p3 = por %p2968_p2, %p2967_p1 }
0x2bab   :  { %p2970_p4 = pnand %p2969_p3, %p2963_p0 }
0x2bca   :  { %2334 = vadd.xlane.f32.xlu1 %v2333_v46 }
0x2bce   :  { %2343 = vadd.xlane.f32.xlu1 %v2342_v48 }
0x2bd2   :  { %2349 = vadd.xlane.f32.xlu1 %v2348_v50 }
0x2bd3   :  { %v2332_v56 = vpop.xlane.xlu0 %2331 }
0x2bd4   :  { %v2367_v61 = vrot.slane %v2332_v56, %v2366_v58 }
0x2bd7   :  { %v2338_v57 = vpop.xlane.xlu0 %2337 }
0x2bd8   :  { %v2375_v63 = vrot.slane %v2338_v57, %v2366_v58 }
0x2bdb   :  { %v2341_v59 = vpop.xlane.xlu0 %2340 }
0x2bdc   :  { %v2379_v0 = vrot.slane %v2341_v59, %v2366_v58 }
0x2be3   :  { %2450 = vperm.xlu1 %2796, %v2588_v24  }
0x2be7   :  { %2274 = vrot.lane.b32.xlu1 %v2266_v12, %s2991_s25 }
0x2c18   :  { %v2295_v51 = vpop.permute.xlu1 %2294 }
0x2c19   :  { %2297 = vst.msk [vmem:[#allocation2 + $0x1] sm:$0x1] %vm31_vm2, %v2295_v51  ;;  %2298 = vst.msk [vmem:[#allocation4 + $0x7] sm:$0x1] %vm31_vm2, %v2295_v51 }
0x2c20   :  { %v2306_v52 = vld [vmem:[#allocation4 + $0x7] sm:$0x1] }
0x2c21   :  { %v2314_v53 = vunpack.c.l.bf16 %v2306_v52 }
0x2c23   :  { %v2329_v54 = vmul.f32 %v2587_v17, %v2314_v53 }
0x2c25   :  { %v2351_v55 = vsel %vm34_vm3, %v2329_v54, 0.0 }
0x2c26   :  { %2352 = vadd.xlane.f32.xlu0 %v2351_v55 }
0x2c3c   :  { %1148 = vrot.lane.b32.xlu0 %v3268_v39, %s2991_s25  ;;  %v2347_v39 = vpop.xlane.xlu0 %2346 }
0x2c3d   :  { %v2387_v8 = vrot.slane %v2347_v39, %v2366_v58 }
0x2c53   :  { %v2335_v60 = vpop.xlane.xlu1 %2334 }
0x2c54   :  { %v2371_v62 = vrot.slane %v2335_v60, %v2366_v58 }
0x2c56   :  { %v2397_v1 = vsel %vm2396_vm4, %v2371_v62, %v2367_v61 }
0x2c57   :  { %v2399_v3 = vsel %vm2398_vm5, %v2375_v63, %v2397_v1  ;;  %v2344_v4 = vpop.xlane.xlu1 %2343 }
0x2c58   :  { %v2383_v6 = vrot.slane %v2344_v4, %v2366_v58  ;;  %v2401_v7 = vsel %vm2400_vm6, %v2379_v0, %v2399_v3 }
0x2c5a   :  { %v2403_v5 = vsel %vm2402_vm7, %v2383_v6, %v2401_v7 }
0x2c5b   :  { %v2350_v16 = vpop.xlane.xlu1 %2349  ;;  %v2405_v10 = vsel %vm2404_vm8, %v2387_v8, %v2403_v5 }
0x2c5c   :  { %v2391_v9 = vrot.slane %v2350_v16, %v2366_v58 }
0x2c5e   :  { %v2407_v11 = vsel %vm2406_vm9, %v2391_v9, %v2405_v10 }
0x2c5f   :  { %v2451_v12 = vpop.permute.xlu1 %2450 }
0x2c63   :  { %v2275_v13 = vpop.permute.xlu1 %2274 }
0x2c64   :  { %2277 = vst.msk [vmem:[#allocation3 + $0x2] sm:$0x3] %vm34_vm3, %v2275_v13 }
0x2caf   :  { %v2353_v14 = vpop.xlane.xlu0 %2352 }
0x2cb0   :  { %v2395_v15 = vrot.slane %v2353_v14, %v2366_v58 }
0x2cb2   :  { %v2409_v17 = vsel %vm2408_vm10, %v2395_v15, %v2407_v11 }
0x2cb3   :  { %2411 = vxpose.xlu1.b32.start.end [1/1] (short) (narrow) %v2409_v17, 8  ;;  %v1149_v18 = vpop.permute.xlu0 %1148 }
0x2cb4   :  { %1151 = vst.msk [vmem:[#allocation3] sm:$0x3] %vm34_vm3, %v1149_v18 }
0x2d2f   :  { %v2427_v19 = vpop.trf.xlu1 }
0x2d30   :  { %v2453_v20 = vadd.f32 %v2451_v12, %v2427_v19 }
0x2d32   :  { %2455 = vst.msk [vmem:[#allocation7] sm:$0x3] %vm2454_vm11, %v2453_v20 }
0x2d33   :  { %2973 = shalt.err (!%p2970_p4)
}
0x2d34   :  { %2465 = dma.vmem_to_hbm [thread:$0]  %s2463_s23, 32, %s3496_s6, [#allocation8]  }
0x2d35   :  { %2982 = dma.done.wait [#allocation8], 32  }
0x2d36   :  { %2983 = vsyncadd [#allocation8], 4294967264 }
0x2d37   :  { %2469 = vsyncpa [#allocation8], 1 }

</bundles_post_ra>
